<compile_context>
chip_gen: v7x
topology: tpu7x:2x2x1
jax: 0.10.0
libtpu: 0.0.40
codegen_flags: <defaults>
</compile_context>

<pallas_src>
import numpy as np
import jax
import jax.numpy as jnp
from jax import lax
from jax.experimental import pallas as pl
from jax.experimental.pallas import tpu as pltpu

EPS = 1e-5


def _vmem():
    return pl.BlockSpec(memory_space=pltpu.MemorySpace.VMEM)


# ---------------------------------------------------------------------------
# Kernel 1: fc1 -> bn1 (batch stats) -> relu -> fc2 -> bn2 (batch stats)
# ---------------------------------------------------------------------------
def _fc_kernel(x_ref, w1_ref, b1_ref, g1_ref, be1_ref,
               w2_ref, b2_ref, g2_ref, be2_ref, out_ref):
    x = x_ref[...]
    h = jnp.dot(x, w1_ref[...], preferred_element_type=jnp.float32) + b1_ref[...]
    mu = jnp.mean(h, axis=0, keepdims=True)
    var = jnp.mean((h - mu) ** 2, axis=0, keepdims=True)
    h = g1_ref[...] * (h - mu) * lax.rsqrt(var + EPS) + be1_ref[...]
    h = jnp.maximum(h, 0.0)
    h2 = jnp.dot(h, w2_ref[...], preferred_element_type=jnp.float32) + b2_ref[...]
    mu2 = jnp.mean(h2, axis=0, keepdims=True)
    var2 = jnp.mean((h2 - mu2) ** 2, axis=0, keepdims=True)
    out_ref[...] = g2_ref[...] * (h2 - mu2) * lax.rsqrt(var2 + EPS) + be2_ref[...]


def fc_forward(x, w1, b1, g1, be1, w2, b2, g2, be2):
    B = x.shape[0]
    R = w2.shape[1]
    return pl.pallas_call(
        _fc_kernel,
        out_shape=jax.ShapeDtypeStruct((B, R), jnp.float32),
        in_specs=[_vmem() for _ in range(9)],
        out_specs=_vmem(),
    )(x, w1, b1, g1, be1, w2, b2, g2, be2)


# ---------------------------------------------------------------------------
# Kernel 2: fused (upsample x2 + conv) x 3, lane-dense (C, H*W) layout.
# ---------------------------------------------------------------------------
def make_conv_forward(B, nc, ks, hw, use_sigmoid):
    assert len(nc) == 4 and ks == [3, 3, 3]
    C0, C1, C2, C3 = nc
    H1, H2, H3 = 2 * hw, 4 * hw, 8 * hw                    # 8, 16, 32
    T0, T1, T2, T3 = hw * hw, H1 * H1, H2 * H2, H3 * H3    # 16, 64, 256, 1024

    # flat lane offsets of the 3x3 taps on the upsampled images (stages 1, 2)
    offs_s1 = [oy * H2 + ox for oy in (-1, 0, 1) for ox in (-1, 0, 1)]
    offs_s2 = [oy * H3 + ox for oy in (-1, 0, 1) for ox in (-1, 0, 1)]

    def _taps(up, offs, T, msk_ref):
        # (Cin, T) upsampled slab -> (9*Cin, T) stacked, shifted, masked taps
        slabs = []
        for t, off in enumerate(offs):
            if off == 0:
                slabs.append(up)                                  # centre tap
            else:
                r = pltpu.roll(up, shift=(-off) % T, axis=1)      # XLU lane roll
                slabs.append(r * msk_ref[t])                      # border mask
        return jnp.concatenate(slabs, axis=0)

    def kernel(h0_ref, m0_ref, w0_ref, b0_ref,
               mt1_ref, msk1_ref, w1_ref, b1_ref,
               mt2_ref, msk2_ref, w2_ref, b2_ref, out_ref):
        f32 = jnp.float32
        h = h0_ref[0]                                             # (C0, 16)

        # ---- stage 0: upsample 4->8 + conv1 + relu (dense taps, T=64) ----
        slabs = [jnp.dot(h, m0_ref[t], preferred_element_type=f32)
                 for t in range(9)]
        up_all = jnp.concatenate(slabs, axis=0)                   # (9*C0, 64)
        h = jnp.dot(w0_ref[...], up_all, preferred_element_type=f32) + b0_ref[...]
        h = jnp.maximum(h, 0.0)                                   # (C1, 64)

        # ---- stage 1: upsample 8->16 + conv2 + relu ----
        up = jnp.dot(h, mt1_ref[...], preferred_element_type=f32)  # (C1, 256)
        up_all = _taps(up, offs_s1, T2, msk1_ref)                   # (9*C1, 256)
        h = jnp.dot(w1_ref[...], up_all, preferred_element_type=f32) + b1_ref[...]
        h = jnp.maximum(h, 0.0)                                   # (C2, 256)

        # ---- stage 2: upsample 16->32 + conv3 (+ sigmoid) ----
        up = jnp.dot(h, mt2_ref[...], preferred_element_type=f32)  # (C2, 1024)
        up_all = _taps(up, offs_s2, T3, msk2_ref)                   # (9*C2, 1024)
        o = jnp.dot(w2_ref[...], up_all, preferred_element_type=f32) + b2_ref[...]
        if use_sigmoid:
            o = pl.reciprocal(1.0 + jnp.exp(-o), approx=True)     # EUP exp + rcp
        out_ref[0] = o                                            # (C3, 1024)

    def full(shape):
        # whole-array block, constant index -> DMA'd once across grid steps
        return pl.BlockSpec(shape, lambda b: (0,) * len(shape))

    in_specs = [
        pl.BlockSpec((1, C0, T0), lambda b: (b, 0, 0)),    # h0 (per batch elem)
        full((9, T0, T1)),                                 # stage-0 tap mats^T
        full((C1, 9 * C0)), full((C1, 1)),                 # folded w0, b0
        full((T1, T2)), full((9, 1, T2)),                  # Mfull1^T, masks1
        full((C2, 9 * C1)), full((C2, 1)),                 # folded w1, b1
        full((T2, T3)), full((9, 1, T3)),                  # Mfull2^T, masks2
        full((C3, 9 * C2)), full((C3, 1)),                 # folded w2, b2
    ]
    return pl.pallas_call(
        kernel,
        out_shape=jax.ShapeDtypeStruct((B, C3, T3), jnp.float32),
        grid=(B,),
        in_specs=in_specs,
        out_specs=pl.BlockSpec((1, C3, T3), lambda b: (b, 0, 0)),
        compiler_params=pltpu.CompilerParams(
            dimension_semantics=("parallel",)),            # 2 TCs on v7x
    )


# ---------------------------------------------------------------------------
# Host-side constants (parameter setup glue)
# ---------------------------------------------------------------------------
def bilinear_up_matrix(n_in):
    """Interpolation matrix of nn.UpsamplingBilinear2d(scale_factor=2)
    (align_corners=True) along one axis: (2*n_in, n_in)."""
    n_out = 2 * n_in
    U = np.zeros((n_out, n_in), np.float32)
    scale = (n_in - 1) / (n_out - 1)
    for i in range(n_out):
        src = i * scale
        i0 = min(int(np.floor(src)), n_in - 1)
        i1 = min(i0 + 1, n_in - 1)
        f = src - i0
        U[i, i0] += 1.0 - f
        U[i, i1] += f
    return U


def stage_constants(h_in, k, want_dense):
    """Constants for one 'bilinear upsample x2 + kxk same conv' stage.

    Returns (U, Mfull^T, dense_taps^T or None, masks):
      Mfull^T     (h_in^2, h_out^2)        transposed kron(U, U)
      dense_taps  (k*k, h_in^2, h_out^2)   per-tap (upsample+shift) matrices^T
      masks       (k*k, 1, h_out^2)        conv border-validity masks (f32)
    """
    h_out = 2 * h_in
    p = (k - 1) // 2
    U = bilinear_up_matrix(h_in)
    Mfull = np.kron(U, U).astype(np.float32)               # (h_out^2, h_in^2)
    yy, xx = np.meshgrid(np.arange(h_out), np.arange(h_out), indexing="ij")
    dense, masks = [], []
    for dy in range(k):
        for dx in range(k):
            oy, ox = dy - p, dx - p
            valid = ((yy + oy >= 0) & (yy + oy < h_out) &
                     (xx + ox >= 0) & (xx + ox < h_out)).reshape(-1)
            masks.append(valid.astype(np.float32))
            if want_dense:
                Mt = np.zeros_like(Mfull)
                src = ((yy + oy) * h_out + (xx + ox)).reshape(-1)
                Mt[valid] = Mfull[src[valid]]
                dense.append(np.ascontiguousarray(Mt.T))   # (h_in^2, h_out^2)
    dense = np.stack(dense) if want_dense else None
    masks = np.stack(masks)[:, None, :]                    # (k*k, 1, h_out^2)
    return U, np.ascontiguousarray(Mfull.T), dense, masks


def fold_conv_weight(w):
    # (Cout, Cin, kh, kw) -> (Cout, kh*kw*Cin); columns ordered (kh, kw, cin)
    co, ci, kh, kw = w.shape
    return jnp.transpose(w, (0, 2, 3, 1)).reshape(co, kh * kw * ci)


# ---------------------------------------------------------------------------
# Full forward (Pallas kernels + free row-major views)
# ---------------------------------------------------------------------------
def build_forward(B, nc, ks, hw, use_sigmoid):
    conv_call = make_conv_forward(B, nc, ks, hw, use_sigmoid)

    def forward(x, P, K):
        h = fc_forward(x, P["w1"], P["b1"], P["g1"], P["be1"],
                       P["w2"], P["b2"], P["g2"], P["be2"])           # (B, 128)
        # torch .reshape(B, C0, 4, 4): pure row-major view -> channels on
        # sublanes, flat spatial on lanes for the fused conv kernel.
        h0 = h.reshape(B, nc[0], hw * hw)
        out = conv_call(h0,
                        K["m0"], K["w0"], K["b0"],
                        K["mt1"], K["msk1"], K["w1"], K["b1"],
                        K["mt2"], K["msk2"], K["w2"], K["b2"])         # (B,3,1024)
        # rows are already (channel, y, x) row-major == torch NCHW flatten.
        return out.reshape(B, -1)

    return jax.jit(forward)


# ---------------------------------------------------------------------------
# Pure-JAX reference (mirrors the PyTorch forward) for a numerical check
# ---------------------------------------------------------------------------
def reference_forward(x, P, U_list, nc, ks, hw, use_sigmoid):
    B = x.shape[0]
    h = x @ P["w1"] + P["b1"]
    mu = h.mean(0, keepdims=True)
    var = ((h - mu) ** 2).mean(0, keepdims=True)
    h = P["g1"] * (h - mu) / jnp.sqrt(var + EPS) + P["be1"]
    h = jnp.maximum(h, 0.0)
    h = h @ P["w2"] + P["b2"]
    mu = h.mean(0, keepdims=True)
    var = ((h - mu) ** 2).mean(0, keepdims=True)
    h = P["g2"] * (h - mu) / jnp.sqrt(var + EPS) + P["be2"]
    h = h.reshape(B, nc[0], hw, hw)
    for s in range(3):
        U = jnp.asarray(U_list[s])
        h = jnp.einsum("ph,bchw->bcpw", U, h)
        h = jnp.einsum("qw,bcpw->bcpq", U, h)
        k = ks[s]
        p = (k - 1) // 2
        h = lax.conv_general_dilated(h, P["conv_w"][s], (1, 1), [(p, p), (p, p)],
                                     dimension_numbers=("NCHW", "OIHW", "NCHW"))
        h = h + P["conv_b"][s][None, :, None, None]
        if s < 2:
            h = jnp.maximum(h, 0.0)
    out = h.reshape(B, -1)
    if use_sigmoid:
        out = jax.nn.sigmoid(out)
    return out


# ---------------------------------------------------------------------------
def init_params(key, d_code, n_hidden, reshape_size, nc, ks):
    kk = jax.random.split(key, 16)

    def nrm(k, shape, scale):
        return scale * jax.random.normal(k, shape, jnp.float32)

    P = {
        "w1": nrm(kk[0], (d_code, n_hidden), 1.0 / np.sqrt(d_code)),
        "b1": nrm(kk[1], (1, n_hidden), 0.05),
        "g1": jnp.ones((1, n_hidden), jnp.float32),
        "be1": jnp.zeros((1, n_hidden), jnp.float32),
        "w2": nrm(kk[2], (n_hidden, reshape_size), 1.0 / np.sqrt(n_hidden)),
        "b2": nrm(kk[3], (1, reshape_size), 0.05),
        "g2": jnp.ones((1, reshape_size), jnp.float32),
        "be2": jnp.zeros((1, reshape_size), jnp.float32),
        "conv_w": [],
        "conv_b": [],
    }
    for s in range(3):
        cin, cout, k = nc[s], nc[s + 1], ks[s]
        fan_in = cin * k * k
        P["conv_w"].append(nrm(kk[4 + 2 * s], (cout, cin, k, k), 1.0 / np.sqrt(fan_in)))
        P["conv_b"].append(nrm(kk[5 + 2 * s], (cout,), 0.05))
    return P


if __name__ == "__main__":
    # Module hyperparameters (small, consistent with ConvGenSVHN.__init__)
    d_code = 16
    n_hidden = 32                    # fc_spec = "32"
    nc = [8, 8, 8, 3]                # nc_str = "8,8,8" (+3 output channels)
    ks = [3, 3, 3]                   # ks_str = "3,3,3"
    hw = 4
    reshape_size = nc[0] * hw * hw   # 128
    use_sigmoid = True
    B = 2

    key = jax.random.PRNGKey(0)
    k_params, k_x = jax.random.split(key)
    P = init_params(k_params, d_code, n_hidden, reshape_size, nc, ks)

    # Per-stage constants (host-side glue).
    U0, _, dense0, _ = stage_constants(hw, ks[0], want_dense=True)       # 4 -> 8
    U1, M1T, _, masks1 = stage_constants(2 * hw, ks[1], want_dense=False)  # 8 -> 16
    U2, M2T, _, masks2 = stage_constants(4 * hw, ks[2], want_dense=False)  # 16 -> 32

    K = {
        "m0": jnp.asarray(dense0),                          # (9, 16, 64)
        "w0": fold_conv_weight(P["conv_w"][0]),             # (8, 72)
        "b0": P["conv_b"][0].reshape(-1, 1),                # (8, 1)
        "mt1": jnp.asarray(M1T),                            # (64, 256)
        "msk1": jnp.asarray(masks1),                        # (9, 1, 256)
        "w1": fold_conv_weight(P["conv_w"][1]),             # (8, 72)
        "b1": P["conv_b"][1].reshape(-1, 1),                # (8, 1)
        "mt2": jnp.asarray(M2T),                            # (256, 1024)
        "msk2": jnp.asarray(masks2),                        # (9, 1, 1024)
        "w2": fold_conv_weight(P["conv_w"][2]),             # (3, 72)
        "b2": P["conv_b"][2].reshape(-1, 1),                # (3, 1)
    }

    x = jax.random.normal(k_x, (B, d_code), jnp.float32)

    forward = build_forward(B, nc, ks, hw, use_sigmoid)
    out = jax.block_until_ready(forward(x, P, K))
    assert out.shape == (B, 3 * (8 * hw) ** 2), out.shape

    ref = jax.block_until_ready(
        reference_forward(x, P, [U0, U1, U2], nc, ks, hw, use_sigmoid))
    np.testing.assert_allclose(np.asarray(out), np.asarray(ref),
                               rtol=2e-3, atol=2e-3)

    print("KERNEL_OK")
</pallas_src>

<mosaic_0001>
module attributes {stable_mosaic.version = 11 : i64} {
  func.func @_fc_kernel(%arg0: memref<2x16xf32, #tpu.memory_space<vmem>>, %arg1: memref<16x32xf32, #tpu.memory_space<vmem>>, %arg2: memref<1x32xf32, #tpu.memory_space<vmem>>, %arg3: memref<1x32xf32, #tpu.memory_space<vmem>>, %arg4: memref<1x32xf32, #tpu.memory_space<vmem>>, %arg5: memref<32x128xf32, #tpu.memory_space<vmem>>, %arg6: memref<1x128xf32, #tpu.memory_space<vmem>>, %arg7: memref<1x128xf32, #tpu.memory_space<vmem>>, %arg8: memref<1x128xf32, #tpu.memory_space<vmem>>, %arg9: memref<2x128xf32, #tpu.memory_space<vmem>>) attributes {dimension_semantics = [], scalar_prefetch = 0 : i64, scratch_operands = 0 : i64, tpu.core_type = #tpu.core_type<tc>} {
    %c0 = arith.constant 0 : index
    %c0_0 = arith.constant 0 : index
    %0 = vector.load %arg0[%c0, %c0_0] : memref<2x16xf32, #tpu.memory_space<vmem>>, vector<2x16xf32>
    %c0_1 = arith.constant 0 : index
    %c0_2 = arith.constant 0 : index
    %1 = vector.load %arg1[%c0_1, %c0_2] : memref<16x32xf32, #tpu.memory_space<vmem>>, vector<16x32xf32>
    %cst = arith.constant dense<0.000000e+00> : vector<2x32xf32>
    %2 = tpu.matmul %0, %1, %cst {dimension_numbers = #tpu.dot_dimension_numbers<[1], [0], [0], [1], [0, 0, 1, 1], [], []>} : vector<2x16xf32>, vector<16x32xf32>, vector<2x32xf32> -> vector<2x32xf32>
    %c0_3 = arith.constant 0 : index
    %c0_4 = arith.constant 0 : index
    %3 = vector.load %arg2[%c0_3, %c0_4] : memref<1x32xf32, #tpu.memory_space<vmem>>, vector<1x32xf32>
    %4 = vector.broadcast %3 : vector<1x32xf32> to vector<2x32xf32>
    %5 = arith.addf %2, %4 : vector<2x32xf32>
    %cst_5 = arith.constant dense<0.000000e+00> : vector<32xf32>
    %6 = vector.multi_reduction <add>, %5, %cst_5 [0] : vector<2x32xf32> to vector<32xf32>
    %7 = vector.shape_cast %6 : vector<32xf32> to vector<1x32xf32>
    %cst_6 = arith.constant 2.000000e+00 : f32
    %8 = vector.broadcast %cst_6 : f32 to vector<1x32xf32>
    %9 = arith.divf %7, %8 : vector<1x32xf32>
    %10 = vector.broadcast %9 : vector<1x32xf32> to vector<2x32xf32>
    %11 = arith.subf %5, %10 : vector<2x32xf32>
    %12 = arith.mulf %11, %11 : vector<2x32xf32>
    %cst_7 = arith.constant dense<0.000000e+00> : vector<32xf32>
    %13 = vector.multi_reduction <add>, %12, %cst_7 [0] : vector<2x32xf32> to vector<32xf32>
    %14 = vector.shape_cast %13 : vector<32xf32> to vector<1x32xf32>
    %cst_8 = arith.constant 2.000000e+00 : f32
    %15 = vector.broadcast %cst_8 : f32 to vector<1x32xf32>
    %16 = arith.divf %14, %15 : vector<1x32xf32>
    %c0_9 = arith.constant 0 : index
    %c0_10 = arith.constant 0 : index
    %17 = vector.load %arg3[%c0_9, %c0_10] : memref<1x32xf32, #tpu.memory_space<vmem>>, vector<1x32xf32>
    %18 = vector.broadcast %9 : vector<1x32xf32> to vector<2x32xf32>
    %19 = arith.subf %5, %18 : vector<2x32xf32>
    %20 = vector.broadcast %17 : vector<1x32xf32> to vector<2x32xf32>
    %21 = arith.mulf %20, %19 : vector<2x32xf32>
    %cst_11 = arith.constant 9.99999974E-6 : f32
    %22 = vector.broadcast %cst_11 : f32 to vector<1x32xf32>
    %23 = arith.addf %16, %22 : vector<1x32xf32>
    %24 = math.rsqrt %23 : vector<1x32xf32>
    %25 = vector.broadcast %24 : vector<1x32xf32> to vector<2x32xf32>
    %26 = arith.mulf %21, %25 : vector<2x32xf32>
    %c0_12 = arith.constant 0 : index
    %c0_13 = arith.constant 0 : index
    %27 = vector.load %arg4[%c0_12, %c0_13] : memref<1x32xf32, #tpu.memory_space<vmem>>, vector<1x32xf32>
    %28 = vector.broadcast %27 : vector<1x32xf32> to vector<2x32xf32>
    %29 = arith.addf %26, %28 : vector<2x32xf32>
    %cst_14 = arith.constant 0.000000e+00 : f32
    %30 = vector.broadcast %cst_14 : f32 to vector<2x32xf32>
    %31 = arith.maximumf %29, %30 : vector<2x32xf32>
    %c0_15 = arith.constant 0 : index
    %c0_16 = arith.constant 0 : index
    %32 = vector.load %arg5[%c0_15, %c0_16] : memref<32x128xf32, #tpu.memory_space<vmem>>, vector<32x128xf32>
    %cst_17 = arith.constant dense<0.000000e+00> : vector<2x128xf32>
    %33 = tpu.matmul %31, %32, %cst_17 {dimension_numbers = #tpu.dot_dimension_numbers<[1], [0], [0], [1], [0, 0, 1, 1], [], []>} : vector<2x32xf32>, vector<32x128xf32>, vector<2x128xf32> -> vector<2x128xf32>
    %c0_18 = arith.constant 0 : index
    %c0_19 = arith.constant 0 : index
    %34 = vector.load %arg6[%c0_18, %c0_19] : memref<1x128xf32, #tpu.memory_space<vmem>>, vector<1x128xf32>
    %35 = vector.broadcast %34 : vector<1x128xf32> to vector<2x128xf32>
    %36 = arith.addf %33, %35 : vector<2x128xf32>
    %cst_20 = arith.constant dense<0.000000e+00> : vector<128xf32>
    %37 = vector.multi_reduction <add>, %36, %cst_20 [0] : vector<2x128xf32> to vector<128xf32>
    %38 = vector.shape_cast %37 : vector<128xf32> to vector<1x128xf32>
    %cst_21 = arith.constant 2.000000e+00 : f32
    %39 = vector.broadcast %cst_21 : f32 to vector<1x128xf32>
    %40 = arith.divf %38, %39 : vector<1x128xf32>
    %41 = vector.broadcast %40 : vector<1x128xf32> to vector<2x128xf32>
    %42 = arith.subf %36, %41 : vector<2x128xf32>
    %43 = arith.mulf %42, %42 : vector<2x128xf32>
    %cst_22 = arith.constant dense<0.000000e+00> : vector<128xf32>
    %44 = vector.multi_reduction <add>, %43, %cst_22 [0] : vector<2x128xf32> to vector<128xf32>
    %45 = vector.shape_cast %44 : vector<128xf32> to vector<1x128xf32>
    %cst_23 = arith.constant 2.000000e+00 : f32
    %46 = vector.broadcast %cst_23 : f32 to vector<1x128xf32>
    %47 = arith.divf %45, %46 : vector<1x128xf32>
    %c0_24 = arith.constant 0 : index
    %c0_25 = arith.constant 0 : index
    %48 = vector.load %arg7[%c0_24, %c0_25] : memref<1x128xf32, #tpu.memory_space<vmem>>, vector<1x128xf32>
    %49 = vector.broadcast %40 : vector<1x128xf32> to vector<2x128xf32>
    %50 = arith.subf %36, %49 : vector<2x128xf32>
    %51 = vector.broadcast %48 : vector<1x128xf32> to vector<2x128xf32>
    %52 = arith.mulf %51, %50 : vector<2x128xf32>
    %cst_26 = arith.constant 9.99999974E-6 : f32
    %53 = vector.broadcast %cst_26 : f32 to vector<1x128xf32>
    %54 = arith.addf %47, %53 : vector<1x128xf32>
    %55 = math.rsqrt %54 : vector<1x128xf32>
    %56 = vector.broadcast %55 : vector<1x128xf32> to vector<2x128xf32>
    %57 = arith.mulf %52, %56 : vector<2x128xf32>
    %c0_27 = arith.constant 0 : index
    %c0_28 = arith.constant 0 : index
    %58 = vector.load %arg8[%c0_27, %c0_28] : memref<1x128xf32, #tpu.memory_space<vmem>>, vector<1x128xf32>
    %59 = vector.broadcast %58 : vector<1x128xf32> to vector<2x128xf32>
    %60 = arith.addf %57, %59 : vector<2x128xf32>
    %c0_29 = arith.constant 0 : index
    %c0_30 = arith.constant 0 : index
    %61 = vector.load %arg9[%c0_29, %c0_30] : memref<2x128xf32, #tpu.memory_space<vmem>>, vector<2x128xf32>
    tpu.vector_store %arg9[%c0_29, %c0_30], %60 {strides = array<i32>} : memref<2x128xf32, #tpu.memory_space<vmem>>, vector<2x128xf32>,
    return
  }
}

module attributes {stable_mosaic.version = 11 : i64} {
  func.func @kernel(%arg0: i32, %arg1: memref<1x8x16xf32, #tpu.memory_space<vmem>>, %arg2: memref<9x16x64xf32, #tpu.memory_space<vmem>>, %arg3: memref<8x72xf32, #tpu.memory_space<vmem>>, %arg4: memref<8x1xf32, #tpu.memory_space<vmem>>, %arg5: memref<64x256xf32, #tpu.memory_space<vmem>>, %arg6: memref<9x1x256xf32, #tpu.memory_space<vmem>>, %arg7: memref<8x72xf32, #tpu.memory_space<vmem>>, %arg8: memref<8x1xf32, #tpu.memory_space<vmem>>, %arg9: memref<256x1024xf32, #tpu.memory_space<vmem>>, %arg10: memref<9x1x1024xf32, #tpu.memory_space<vmem>>, %arg11: memref<3x72xf32, #tpu.memory_space<vmem>>, %arg12: memref<3x1xf32, #tpu.memory_space<vmem>>, %arg13: memref<1x3x1024xf32, #tpu.memory_space<vmem>>) attributes {dimension_semantics = [#tpu.dimension_semantics<parallel>], iteration_bounds = array<i64: 2>, scalar_prefetch = 0 : i64, scratch_operands = 0 : i64, tpu.core_type = #tpu.core_type<tc>, window_params = [{transform_indices = @transform_0, window_bounds = array<i64: 1, 8, 16>}, {pipeline_mode = #tpu.pipeline_mode<synchronous>, transform_indices = @transform_1, window_bounds = array<i64: 9, 16, 64>}, {pipeline_mode = #tpu.pipeline_mode<synchronous>, transform_indices = @transform_2, window_bounds = array<i64: 8, 72>}, {pipeline_mode = #tpu.pipeline_mode<synchronous>, transform_indices = @transform_3, window_bounds = array<i64: 8, 1>}, {pipeline_mode = #tpu.pipeline_mode<synchronous>, transform_indices = @transform_4, window_bounds = array<i64: 64, 256>}, {pipeline_mode = #tpu.pipeline_mode<synchronous>, transform_indices = @transform_5, window_bounds = array<i64: 9, 1, 256>}, {pipeline_mode = #tpu.pipeline_mode<synchronous>, transform_indices = @transform_6, window_bounds = array<i64: 8, 72>}, {pipeline_mode = #tpu.pipeline_mode<synchronous>, transform_indices = @transform_7, window_bounds = array<i64: 8, 1>}, {pipeline_mode = #tpu.pipeline_mode<synchronous>, transform_indices = @transform_8, window_bounds = array<i64: 256, 1024>}, {pipeline_mode = #tpu.pipeline_mode<synchronous>, transform_indices = @transform_9, window_bounds = array<i64: 9, 1, 1024>}, {pipeline_mode = #tpu.pipeline_mode<synchronous>, transform_indices = @transform_10, window_bounds = array<i64: 3, 72>}, {pipeline_mode = #tpu.pipeline_mode<synchronous>, transform_indices = @transform_11, window_bounds = array<i64: 3, 1>}, {transform_indices = @transform_12, window_bounds = array<i64: 1, 3, 1024>}]} {
    %c0 = arith.constant 0 : index
    %c0_0 = arith.constant 0 : index
    %c0_1 = arith.constant 0 : index
    %0 = vector.load %arg1[%c0, %c0_0, %c0_1] : memref<1x8x16xf32, #tpu.memory_space<vmem>>, vector<1x8x16xf32>
    %1 = vector.shape_cast %0 : vector<1x8x16xf32> to vector<8x16xf32>
    %c0_2 = arith.constant 0 : index
    %c0_3 = arith.constant 0 : index
    %c0_4 = arith.constant 0 : index
    %2 = vector.load %arg2[%c0_2, %c0_3, %c0_4] : memref<9x16x64xf32, #tpu.memory_space<vmem>>, vector<1x16x64xf32>
    %3 = vector.shape_cast %2 : vector<1x16x64xf32> to vector<16x64xf32>
    %cst = arith.constant dense<0.000000e+00> : vector<8x64xf32>
    %4 = tpu.matmul %1, %3, %cst {dimension_numbers = #tpu.dot_dimension_numbers<[1], [0], [0], [1], [0, 0, 1, 1], [], []>} : vector<8x16xf32>, vector<16x64xf32>, vector<8x64xf32> -> vector<8x64xf32>
    %c1 = arith.constant 1 : index
    %c0_5 = arith.constant 0 : index
    %c0_6 = arith.constant 0 : index
    %5 = vector.load %arg2[%c1, %c0_5, %c0_6] : memref<9x16x64xf32, #tpu.memory_space<vmem>>, vector<1x16x64xf32>
    %6 = vector.shape_cast %5 : vector<1x16x64xf32> to vector<16x64xf32>
    %cst_7 = arith.constant dense<0.000000e+00> : vector<8x64xf32>
    %7 = tpu.matmul %1, %6, %cst_7 {dimension_numbers = #tpu.dot_dimension_numbers<[1], [0], [0], [1], [0, 0, 1, 1], [], []>} : vector<8x16xf32>, vector<16x64xf32>, vector<8x64xf32> -> vector<8x64xf32>
    %c2 = arith.constant 2 : index
    %c0_8 = arith.constant 0 : index
    %c0_9 = arith.constant 0 : index
    %8 = vector.load %arg2[%c2, %c0_8, %c0_9] : memref<9x16x64xf32, #tpu.memory_space<vmem>>, vector<1x16x64xf32>
    %9 = vector.shape_cast %8 : vector<1x16x64xf32> to vector<16x64xf32>
    %cst_10 = arith.constant dense<0.000000e+00> : vector<8x64xf32>
    %10 = tpu.matmul %1, %9, %cst_10 {dimension_numbers = #tpu.dot_dimension_numbers<[1], [0], [0], [1], [0, 0, 1, 1], [], []>} : vector<8x16xf32>, vector<16x64xf32>, vector<8x64xf32> -> vector<8x64xf32>
    %c3 = arith.constant 3 : index
    %c0_11 = arith.constant 0 : index
    %c0_12 = arith.constant 0 : index
    %11 = vector.load %arg2[%c3, %c0_11, %c0_12] : memref<9x16x64xf32, #tpu.memory_space<vmem>>, vector<1x16x64xf32>
    %12 = vector.shape_cast %11 : vector<1x16x64xf32> to vector<16x64xf32>
    %cst_13 = arith.constant dense<0.000000e+00> : vector<8x64xf32>
    %13 = tpu.matmul %1, %12, %cst_13 {dimension_numbers = #tpu.dot_dimension_numbers<[1], [0], [0], [1], [0, 0, 1, 1], [], []>} : vector<8x16xf32>, vector<16x64xf32>, vector<8x64xf32> -> vector<8x64xf32>
    %c4 = arith.constant 4 : index
    %c0_14 = arith.constant 0 : index
    %c0_15 = arith.constant 0 : index
    %14 = vector.load %arg2[%c4, %c0_14, %c0_15] : memref<9x16x64xf32, #tpu.memory_space<vmem>>, vector<1x16x64xf32>
    %15 = vector.shape_cast %14 : vector<1x16x64xf32> to vector<16x64xf32>
    %cst_16 = arith.constant dense<0.000000e+00> : vector<8x64xf32>
    %16 = tpu.matmul %1, %15, %cst_16 {dimension_numbers = #tpu.dot_dimension_numbers<[1], [0], [0], [1], [0, 0, 1, 1], [], []>} : vector<8x16xf32>, vector<16x64xf32>, vector<8x64xf32> -> vector<8x64xf32>
    %c5 = arith.constant 5 : index
    %c0_17 = arith.constant 0 : index
    %c0_18 = arith.constant 0 : index
    %17 = vector.load %arg2[%c5, %c0_17, %c0_18] : memref<9x16x64xf32, #tpu.memory_space<vmem>>, vector<1x16x64xf32>
    %18 = vector.shape_cast %17 : vector<1x16x64xf32> to vector<16x64xf32>
    %cst_19 = arith.constant dense<0.000000e+00> : vector<8x64xf32>
    %19 = tpu.matmul %1, %18, %cst_19 {dimension_numbers = #tpu.dot_dimension_numbers<[1], [0], [0], [1], [0, 0, 1, 1], [], []>} : vector<8x16xf32>, vector<16x64xf32>, vector<8x64xf32> -> vector<8x64xf32>
    %c6 = arith.constant 6 : index
    %c0_20 = arith.constant 0 : index
    %c0_21 = arith.constant 0 : index
    %20 = vector.load %arg2[%c6, %c0_20, %c0_21] : memref<9x16x64xf32, #tpu.memory_space<vmem>>, vector<1x16x64xf32>
    %21 = vector.shape_cast %20 : vector<1x16x64xf32> to vector<16x64xf32>
    %cst_22 = arith.constant dense<0.000000e+00> : vector<8x64xf32>
    %22 = tpu.matmul %1, %21, %cst_22 {dimension_numbers = #tpu.dot_dimension_numbers<[1], [0], [0], [1], [0, 0, 1, 1], [], []>} : vector<8x16xf32>, vector<16x64xf32>, vector<8x64xf32> -> vector<8x64xf32>
    %c7 = arith.constant 7 : index
    %c0_23 = arith.constant 0 : index
    %c0_24 = arith.constant 0 : index
    %23 = vector.load %arg2[%c7, %c0_23, %c0_24] : memref<9x16x64xf32, #tpu.memory_space<vmem>>, vector<1x16x64xf32>
    %24 = vector.shape_cast %23 : vector<1x16x64xf32> to vector<16x64xf32>
    %cst_25 = arith.constant dense<0.000000e+00> : vector<8x64xf32>
    %25 = tpu.matmul %1, %24, %cst_25 {dimension_numbers = #tpu.dot_dimension_numbers<[1], [0], [0], [1], [0, 0, 1, 1], [], []>} : vector<8x16xf32>, vector<16x64xf32>, vector<8x64xf32> -> vector<8x64xf32>
    %c8 = arith.constant 8 : index
    %c0_26 = arith.constant 0 : index
    %c0_27 = arith.constant 0 : index
    %26 = vector.load %arg2[%c8, %c0_26, %c0_27] : memref<9x16x64xf32, #tpu.memory_space<vmem>>, vector<1x16x64xf32>
    %27 = vector.shape_cast %26 : vector<1x16x64xf32> to vector<16x64xf32>
    %cst_28 = arith.constant dense<0.000000e+00> : vector<8x64xf32>
    %28 = tpu.matmul %1, %27, %cst_28 {dimension_numbers = #tpu.dot_dimension_numbers<[1], [0], [0], [1], [0, 0, 1, 1], [], []>} : vector<8x16xf32>, vector<16x64xf32>, vector<8x64xf32> -> vector<8x64xf32>
    %29 = tpu.concatenate %4, %7, %10, %13, %16, %19, %22, %25, %28 in 0 : vector<8x64xf32>, vector<8x64xf32>, vector<8x64xf32>, vector<8x64xf32>, vector<8x64xf32>, vector<8x64xf32>, vector<8x64xf32>, vector<8x64xf32>, vector<8x64xf32> -> vector<72x64xf32>
    %c0_29 = arith.constant 0 : index
    %c0_30 = arith.constant 0 : index
    %30 = vector.load %arg3[%c0_29, %c0_30] : memref<8x72xf32, #tpu.memory_space<vmem>>, vector<8x72xf32>
    %cst_31 = arith.constant dense<0.000000e+00> : vector<8x64xf32>
    %31 = tpu.matmul %30, %29, %cst_31 {dimension_numbers = #tpu.dot_dimension_numbers<[1], [0], [0], [1], [0, 0, 1, 1], [], []>} : vector<8x72xf32>, vector<72x64xf32>, vector<8x64xf32> -> vector<8x64xf32>
    %c0_32 = arith.constant 0 : index
    %c0_33 = arith.constant 0 : index
    %32 = vector.load %arg4[%c0_32, %c0_33] : memref<8x1xf32, #tpu.memory_space<vmem>>, vector<8x1xf32>
    %33 = vector.broadcast %32 : vector<8x1xf32> to vector<8x64xf32>
    %34 = arith.addf %31, %33 : vector<8x64xf32>
    %cst_34 = arith.constant 0.000000e+00 : f32
    %35 = vector.broadcast %cst_34 : f32 to vector<8x64xf32>
    %36 = arith.maximumf %34, %35 : vector<8x64xf32>
    %c0_35 = arith.constant 0 : index
    %c0_36 = arith.constant 0 : index
    %37 = vector.load %arg5[%c0_35, %c0_36] : memref<64x256xf32, #tpu.memory_space<vmem>>, vector<64x256xf32>
    %cst_37 = arith.constant dense<0.000000e+00> : vector<8x256xf32>
    %38 = tpu.matmul %36, %37, %cst_37 {dimension_numbers = #tpu.dot_dimension_numbers<[1], [0], [0], [1], [0, 0, 1, 1], [], []>} : vector<8x64xf32>, vector<64x256xf32>, vector<8x256xf32> -> vector<8x256xf32>
    %c17_i32 = arith.constant 17 : i32
    %39 = tpu.dynamic_rotate %38 by %c17_i32 dim 1 : vector<8x256xf32>, i32 -> vector<8x256xf32>
    %c0_38 = arith.constant 0 : index
    %c0_39 = arith.constant 0 : index
    %c0_40 = arith.constant 0 : index
    %40 = vector.load %arg6[%c0_38, %c0_39, %c0_40] : memref<9x1x256xf32, #tpu.memory_space<vmem>>, vector<1x1x256xf32>
    %41 = vector.shape_cast %40 : vector<1x1x256xf32> to vector<1x256xf32>
    %42 = vector.broadcast %41 : vector<1x256xf32> to vector<8x256xf32>
    %43 = arith.mulf %39, %42 : vector<8x256xf32>
    %c16_i32 = arith.constant 16 : i32
    %44 = tpu.dynamic_rotate %38 by %c16_i32 dim 1 : vector<8x256xf32>, i32 -> vector<8x256xf32>
    %c1_41 = arith.constant 1 : index
    %c0_42 = arith.constant 0 : index
    %c0_43 = arith.constant 0 : index
    %45 = vector.load %arg6[%c1_41, %c0_42, %c0_43] : memref<9x1x256xf32, #tpu.memory_space<vmem>>, vector<1x1x256xf32>
    %46 = vector.shape_cast %45 : vector<1x1x256xf32> to vector<1x256xf32>
    %47 = vector.broadcast %46 : vector<1x256xf32> to vector<8x256xf32>
    %48 = arith.mulf %44, %47 : vector<8x256xf32>
    %c15_i32 = arith.constant 15 : i32
    %49 = tpu.dynamic_rotate %38 by %c15_i32 dim 1 : vector<8x256xf32>, i32 -> vector<8x256xf32>
    %c2_44 = arith.constant 2 : index
    %c0_45 = arith.constant 0 : index
    %c0_46 = arith.constant 0 : index
    %50 = vector.load %arg6[%c2_44, %c0_45, %c0_46] : memref<9x1x256xf32, #tpu.memory_space<vmem>>, vector<1x1x256xf32>
    %51 = vector.shape_cast %50 : vector<1x1x256xf32> to vector<1x256xf32>
    %52 = vector.broadcast %51 : vector<1x256xf32> to vector<8x256xf32>
    %53 = arith.mulf %49, %52 : vector<8x256xf32>
    %c1_i32 = arith.constant 1 : i32
    %54 = tpu.dynamic_rotate %38 by %c1_i32 dim 1 : vector<8x256xf32>, i32 -> vector<8x256xf32>
    %c3_47 = arith.constant 3 : index
    %c0_48 = arith.constant 0 : index
    %c0_49 = arith.constant 0 : index
    %55 = vector.load %arg6[%c3_47, %c0_48, %c0_49] : memref<9x1x256xf32, #tpu.memory_space<vmem>>, vector<1x1x256xf32>
    %56 = vector.shape_cast %55 : vector<1x1x256xf32> to vector<1x256xf32>
    %57 = vector.broadcast %56 : vector<1x256xf32> to vector<8x256xf32>
    %58 = arith.mulf %54, %57 : vector<8x256xf32>
    %c255_i32 = arith.constant 255 : i32
    %59 = tpu.dynamic_rotate %38 by %c255_i32 dim 1 : vector<8x256xf32>, i32 -> vector<8x256xf32>
    %c5_50 = arith.constant 5 : index
    %c0_51 = arith.constant 0 : index
    %c0_52 = arith.constant 0 : index
    %60 = vector.load %arg6[%c5_50, %c0_51, %c0_52] : memref<9x1x256xf32, #tpu.memory_space<vmem>>, vector<1x1x256xf32>
    %61 = vector.shape_cast %60 : vector<1x1x256xf32> to vector<1x256xf32>
    %62 = vector.broadcast %61 : vector<1x256xf32> to vector<8x256xf32>
    %63 = arith.mulf %59, %62 : vector<8x256xf32>
    %c241_i32 = arith.constant 241 : i32
    %64 = tpu.dynamic_rotate %38 by %c241_i32 dim 1 : vector<8x256xf32>, i32 -> vector<8x256xf32>
    %c6_53 = arith.constant 6 : index
    %c0_54 = arith.constant 0 : index
    %c0_55 = arith.constant 0 : index
    %65 = vector.load %arg6[%c6_53, %c0_54, %c0_55] : memref<9x1x256xf32, #tpu.memory_space<vmem>>, vector<1x1x256xf32>
    %66 = vector.shape_cast %65 : vector<1x1x256xf32> to vector<1x256xf32>
    %67 = vector.broadcast %66 : vector<1x256xf32> to vector<8x256xf32>
    %68 = arith.mulf %64, %67 : vector<8x256xf32>
    %c240_i32 = arith.constant 240 : i32
    %69 = tpu.dynamic_rotate %38 by %c240_i32 dim 1 : vector<8x256xf32>, i32 -> vector<8x256xf32>
    %c7_56 = arith.constant 7 : index
    %c0_57 = arith.constant 0 : index
    %c0_58 = arith.constant 0 : index
    %70 = vector.load %arg6[%c7_56, %c0_57, %c0_58] : memref<9x1x256xf32, #tpu.memory_space<vmem>>, vector<1x1x256xf32>
    %71 = vector.shape_cast %70 : vector<1x1x256xf32> to vector<1x256xf32>
    %72 = vector.broadcast %71 : vector<1x256xf32> to vector<8x256xf32>
    %73 = arith.mulf %69, %72 : vector<8x256xf32>
    %c239_i32 = arith.constant 239 : i32
    %74 = tpu.dynamic_rotate %38 by %c239_i32 dim 1 : vector<8x256xf32>, i32 -> vector<8x256xf32>
    %c8_59 = arith.constant 8 : index
    %c0_60 = arith.constant 0 : index
    %c0_61 = arith.constant 0 : index
    %75 = vector.load %arg6[%c8_59, %c0_60, %c0_61] : memref<9x1x256xf32, #tpu.memory_space<vmem>>, vector<1x1x256xf32>
    %76 = vector.shape_cast %75 : vector<1x1x256xf32> to vector<1x256xf32>
    %77 = vector.broadcast %76 : vector<1x256xf32> to vector<8x256xf32>
    %78 = arith.mulf %74, %77 : vector<8x256xf32>
    %79 = tpu.concatenate %43, %48, %53, %58, %38, %63, %68, %73, %78 in 0 : vector<8x256xf32>, vector<8x256xf32>, vector<8x256xf32>, vector<8x256xf32>, vector<8x256xf32>, vector<8x256xf32>, vector<8x256xf32>, vector<8x256xf32>, vector<8x256xf32> -> vector<72x256xf32>
    %c0_62 = arith.constant 0 : index
    %c0_63 = arith.constant 0 : index
    %80 = vector.load %arg7[%c0_62, %c0_63] : memref<8x72xf32, #tpu.memory_space<vmem>>, vector<8x72xf32>
    %cst_64 = arith.constant dense<0.000000e+00> : vector<8x256xf32>
    %81 = tpu.matmul %80, %79, %cst_64 {dimension_numbers = #tpu.dot_dimension_numbers<[1], [0], [0], [1], [0, 0, 1, 1], [], []>} : vector<8x72xf32>, vector<72x256xf32>, vector<8x256xf32> -> vector<8x256xf32>
    %c0_65 = arith.constant 0 : index
    %c0_66 = arith.constant 0 : index
    %82 = vector.load %arg8[%c0_65, %c0_66] : memref<8x1xf32, #tpu.memory_space<vmem>>, vector<8x1xf32>
    %83 = vector.broadcast %82 : vector<8x1xf32> to vector<8x256xf32>
    %84 = arith.addf %81, %83 : vector<8x256xf32>
    %cst_67 = arith.constant 0.000000e+00 : f32
    %85 = vector.broadcast %cst_67 : f32 to vector<8x256xf32>
    %86 = arith.maximumf %84, %85 : vector<8x256xf32>
    %c0_68 = arith.constant 0 : index
    %c0_69 = arith.constant 0 : index
    %87 = vector.load %arg9[%c0_68, %c0_69] : memref<256x1024xf32, #tpu.memory_space<vmem>>, vector<256x1024xf32>
    %cst_70 = arith.constant dense<0.000000e+00> : vector<8x1024xf32>
    %88 = tpu.matmul %86, %87, %cst_70 {dimension_numbers = #tpu.dot_dimension_numbers<[1], [0], [0], [1], [0, 0, 1, 1], [], []>} : vector<8x256xf32>, vector<256x1024xf32>, vector<8x1024xf32> -> vector<8x1024xf32>
    %c33_i32 = arith.constant 33 : i32
    %89 = tpu.dynamic_rotate %88 by %c33_i32 dim 1 : vector<8x1024xf32>, i32 -> vector<8x1024xf32>
    %c0_71 = arith.constant 0 : index
    %c0_72 = arith.constant 0 : index
    %c0_73 = arith.constant 0 : index
    %90 = vector.load %arg10[%c0_71, %c0_72, %c0_73] : memref<9x1x1024xf32, #tpu.memory_space<vmem>>, vector<1x1x1024xf32>
    %91 = vector.shape_cast %90 : vector<1x1x1024xf32> to vector<1x1024xf32>
    %92 = vector.broadcast %91 : vector<1x1024xf32> to vector<8x1024xf32>
    %93 = arith.mulf %89, %92 : vector<8x1024xf32>
    %c32_i32 = arith.constant 32 : i32
    %94 = tpu.dynamic_rotate %88 by %c32_i32 dim 1 : vector<8x1024xf32>, i32 -> vector<8x1024xf32>
    %c1_74 = arith.constant 1 : index
    %c0_75 = arith.constant 0 : index
    %c0_76 = arith.constant 0 : index
    %95 = vector.load %arg10[%c1_74, %c0_75, %c0_76] : memref<9x1x1024xf32, #tpu.memory_space<vmem>>, vector<1x1x1024xf32>
    %96 = vector.shape_cast %95 : vector<1x1x1024xf32> to vector<1x1024xf32>
    %97 = vector.broadcast %96 : vector<1x1024xf32> to vector<8x1024xf32>
    %98 = arith.mulf %94, %97 : vector<8x1024xf32>
    %c31_i32 = arith.constant 31 : i32
    %99 = tpu.dynamic_rotate %88 by %c31_i32 dim 1 : vector<8x1024xf32>, i32 -> vector<8x1024xf32>
    %c2_77 = arith.constant 2 : index
    %c0_78 = arith.constant 0 : index
    %c0_79 = arith.constant 0 : index
    %100 = vector.load %arg10[%c2_77, %c0_78, %c0_79] : memref<9x1x1024xf32, #tpu.memory_space<vmem>>, vector<1x1x1024xf32>
    %101 = vector.shape_cast %100 : vector<1x1x1024xf32> to vector<1x1024xf32>
    %102 = vector.broadcast %101 : vector<1x1024xf32> to vector<8x1024xf32>
    %103 = arith.mulf %99, %102 : vector<8x1024xf32>
    %c1_i32_80 = arith.constant 1 : i32
    %104 = tpu.dynamic_rotate %88 by %c1_i32_80 dim 1 : vector<8x1024xf32>, i32 -> vector<8x1024xf32>
    %c3_81 = arith.constant 3 : index
    %c0_82 = arith.constant 0 : index
    %c0_83 = arith.constant 0 : index
    %105 = vector.load %arg10[%c3_81, %c0_82, %c0_83] : memref<9x1x1024xf32, #tpu.memory_space<vmem>>, vector<1x1x1024xf32>
    %106 = vector.shape_cast %105 : vector<1x1x1024xf32> to vector<1x1024xf32>
    %107 = vector.broadcast %106 : vector<1x1024xf32> to vector<8x1024xf32>
    %108 = arith.mulf %104, %107 : vector<8x1024xf32>
    %c1023_i32 = arith.constant 1023 : i32
    %109 = tpu.dynamic_rotate %88 by %c1023_i32 dim 1 : vector<8x1024xf32>, i32 -> vector<8x1024xf32>
    %c5_84 = arith.constant 5 : index
    %c0_85 = arith.constant 0 : index
    %c0_86 = arith.constant 0 : index
    %110 = vector.load %arg10[%c5_84, %c0_85, %c0_86] : memref<9x1x1024xf32, #tpu.memory_space<vmem>>, vector<1x1x1024xf32>
    %111 = vector.shape_cast %110 : vector<1x1x1024xf32> to vector<1x1024xf32>
    %112 = vector.broadcast %111 : vector<1x1024xf32> to vector<8x1024xf32>
    %113 = arith.mulf %109, %112 : vector<8x1024xf32>
    %c993_i32 = arith.constant 993 : i32
    %114 = tpu.dynamic_rotate %88 by %c993_i32 dim 1 : vector<8x1024xf32>, i32 -> vector<8x1024xf32>
    %c6_87 = arith.constant 6 : index
    %c0_88 = arith.constant 0 : index
    %c0_89 = arith.constant 0 : index
    %115 = vector.load %arg10[%c6_87, %c0_88, %c0_89] : memref<9x1x1024xf32, #tpu.memory_space<vmem>>, vector<1x1x1024xf32>
    %116 = vector.shape_cast %115 : vector<1x1x1024xf32> to vector<1x1024xf32>
    %117 = vector.broadcast %116 : vector<1x1024xf32> to vector<8x1024xf32>
    %118 = arith.mulf %114, %117 : vector<8x1024xf32>
    %c992_i32 = arith.constant 992 : i32
    %119 = tpu.dynamic_rotate %88 by %c992_i32 dim 1 : vector<8x1024xf32>, i32 -> vector<8x1024xf32>
    %c7_90 = arith.constant 7 : index
    %c0_91 = arith.constant 0 : index
    %c0_92 = arith.constant 0 : index
    %120 = vector.load %arg10[%c7_90, %c0_91, %c0_92] : memref<9x1x1024xf32, #tpu.memory_space<vmem>>, vector<1x1x1024xf32>
    %121 = vector.shape_cast %120 : vector<1x1x1024xf32> to vector<1x1024xf32>
    %122 = vector.broadcast %121 : vector<1x1024xf32> to vector<8x1024xf32>
    %123 = arith.mulf %119, %122 : vector<8x1024xf32>
    %c991_i32 = arith.constant 991 : i32
    %124 = tpu.dynamic_rotate %88 by %c991_i32 dim 1 : vector<8x1024xf32>, i32 -> vector<8x1024xf32>
    %c8_93 = arith.constant 8 : index
    %c0_94 = arith.constant 0 : index
    %c0_95 = arith.constant 0 : index
    %125 = vector.load %arg10[%c8_93, %c0_94, %c0_95] : memref<9x1x1024xf32, #tpu.memory_space<vmem>>, vector<1x1x1024xf32>
    %126 = vector.shape_cast %125 : vector<1x1x1024xf32> to vector<1x1024xf32>
    %127 = vector.broadcast %126 : vector<1x1024xf32> to vector<8x1024xf32>
    %128 = arith.mulf %124, %127 : vector<8x1024xf32>
    %129 = tpu.concatenate %93, %98, %103, %108, %88, %113, %118, %123, %128 in 0 : vector<8x1024xf32>, vector<8x1024xf32>, vector<8x1024xf32>, vector<8x1024xf32>, vector<8x1024xf32>, vector<8x1024xf32>, vector<8x1024xf32>, vector<8x1024xf32>, vector<8x1024xf32> -> vector<72x1024xf32>
    %c0_96 = arith.constant 0 : index
    %c0_97 = arith.constant 0 : index
    %130 = vector.load %arg11[%c0_96, %c0_97] : memref<3x72xf32, #tpu.memory_space<vmem>>, vector<3x72xf32>
    %cst_98 = arith.constant dense<0.000000e+00> : vector<3x1024xf32>
    %131 = tpu.matmul %130, %129, %cst_98 {dimension_numbers = #tpu.dot_dimension_numbers<[1], [0], [0], [1], [0, 0, 1, 1], [], []>} : vector<3x72xf32>, vector<72x1024xf32>, vector<3x1024xf32> -> vector<3x1024xf32>
    %c0_99 = arith.constant 0 : index
    %c0_100 = arith.constant 0 : index
    %132 = vector.load %arg12[%c0_99, %c0_100] : memref<3x1xf32, #tpu.memory_space<vmem>>, vector<3x1xf32>
    %133 = vector.broadcast %132 : vector<3x1xf32> to vector<3x1024xf32>
    %134 = arith.addf %131, %133 : vector<3x1024xf32>
    %cst_101 = arith.constant 0.000000e+00 : f32
    %135 = vector.broadcast %cst_101 : f32 to vector<3x1024xf32>
    %136 = arith.subf %135, %134 : vector<3x1024xf32>
    %137 = math.exp %136 : vector<3x1024xf32>
    %cst_102 = arith.constant 1.000000e+00 : f32
    %138 = vector.broadcast %cst_102 : f32 to vector<3x1024xf32>
    %139 = arith.addf %138, %137 : vector<3x1024xf32>
    %140 = tpu.reciprocal %139 {approx = true} : vector<3x1024xf32> -> vector<3x1024xf32>
    %c0_103 = arith.constant 0 : index
    %c0_104 = arith.constant 0 : index
    %c0_105 = arith.constant 0 : index
    %141 = vector.load %arg13[%c0_103, %c0_104, %c0_105] : memref<1x3x1024xf32, #tpu.memory_space<vmem>>, vector<1x3x1024xf32>
    %142 = vector.shape_cast %141 : vector<1x3x1024xf32> to vector<3x1024xf32>
    %143 = vector.shape_cast %140 : vector<3x1024xf32> to vector<1x3x1024xf32>
    tpu.vector_store %arg13[%c0_103, %c0_104, %c0_105], %143 {strides = array<i32>} : memref<1x3x1024xf32, #tpu.memory_space<vmem>>, vector<1x3x1024xf32>,
    return
  }
  func.func @transform_0(%arg0: i32) -> (i32, i32, i32) {
    %c0_i32 = arith.constant 0 : i32
    %c0_i32_0 = arith.constant 0 : i32
    %c0_i32_1 = arith.constant 0 : i32
    return %arg0, %c0_i32, %c0_i32_0 : i32, i32, i32
  }
  func.func @transform_1(%arg0: i32) -> (i32, i32, i32) {
    %c0_i32 = arith.constant 0 : i32
    %c0_i32_0 = arith.constant 0 : i32
    %c0_i32_1 = arith.constant 0 : i32
    %c0_i32_2 = arith.constant 0 : i32
    return %c0_i32, %c0_i32_0, %c0_i32_1 : i32, i32, i32
  }
  func.func @transform_2(%arg0: i32) -> (i32, i32) {
    %c0_i32 = arith.constant 0 : i32
    %c0_i32_0 = arith.constant 0 : i32
    %c0_i32_1 = arith.constant 0 : i32
    return %c0_i32, %c0_i32_0 : i32, i32
  }
  func.func @transform_3(%arg0: i32) -> (i32, i32) {
    %c0_i32 = arith.constant 0 : i32
    %c0_i32_0 = arith.constant 0 : i32
    %c0_i32_1 = arith.constant 0 : i32
    return %c0_i32, %c0_i32_0 : i32, i32
  }
  func.func @transform_4(%arg0: i32) -> (i32, i32) {
    %c0_i32 = arith.constant 0 : i32
    %c0_i32_0 = arith.constant 0 : i32
    %c0_i32_1 = arith.constant 0 : i32
    return %c0_i32, %c0_i32_0 : i32, i32
  }
  func.func @transform_5(%arg0: i32) -> (i32, i32, i32) {
    %c0_i32 = arith.constant 0 : i32
    %c0_i32_0 = arith.constant 0 : i32
    %c0_i32_1 = arith.constant 0 : i32
    %c0_i32_2 = arith.constant 0 : i32
    return %c0_i32, %c0_i32_0, %c0_i32_1 : i32, i32, i32
  }
  func.func @transform_6(%arg0: i32) -> (i32, i32) {
    %c0_i32 = arith.constant 0 : i32
    %c0_i32_0 = arith.constant 0 : i32
    %c0_i32_1 = arith.constant 0 : i32
    return %c0_i32, %c0_i32_0 : i32, i32
  }
  func.func @transform_7(%arg0: i32) -> (i32, i32) {
    %c0_i32 = arith.constant 0 : i32
    %c0_i32_0 = arith.constant 0 : i32
    %c0_i32_1 = arith.constant 0 : i32
    return %c0_i32, %c0_i32_0 : i32, i32
  }
  func.func @transform_8(%arg0: i32) -> (i32, i32) {
    %c0_i32 = arith.constant 0 : i32
    %c0_i32_0 = arith.constant 0 : i32
    %c0_i32_1 = arith.constant 0 : i32
    return %c0_i32, %c0_i32_0 : i32, i32
  }
  func.func @transform_9(%arg0: i32) -> (i32, i32, i32) {
    %c0_i32 = arith.constant 0 : i32
    %c0_i32_0 = arith.constant 0 : i32
    %c0_i32_1 = arith.constant 0 : i32
    %c0_i32_2 = arith.constant 0 : i32
    return %c0_i32, %c0_i32_0, %c0_i32_1 : i32, i32, i32
  }
  func.func @transform_10(%arg0: i32) -> (i32, i32) {
    %c0_i32 = arith.constant 0 : i32
    %c0_i32_0 = arith.constant 0 : i32
    %c0_i32_1 = arith.constant 0 : i32
    return %c0_i32, %c0_i32_0 : i32, i32
  }
  func.func @transform_11(%arg0: i32) -> (i32, i32) {
    %c0_i32 = arith.constant 0 : i32
    %c0_i32_0 = arith.constant 0 : i32
    %c0_i32_1 = arith.constant 0 : i32
    return %c0_i32, %c0_i32_0 : i32, i32
  }
  func.func @transform_12(%arg0: i32) -> (i32, i32, i32) {
    %c0_i32 = arith.constant 0 : i32
    %c0_i32_0 = arith.constant 0 : i32
    %c0_i32_1 = arith.constant 0 : i32
    return %arg0, %c0_i32, %c0_i32_0 : i32, i32, i32
  }
}

</mosaic_0001>

<bundles_post_ra>
// kernel: forward.2
= control target key start
LH: loop header
LB: loop body
LE: loop exit
PB: predicated region body
PF: predicated region fallthrough
CT: control target
= control target key end

     0   :  { %14 = vsyncpa [#allocation3], 0  ;;  %s847_s0 = inlined_call_operand.hbm [shape: f32[2,16], index: 0, kind: input, shape index: {}]   ;;  %s848_s1 = inlined_call_operand.hbm [shape: f32[16,32], index: 1, kind: input, shape index: {}]   ;;  %s849_s2 = inlined_call_operand.hbm [shape: f32[1,32], index: 2, kind: input, shape index: {}]   ;;  %s850_s3 = inlined_call_operand.hbm [shape: f32[1,32], index: 3, kind: input, shape index: {}]   ;;  %s851_s4 = inlined_call_operand.hbm [shape: f32[1,32], index: 4, kind: input, shape index: {}]   ;;  %s852_s5 = inlined_call_operand.hbm [shape: f32[32,128], index: 5, kind: input, shape index: {}]   ;;  %s853_s6 = inlined_call_operand.hbm [shape: f32[1,128], index: 6, kind: input, shape index: {}]   ;;  %s854_s7 = inlined_call_operand.hbm [shape: f32[1,128], index: 7, kind: input, shape index: {}]   ;;  %s855_s8 = inlined_call_operand.hbm [shape: f32[1,128], index: 8, kind: input, shape index: {}]   ;;  %s856_s9 = inlined_call_operand.vmem [shape: f32[2,128], index: 9, kind: output, shape index: {}]  }
   0x1   :  { %15 = vsyncpa [#allocation5], 0 }
   0x2   :  { %16 = vsyncpa [#allocation8], 0 }
   0x3   :  { %17 = vsyncpa [#allocation11], 0 }
   0x4   :  { %18 = vsyncpa [#allocation14], 0  ;;  %s666_s30 = smov [#allocation4]   ;;  %s458_s13 = scalar_lea.hbm %s848_s1, 256 }
   0x5   :  { %s34_s10 = sshll.u32 %s666_s30, 4  ;;  %p459_p0 = scmp.ne.s32.totalorder %s848_s1, %s458_s13  ;;  %s35_s10 = int_to_ptr.vmem [resolvable:$true] %s34_s10 }
   0x6   :  { %p462_p1 = scmp.lt.u32.totalorder %s458_s13, %s848_s1 }
   0x8   :  { %p464_p2 = pnand %p462_p1, %p459_p0 }
   0xa   :  { %467 = shalt.err (!%p464_p2)
}
   0xb   :  { %s468_s18 = scalar_lea.vmem %s35_s10, 256  ;;  %p473_p4 = scmp.lt.s32.totalorder %s35_s10, %s35_s10 }
   0xc   :  { %p469_p3 = scmp.ne.s32.totalorder %s35_s10, %s468_s18  ;;  %p474_p5 = scmp.lt.s32.totalorder %s468_s18, %s468_s18 }
   0xe   :  { %p475_p6 = por %p474_p5, %p473_p4 }
  0x10   :  { %p476_p7 = pnand %p475_p6, %p469_p3 }
  0x12   :  { %479 = shalt.err (!%p476_p7)
}
  0x13   :  { %s667_s19 = smov 128   ;;  %s668_s20 = smov 8  }
  0x14   :  { %40 = dma.hbm_to_vmem [thread:$0]  %s848_s1, 256, %s35_s10, [#allocation5], %s667_s19, %s667_s19, %s668_s20  }
  0x15   :  { %s669_s23 = smov [#allocation7]   ;;  %s670_s25 = smov [#allocation10]  }
  0x16   :  { %s57_s24 = sshll.u32 %s669_s23, 4  ;;  %s76_s26 = sshll.u32 %s670_s25, 4  ;;  %s58_s24 = int_to_ptr.vmem [resolvable:$true] %s57_s24  ;;  %s77_s26 = int_to_ptr.vmem [resolvable:$true] %s76_s26 }
  0x17   :  { %s480_s29 = scalar_lea.hbm %s850_s3, 16 }
  0x18   :  { %p481_p8 = scmp.ne.s32.totalorder %s850_s3, %s480_s29  ;;  %p484_p9 = scmp.lt.u32.totalorder %s480_s29, %s850_s3 }
  0x1a   :  { %p486_p10 = pnand %p484_p9, %p481_p8 }
  0x1c   :  { %489 = shalt.err (!%p486_p10)
}
  0x1d   :  { %s490_s1 = scalar_lea.vmem %s58_s24, 16  ;;  %s494_s10 = scalar_lea.vmem %s58_s24, 32 }
  0x1e   :  { %p491_p11 = scmp.ne.s32.totalorder %s58_s24, %s490_s1  ;;  %p495_p12 = scmp.lt.s32.totalorder %s58_s24, %s58_s24 }
  0x1f   :  { %p496_p13 = scmp.lt.s32.totalorder %s494_s10, %s490_s1 }
  0x21   :  { %p497_p0 = por %p496_p13, %p495_p12 }
  0x23   :  { %p498_p1 = pnand %p497_p0, %p491_p11 }
  0x25   :  { %501 = shalt.err (!%p498_p1)
}
  0x26   :  { %60 = dma.hbm_to_vmem [thread:$0]  %s850_s3, 16, %s58_s24, [#allocation8]  }
  0x27   :  { %s502_s18 = scalar_lea.hbm %s852_s5, 512 }
  0x28   :  { %p503_p2 = scmp.ne.s32.totalorder %s852_s5, %s502_s18  ;;  %p506_p3 = scmp.lt.u32.totalorder %s502_s18, %s852_s5 }
  0x2a   :  { %p508_p4 = pnand %p506_p3, %p503_p2 }
  0x2c   :  { %511 = shalt.err (!%p508_p4)
}
  0x2d   :  { %s512_s27 = scalar_lea.vmem %s77_s26, 512  ;;  %p517_p6 = scmp.lt.s32.totalorder %s77_s26, %s77_s26 }
  0x2e   :  { %p513_p5 = scmp.ne.s32.totalorder %s77_s26, %s512_s27  ;;  %p518_p7 = scmp.lt.s32.totalorder %s512_s27, %s512_s27 }
  0x30   :  { %p519_p8 = por %p518_p7, %p517_p6 }
  0x32   :  { %p520_p9 = pnand %p519_p8, %p513_p5 }
  0x34   :  { %523 = shalt.err (!%p520_p9)
}
  0x35   :  { %82 = dma.hbm_to_vmem [thread:$0]  %s852_s5, 512, %s77_s26, [#allocation11], %s667_s19, %s667_s19, %s668_s20  }
  0x36   :  { %s671_s28 = smov [#allocation13]   ;;  %s672_s30 = smov [#allocation2]  }
  0x37   :  { %s99_s29 = sshll.u32 %s671_s28, 4  ;;  %s25_s11 = sshll.u32 %s672_s30, 4  ;;  %s100_s29 = int_to_ptr.vmem [resolvable:$true] %s99_s29  ;;  %s26_s11 = int_to_ptr.vmem [resolvable:$true] %s25_s11 }
  0x38   :  { %s524_s1 = scalar_lea.hbm %s854_s7, 16 }
  0x39   :  { %p525_p10 = scmp.ne.s32.totalorder %s854_s7, %s524_s1  ;;  %p528_p11 = scmp.lt.u32.totalorder %s524_s1, %s854_s7 }
  0x3b   :  { %p530_p12 = pnand %p528_p11, %p525_p10 }
  0x3d   :  { %533 = shalt.err (!%p530_p12)
}
  0x3e   :  { %s534_s5 = scalar_lea.vmem %s100_s29, 16  ;;  %s538_s19 = scalar_lea.vmem %s100_s29, 32 }
  0x3f   :  { %p535_p13 = scmp.ne.s32.totalorder %s100_s29, %s534_s5  ;;  %p539_p0 = scmp.lt.s32.totalorder %s100_s29, %s100_s29 }
  0x40   :  { %p540_p1 = scmp.lt.s32.totalorder %s538_s19, %s534_s5 }
  0x42   :  { %p541_p2 = por %p540_p1, %p539_p0 }
  0x44   :  { %p542_p3 = pnand %p541_p2, %p535_p13 }
  0x46   :  { %545 = shalt.err (!%p542_p3)
}
  0x47   :  { %102 = dma.hbm_to_vmem [thread:$0]  %s854_s7, 16, %s100_s29, [#allocation14]  }
  0x48   :  { %s546_s21 = scalar_lea.hbm %s847_s0, 32 }
  0x49   :  { %p547_p4 = scmp.ne.s32.totalorder %s847_s0, %s546_s21  ;;  %p550_p5 = scmp.lt.u32.totalorder %s546_s21, %s847_s0 }
  0x4b   :  { %p552_p6 = pnand %p550_p5, %p547_p4 }
  0x4d   :  { %555 = shalt.err (!%p552_p6)
}
  0x4e   :  { %s556_s3 = scalar_lea.vmem %s26_s11, 32  ;;  %p561_p8 = scmp.lt.s32.totalorder %s26_s11, %s26_s11 }
  0x4f   :  { %p557_p7 = scmp.ne.s32.totalorder %s26_s11, %s556_s3  ;;  %p562_p9 = scmp.lt.s32.totalorder %s556_s3, %s556_s3 }
  0x51   :  { %p563_p10 = por %p562_p9, %p561_p8 }
  0x53   :  { %p564_p11 = pnand %p563_p10, %p557_p7 }
  0x55   :  { %567 = shalt.err (!%p564_p11)
}
  0x56   :  { %28 = dma.hbm_to_vmem [thread:$0]  %s847_s0, 32, %s26_s11, [#allocation3]  }
  0x57   :  { %s673_s28 = smov [#allocation6]   ;;  %s674_s30 = smov [#allocation9]  }
  0x58   :  { %s47_s29 = sshll.u32 %s673_s28, 4  ;;  %s67_s12 = sshll.u32 %s674_s30, 4  ;;  %s48_s29 = int_to_ptr.vmem [resolvable:$true] %s47_s29  ;;  %s68_s12 = int_to_ptr.vmem [resolvable:$true] %s67_s12 }
  0x59   :  { %s568_s10 = scalar_lea.hbm %s849_s2, 16 }
  0x5a   :  { %p569_p12 = scmp.ne.s32.totalorder %s849_s2, %s568_s10  ;;  %p572_p13 = scmp.lt.u32.totalorder %s568_s10, %s849_s2 }
  0x5c   :  { %p574_p0 = pnand %p572_p13, %p569_p12 }
  0x5e   :  { %577 = shalt.err (!%p574_p0)
}
  0x5f   :  { %s578_s0 = scalar_lea.vmem %s48_s29, 16  ;;  %s582_s11 = scalar_lea.vmem %s48_s29, 32 }
  0x60   :  { %p579_p1 = scmp.ne.s32.totalorder %s48_s29, %s578_s0  ;;  %p583_p2 = scmp.lt.s32.totalorder %s48_s29, %s48_s29 }
  0x61   :  { %p584_p3 = scmp.lt.s32.totalorder %s582_s11, %s578_s0 }
  0x63   :  { %p585_p4 = por %p584_p3, %p583_p2 }
  0x65   :  { %p586_p5 = pnand %p585_p4, %p579_p1 }
  0x67   :  { %589 = shalt.err (!%p586_p5)
}
  0x68   :  { %50 = dma.hbm_to_vmem [thread:$0]  %s849_s2, 16, %s48_s29, [#allocation5]  }
  0x69   :  { %s590_s18 = scalar_lea.hbm %s851_s4, 16 }
  0x6a   :  { %p591_p6 = scmp.ne.s32.totalorder %s851_s4, %s590_s18  ;;  %p594_p7 = scmp.lt.u32.totalorder %s590_s18, %s851_s4 }
  0x6c   :  { %p596_p8 = pnand %p594_p7, %p591_p6 }
  0x6e   :  { %599 = shalt.err (!%p596_p8)
}
  0x6f   :  { %s600_s27 = scalar_lea.vmem %s68_s12, 16  ;;  %s604_s3 = scalar_lea.vmem %s68_s12, 32 }
  0x70   :  { %p601_p9 = scmp.ne.s32.totalorder %s68_s12, %s600_s27  ;;  %p605_p10 = scmp.lt.s32.totalorder %s68_s12, %s68_s12 }
  0x71   :  { %p606_p11 = scmp.lt.s32.totalorder %s604_s3, %s600_s27 }
  0x73   :  { %p607_p12 = por %p606_p11, %p605_p10 }
  0x75   :  { %p608_p13 = pnand %p607_p12, %p601_p9 }
  0x77   :  { %611 = shalt.err (!%p608_p13)
}
  0x78   :  { %70 = dma.hbm_to_vmem [thread:$0]  %s851_s4, 16, %s68_s12, [#allocation8]  }
  0x79   :  { %s675_s24 = smov [#allocation12]   ;;  %s676_s29 = smov [#allocation15]  }
  0x7a   :  { %s89_s28 = sshll.u32 %s675_s24, 4  ;;  %s109_s30 = sshll.u32 %s676_s29, 4  ;;  %s90_s28 = int_to_ptr.vmem [resolvable:$true] %s89_s28  ;;  %s110_s30 = int_to_ptr.vmem [resolvable:$true] %s109_s30 }
  0x7b   :  { %s612_s10 = scalar_lea.hbm %s853_s6, 16 }
  0x7c   :  { %p613_p0 = scmp.ne.s32.totalorder %s853_s6, %s612_s10  ;;  %p616_p1 = scmp.lt.u32.totalorder %s612_s10, %s853_s6 }
  0x7e   :  { %p618_p2 = pnand %p616_p1, %p613_p0 }
  0x80   :  { %621 = shalt.err (!%p618_p2)
}
  0x81   :  { %s622_s4 = scalar_lea.vmem %s90_s28, 16  ;;  %s626_s12 = scalar_lea.vmem %s90_s28, 32 }
  0x82   :  { %p623_p3 = scmp.ne.s32.totalorder %s90_s28, %s622_s4  ;;  %p627_p4 = scmp.lt.s32.totalorder %s90_s28, %s90_s28 }
  0x83   :  { %p628_p5 = scmp.lt.s32.totalorder %s626_s12, %s622_s4 }
  0x85   :  { %p629_p6 = por %p628_p5, %p627_p4 }
  0x87   :  { %p630_p7 = pnand %p629_p6, %p623_p3 }
  0x89   :  { %633 = shalt.err (!%p630_p7)
}
  0x8a   :  { %92 = dma.hbm_to_vmem [thread:$0]  %s853_s6, 16, %s90_s28, [#allocation11]  }
  0x8b   :  { %s634_s26 = scalar_lea.hbm %s855_s8, 16 }
  0x8c   :  { %p635_p8 = scmp.ne.s32.totalorder %s855_s8, %s634_s26  ;;  %p638_p9 = scmp.lt.u32.totalorder %s634_s26, %s855_s8 }
  0x8e   :  { %p640_p10 = pnand %p638_p9, %p635_p8 }
  0x90   :  { %643 = shalt.err (!%p640_p10)
}
  0x91   :  { %s644_s23 = scalar_lea.vmem %s110_s30, 16  ;;  %s648_s25 = scalar_lea.vmem %s110_s30, 32 }
  0x92   :  { %p645_p11 = scmp.ne.s32.totalorder %s110_s30, %s644_s23  ;;  %p649_p12 = scmp.lt.s32.totalorder %s110_s30, %s110_s30 }
  0x93   :  { %p650_p13 = scmp.lt.s32.totalorder %s648_s25, %s644_s23 }
  0x95   :  { %p651_p0 = por %p650_p13, %p649_p12 }
  0x97   :  { %p652_p1 = pnand %p651_p0, %p645_p11 }
  0x99   :  { %655 = shalt.err (!%p652_p1)
}
  0x9a   :  { %112 = dma.hbm_to_vmem [thread:$0]  %s855_s8, 16, %s110_s30, [#allocation14]  }
  0x9b   :  { %656 = dma.done.wait [#allocation3], 32  }
  0x9c   :  { %657 = vsyncadd [#allocation3], 4294967264 }
  0x9d   :  { %658 = dma.done.wait [#allocation5], 272  }
  0x9e   :  { %659 = vsyncadd [#allocation5], 4294967024 }
  0x9f   :  { %660 = dma.done.wait [#allocation8], 32  }
  0xa0   :  { %661 = vsyncadd [#allocation8], 4294967264 }
  0xa1   :  { %662 = dma.done.wait [#allocation11], 528  }
  0xa2   :  { %663 = vsyncadd [#allocation11], 4294966768 }
  0xa3   :  { %664 = dma.done.wait [#allocation14], 32  }
  0xa4   :  { %665 = vsyncadd [#allocation14], 4294967264  ;;  %v677_v0 = vmov 0.0|0.0   ;;  %vm678_vm0 = vmmov 0   ;;  %v679_v1 = vmov 0.0   ;;  %v141_v2 = vld [vmem:[#allocation4] sm:$0xff] }
  0xa5   :  { %431 = vmatprep.subr.bf16.mxu0 %v677_v0  ;;  %417 = vmatprep.mubr.msk.f32.mxu0 %vm678_vm0, %v679_v1  ;;  %v142_v3 = vld [vmem:[#allocation4 + $0x8] sm:$0xff]  ;;  %v140_v5 = vld [vmem:[#allocation2] sm:$0x3]  ;;  %vm150_vm1 = vcmask 130048   ;;  %v264_v6 = vld [vmem:[#allocation10] sm:$0xff]  ;;  %vm224_vm2 = vcmask 254976  }
  0xa6   :  { %434 = vmatprep.subr.bf16.mxu1 %v677_v0  ;;  %428 = vmatprep.mubr.msk.f32.mxu1 %vm678_vm0, %v679_v1  ;;  %v432_v4 = vpack.c.bf16 %v142_v3, %v141_v2  ;;  %v265_v7 = vld [vmem:[#allocation10 + $0x8] sm:$0xff]  ;;  %v266_v9 = vld [vmem:[#allocation10 + $0x10] sm:$0xff]  ;;  %v267_v10 = vld [vmem:[#allocation10 + $0x18] sm:$0xff]  ;;  %vm275_vm3 = vcmask 261120   ;;  %vm349_vm4 = vcmask 1041408  }
  0xa7   :  { %v435_v8 = vpack.c.bf16 %v265_v7, %v264_v6  ;;  %v438_v11 = vpack.c.bf16 %v267_v10, %v266_v9  ;;  %v397_v12 = vld [vmem:[#allocation6] ss:$0 sm:$0xff]  ;;  %v399_v35 = vld [vmem:[#allocation7] ss:$0 sm:$0xff]  ;;  %v400_v38 = vld [vmem:[#allocation9] ss:$0 sm:$0xff] }
  0xa8   :  { %433 = vmatpush3.bf16.msra.mxu0 %v432_v4  ;;  %v401_v42 = vld [vmem:[#allocation12] ss:$0 sm:$0xff]  ;;  %v403_v1 = vld [vmem:[#allocation13] ss:$0 sm:$0xff]  ;;  %v404_v4 = vld [vmem:[#allocation15] ss:$0 sm:$0xff] }
  0xa9   :  { %436 = vmatpush3.bf16.msra.mxu1 %v435_v8 }
  0xaa   :  { %437 = vmatprep.subr.bf16.mxu1 %v677_v0 }
  0xab   :  { %418 = vmatmul.mubr.msk.f32.vlgmr.msra.gmra.mrb[0].mxu0 %vm150_vm1, %v140_v5 }
  0xad   :  { %439 = vmatpush3.bf16.msra.mxu1 %v438_v11 }
 0x17e   :  { %v220_v13 = vpop.f32.mrb[0].mxu0 }
 0x17f   :  { %v221_v14 = vadd.f32 %v397_v12, %v220_v13  ;;  %v419_v15 = vpop.f32.mrb[1].mxu0 }
 0x181   :  { %v225_v16 = vsel %vm224_vm2, %v221_v14, 0.0 }
 0x182   :  { %v226_v17 = vrot.slane %v225_v16, 4 }
 0x184   :  { %v227_v18 = vadd.f32 %v226_v17, %v225_v16 }
 0x186   :  { %v228_v19 = vrot.slane %v227_v18, 2 }
 0x188   :  { %v229_v20 = vadd.f32 %v228_v19, %v227_v18 }
 0x18a   :  { %v230_v21 = vrot.slane %v229_v20, 1 }
 0x18c   :  { %v231_v22 = vadd.f32 %v230_v21, %v229_v20 }
 0x18e   :  { %v233_v23 = vmul.f32 0.5, %v231_v22 }
 0x190   :  { %v234_v24 = vsub.f32 %v221_v14, %v233_v23 }
 0x192   :  { %v235_v25 = vmul.f32 %v234_v24, %v234_v24  ;;  %v251_v36 = vmul.f32 %v399_v35, %v234_v24 }
 0x194   :  { %v236_v26 = vsel %vm224_vm2, %v235_v25, 0.0 }
 0x195   :  { %v237_v27 = vrot.slane %v236_v26, 4 }
 0x197   :  { %v238_v28 = vadd.f32 %v237_v27, %v236_v26 }
 0x199   :  { %v239_v29 = vrot.slane %v238_v28, 2 }
 0x19b   :  { %v240_v30 = vadd.f32 %v239_v29, %v238_v28 }
 0x19d   :  { %v241_v31 = vrot.slane %v240_v30, 1 }
 0x19f   :  { %v242_v32 = vadd.f32 %v241_v31, %v240_v30 }
 0x1a1   :  { %v243_v33 = vmul.f32 0.5, %v242_v32 }
 0x1a3   :  { %v252_v34 = vadd.f32 1e-05, %v243_v33 }
 0x1a5   :  { %454 = vrsqrt.f32 %v252_v34 }
 0x1af   :  { %v455_v37 = vpop.eup %454 }
 0x1b0   :  { %v254_v39 = vmul.f32 %v455_v37, %v251_v36 }
 0x1b2   :  { %v262_v40 = vadd.f32 %v400_v38, %v254_v39 }
 0x1b4   :  { %v263_v41 = vmax.f32 %v262_v40, 0.0 }
 0x1b6   :  { %429 = vmatmul.mubr.msk.f32.vlgmr.msra.gmra.mrb[0].mxu1 %vm275_vm3, %v263_v41 }
 0x289   :  { %v345_v43 = vpop.f32.mrb[0].mxu1 }
 0x28a   :  { %v346_v44 = vadd.f32 %v401_v42, %v345_v43  ;;  %v430_v45 = vpop.f32.mrb[1].mxu1 }
 0x28c   :  { %v350_v46 = vsel %vm349_vm4, %v346_v44, 0.0 }
 0x28d   :  { %v351_v47 = vrot.slane %v350_v46, 4 }
 0x28f   :  { %v352_v48 = vadd.f32 %v351_v47, %v350_v46 }
 0x291   :  { %v353_v49 = vrot.slane %v352_v48, 2 }
 0x293   :  { %v354_v50 = vadd.f32 %v353_v49, %v352_v48 }
 0x295   :  { %v355_v51 = vrot.slane %v354_v50, 1 }
 0x297   :  { %v356_v52 = vadd.f32 %v355_v51, %v354_v50 }
 0x299   :  { %v357_v53 = vmul.f32 0.5, %v356_v52 }
 0x29b   :  { %v358_v54 = vsub.f32 %v346_v44, %v357_v53 }
 0x29d   :  { %v359_v55 = vmul.f32 %v358_v54, %v358_v54  ;;  %v375_v2 = vmul.f32 %v403_v1, %v358_v54 }
 0x29f   :  { %v360_v56 = vsel %vm349_vm4, %v359_v55, 0.0 }
 0x2a0   :  { %v361_v57 = vrot.slane %v360_v56, 4 }
 0x2a2   :  { %v362_v58 = vadd.f32 %v361_v57, %v360_v56 }
 0x2a4   :  { %v363_v59 = vrot.slane %v362_v58, 2 }
 0x2a6   :  { %v364_v60 = vadd.f32 %v363_v59, %v362_v58 }
 0x2a8   :  { %v365_v61 = vrot.slane %v364_v60, 1 }
 0x2aa   :  { %v366_v62 = vadd.f32 %v365_v61, %v364_v60 }
 0x2ac   :  { %v367_v63 = vmul.f32 0.5, %v366_v62 }
 0x2ae   :  { %v376_v0 = vadd.f32 1e-05, %v367_v63 }
 0x2b0   :  { %456 = vrsqrt.f32 %v376_v0 }
 0x2ba   :  { %v457_v3 = vpop.eup %456 }
 0x2bb   :  { %v378_v5 = vmul.f32 %v457_v3, %v375_v2 }
 0x2bd   :  { %v386_v6 = vadd.f32 %v404_v4, %v378_v5 }
 0x2bf   :  { %387 = vst [vmem:[%s856_s9] sm:$0x3] %v386_v6 }
 0x2c0   :  { %392 = vsyncpa [#allocation3], 1 }
 0x2c1   :  { %393 = vsyncpa [#allocation5], 1 }
 0x2c2   :  { %394 = vsyncpa [#allocation8], 1 }
 0x2c3   :  { %395 = vsyncpa [#allocation11], 1 }
 0x2c4   :  { %396 = vsyncpa [#allocation14], 1 }

// kernel: forward.3
= control target key start
LH: loop header
LB: loop body
LE: loop exit
PB: predicated region body
PF: predicated region fallthrough
CT: control target
= control target key end

     0   :  { %17 = vsyncpa [#allocation3], 0  ;;  %s5046_s0 = inlined_call_operand.vmem [shape: f32[2,8,16], index: 0, kind: input, shape index: {}]   ;;  %s5047_s1 = inlined_call_operand.vmem [shape: f32[9,16,64], index: 1, kind: input, shape index: {}]   ;;  %s5048_s2 = inlined_call_operand.vmem [shape: f32[8,72], index: 2, kind: input, shape index: {}]   ;;  %s5049_s3 = inlined_call_operand.vmem [shape: f32[8,1], index: 3, kind: input, shape index: {}]   ;;  %s5050_s4 = inlined_call_operand.hbm [shape: f32[64,256], index: 4, kind: input, shape index: {}]   ;;  %s5051_s5 = inlined_call_operand.hbm [shape: f32[9,1,256], index: 5, kind: input, shape index: {}]   ;;  %s5052_s6 = inlined_call_operand.vmem [shape: f32[8,72], index: 6, kind: input, shape index: {}]   ;;  %s5053_s7 = inlined_call_operand.vmem [shape: f32[8,1], index: 7, kind: input, shape index: {}]   ;;  %s5054_s8 = inlined_call_operand.hbm [shape: f32[256,1024], index: 8, kind: input, shape index: {}]   ;;  %s5055_s9 = inlined_call_operand.hbm [shape: f32[9,1,1024], index: 9, kind: input, shape index: {}]   ;;  %s5056_s10 = inlined_call_operand.vmem [shape: f32[3,72], index: 10, kind: input, shape index: {}]   ;;  %s5057_s11 = inlined_call_operand.vmem [shape: f32[3,1], index: 11, kind: input, shape index: {}]   ;;  %s5058_s12 = inlined_call_operand.vmem [shape: f32[2,3,1024], index: 12, kind: output, shape index: {}]  }
   0x1   :  { %18 = vsyncpa [#allocation5], 0 }
   0x2   :  { %19 = vsyncpa [#allocation8], 0  ;;  %s4058_s21 = smov 0  }
   0x3 LB: > { %5082 = sst [smem:[#allocation12_spill]] %s3961_s21  ;;  %s3963_s22 = smov [#allocation4]   ;;  %s3961_s21 = sphi %s4058_s21, %s25_s21  }
   0x4   : > { %s347_s23 = sshll.u32 %s3963_s22, 4  ;;  %s4064_s24 = sadd.s32 4294967295, %s3961_s21   ;;  %s4069_s23 = int_to_ptr.vmem [resolvable:$true] %s347_s23 }
   0x5   : > { %p3161_p0 = scmp.ge.s32.totalorder %s3961_s21, 1  ;;  %p313_p1 = scmp.lt.s32.totalorder %s3961_s21, 3 }
   0x6   : > { %p5060_p2 = scmp.eq.s32.totalorder %s4064_s24, 0  ;;  %s3964_s26 = smov [#allocation2]  }
   0x7   : > { %p4071_p3 = pnand %p3161_p0, %p313_p1  ;;  %s334_s27 = sshll.u32 %s3964_s26, 4  ;;  %s4077_s27 = int_to_ptr.vmem [resolvable:$true] %s334_s27 }
   0x8   : > { %s3965_s29 = smov [#allocation6]   ;;  %s3831_s15 = scalar_lea.hbm %s5051_s5, 288 }
   0x9   : > { %s5083_s25 = scalar_select %p4071_p3, 1, 0 }
   0xa   : > { %p3738_p4 = pneg %p4071_p3  ;;  %s4085_s30 = sshll.u32 %s3965_s29, 4  ;;  %s367_s30 = int_to_ptr.vmem [resolvable:$true] %s4085_s30 }
   0xb   : > { %p3832_p6 = scmp.ne.s32.totalorder %s5051_s5, %s3831_s15  ;;  %p3838_p10 = scmp.lt.u32.totalorder %s3831_s15, %s5051_s5 }
   0xc   : > { %p4081_p5 = pnand %p5060_p2, %p3738_p4 }
   0xe   : > { %p4095_p7 = pneg %p4081_p5 }
  0x10   : > { %p3834_p8 = pnand %p4095_p7, %p3832_p6 }
  0x12   : > { %p3835_p9 = pneg %p3834_p8 }
  0x14   : > { %p3840_p11 = pnand %p3838_p10, %p3835_p9 }
  0x16   : > { %3843 = shalt.err (!%p3840_p11)
}
  0x17   : > { %s3844_s22 = scalar_lea.vmem %s4069_s23, 288  ;;  %p3852_p1 = scmp.lt.s32.totalorder %s4069_s23, %s4069_s23 }
  0x18   : > { %p3845_p12 = scmp.ne.s32.totalorder %s4069_s23, %s3844_s22  ;;  %p3853_p4 = scmp.lt.s32.totalorder %s3844_s22, %s3844_s22 }
  0x1a   : > { %p3847_p13 = pnand %p3845_p12, %p4095_p7  ;;  %p3854_p6 = por %p3853_p4, %p3852_p1 }
  0x1c   : > { %p3848_p0 = pneg %p3847_p13 }
  0x1e   : > { %p3855_p8 = pnand %p3854_p6, %p3848_p0 }
  0x20   : > { %3858 = shalt.err (!%p3855_p8)
}
  0x21   : > { %s3966_s26 = smov 32   ;;  %s3967_s29 = smov 2  }
  0x22   : > { %3744 = dma.hbm_to_vmem [thread:$0]  (!%p4081_p5), %s5051_s5, 288, %s4069_s23, [#allocation5], %s3966_s26, %s3966_s26, %s3967_s29  }
  0x23   : > { %s3859_s17 = scalar_lea.hbm %s5050_s4, 2048 }
  0x24   : > { %p3860_p9 = scmp.ne.s32.totalorder %s5050_s4, %s3859_s17  ;;  %p3866_p12 = scmp.lt.u32.totalorder %s3859_s17, %s5050_s4 }
  0x26   : > { %p3862_p10 = pnand %p3860_p9, %p4095_p7 }
  0x28   : > { %p3863_p11 = pneg %p3862_p10 }
  0x2a   : > { %p3868_p13 = pnand %p3866_p12, %p3863_p11 }
  0x2c   : > { %3871 = shalt.err (!%p3868_p13)
}
  0x2d   : > { %s3872_s23 = scalar_lea.vmem %s4077_s27, 2048  ;;  %p3880_p6 = scmp.lt.s32.totalorder %s4077_s27, %s4077_s27 }
  0x2e   : > { %p3873_p0 = scmp.ne.s32.totalorder %s4077_s27, %s3872_s23  ;;  %p3881_p8 = scmp.lt.s32.totalorder %s3872_s23, %s3872_s23 }
  0x30   : > { %p3875_p1 = pnand %p3873_p0, %p4095_p7  ;;  %p3882_p9 = por %p3881_p8, %p3880_p6 }
  0x32   : > { %p3876_p4 = pneg %p3875_p1 }
  0x34   : > { %p3883_p10 = pnand %p3882_p9, %p3876_p4 }
  0x36   : > { %3886 = shalt.err (!%p3883_p10)
}
  0x37   : > { %s3968_s26 = smov 256   ;;  %s3969_s21 = smov 16  }
  0x38   : > { %3741 = dma.hbm_to_vmem [thread:$0]  (!%p4081_p5), %s5050_s4, 2048, %s4077_s27, [#allocation3], %s3968_s26, %s3968_s26, %s3969_s21  }
  0x39   : > { %s3887_s16 = scalar_lea.hbm %s5054_s8, 32768 }
  0x3a   : > { %p3888_p11 = scmp.ne.s32.totalorder %s5054_s8, %s3887_s16  ;;  %p3894_p0 = scmp.lt.u32.totalorder %s3887_s16, %s5054_s8 }
  0x3c   : > { %p3890_p12 = pnand %p3888_p11, %p4095_p7 }
  0x3e   : > { %p3891_p13 = pneg %p3890_p12 }
  0x40   : > { %p3896_p1 = pnand %p3894_p0, %p3891_p13 }
  0x42   : > { %3899 = shalt.err (!%p3896_p1)
}
  0x43   : > { %s3900_s23 = scalar_lea.vmem %s367_s30, 32768  ;;  %p3908_p9 = scmp.lt.s32.totalorder %s367_s30, %s367_s30 }
  0x44   : > { %p3901_p4 = scmp.ne.s32.totalorder %s367_s30, %s3900_s23  ;;  %p3909_p10 = scmp.lt.s32.totalorder %s3900_s23, %s3900_s23 }
  0x46   : > { %p3903_p6 = pnand %p3901_p4, %p4095_p7  ;;  %p3910_p2 = por %p3909_p10, %p3908_p9 }
  0x48   : > { %p3904_p8 = pneg %p3903_p6 }
  0x4a   : > { %p3911_p3 = pnand %p3910_p2, %p3904_p8 }
  0x4c   : > { %3914 = shalt.err (!%p3911_p3)
}
  0x4d   : > { %s3970_s27 = smov 1024   ;;  %s3971_s26 = smov 64  }
  0x4e   : > { %3747 = dma.hbm_to_vmem [thread:$0]  (!%p4081_p5), %s5054_s8, 32768, %s367_s30, [#allocation5], %s3970_s27, %s3970_s27, %s3971_s26  }
  0x4f   : > { %s3972_s13 = smov [#allocation7]   ;;  %s3915_s17 = scalar_lea.hbm %s5055_s9, 1152 }
  0x50   : > { %s379_s14 = sshll.u32 %s3972_s13, 4  ;;  %p3916_p2 = scmp.ne.s32.totalorder %s5055_s9, %s3915_s17  ;;  %s380_s14 = int_to_ptr.vmem [resolvable:$true] %s379_s14 }
  0x51   : > { %p3922_p12 = scmp.lt.u32.totalorder %s3915_s17, %s5055_s9 }
  0x52   : > { %p3918_p3 = pnand %p3916_p2, %p4095_p7 }
  0x54   : > { %p3919_p11 = pneg %p3918_p3 }
  0x56   : > { %p3924_p13 = pnand %p3922_p12, %p3919_p11 }
  0x58   : > { %3927 = shalt.err (!%p3924_p13)
}
  0x59   : > { %s3928_s30 = scalar_lea.vmem %s380_s14, 1152  ;;  %p3936_p6 = scmp.lt.s32.totalorder %s380_s14, %s380_s14 }
  0x5a   : > { %p3929_p0 = scmp.ne.s32.totalorder %s380_s14, %s3928_s30  ;;  %p3937_p8 = scmp.lt.s32.totalorder %s3928_s30, %s3928_s30 }
  0x5c   : > { %p3931_p1 = pnand %p3929_p0, %p4095_p7  ;;  %p3938_p9 = por %p3937_p8, %p3936_p6 }
  0x5e   : > { %p3932_p4 = pneg %p3931_p1 }
  0x60   : > { %p3939_p10 = pnand %p3938_p9, %p3932_p4 }
  0x62   : > { %3942 = shalt.err (!%p3939_p10)
}
  0x63   : > { %s3973_s27 = smov 128   ;;  %s3974_s26 = smov 8  }
  0x64   : > { %3750 = dma.hbm_to_vmem [thread:$0]  (!%p4081_p5), %s5055_s9, 1152, %s380_s14, [#allocation8], %s3973_s27, %s3973_s27, %s3974_s26  }
  0x65   : > { %p5086_p2 = scmp.ne.s32.totalorder %s5083_s25, 0 }
  0x67   : > { %408 = sbr.rel (%p5086_p2) target bundleno = 1868 (0x74c), region = 68 }
  0x6e   : > { %p5087_p3 = scmp.eq.s32.totalorder %s4064_s24, 0 }
  0x70   : > { %3948 = dma.done.wait (%p5087_p3), [#allocation3], 2048   ;;  %p5088_p7 = pmov %p5087_p3 }
  0x71   : > { %p5089_p11 = pmov %p5087_p3 }
  0x72   : > { %3950 = vsyncadd (%p5088_p7), [#allocation3], 4294965248 }
  0x73   : > { %3952 = dma.done.wait (%p5089_p11), [#allocation5], 33056   ;;  %p5090_p12 = pmov %p5087_p3 }
  0x74   : > { %p5091_p13 = pmov %p5087_p3 }
  0x75   : > { %3954 = vsyncadd (%p5090_p12), [#allocation5], 4294934240 }
  0x76   : > { %3956 = dma.done.wait (%p5091_p13), [#allocation8], 1152   ;;  %p5092_p5 = pmov %p5087_p3 }
  0x77   : > { %p461_p0 = scmp.lt.s32.totalorder %s4064_s24, 1  ;;  %v3975_v0 = vmov 0.0|0.0   ;;  %vm3976_vm0 = vmmov 0   ;;  %v5062_v1 = vmov 0.0   ;;  %v471_v2 = vld [vmem:[%s5047_s1] sm:$0xff]  ;;  %v472_v3 = vld [vmem:[%s5047_s1 + $0x8] sm:$0xff] }
  0x78   : > { %3958 = vsyncadd (%p5092_p5), [#allocation8], 4294966144  ;;  %3331 = vmatprep.subr.bf16.mxu0 %v3975_v0  ;;  %3251 = vmatprep.mubr.msk.f32.mxu0 %vm3976_vm0, %v5062_v1  ;;  %v3332_v4 = vpack.c.bf16 %v472_v3, %v471_v2  ;;  %v3176_v5 = vld [vmem:[%s5047_s1 + $0x10] sm:$0xff]  ;;  %v3177_v6 = vld [vmem:[%s5047_s1 + $0x18] sm:$0xff]  ;;  %vm473_vm1 = vcmask 130048   ;;  %v3978_v33 = vmov 0  }
  0x79   : > { %s5130_s24 = smov (!%p461_p0, %s4064_s24), 1  ;;  %3346 = vmatprep.subr.bf16.mxu1 %v3975_v0  ;;  %3286 = vmatprep.mubr.msk.f32.mxu1 %vm3976_vm0, %v5062_v1  ;;  %v3335_v8 = vpack.c.bf16 %v3177_v6, %v3176_v5  ;;  %v3188_v9 = vld [vmem:[%s5047_s1 + $0x50] sm:$0xff]  ;;  %v3179_v10 = vld [vmem:[%s5047_s1 + $0x20] sm:$0xff]  ;;  %v3180_v11 = vld [vmem:[%s5047_s1 + $0x28] sm:$0xff]  ;;  %vm1138_vm2 = vcmask 588800   ;;  %vm1229_vm3 = vcmask 523264  }
  0x7a   : > { %s3172_s25 = sshll.u32 %s5130_s24, 3  ;;  %3333 = vmatpush3.bf16.msra.mxu0 %v3332_v4  ;;  %v3189_v12 = vld [vmem:[%s5047_s1 + $0x58] sm:$0xff]  ;;  %v3194_v14 = vld [vmem:[%s5047_s1 + $0x70] sm:$0xff]  ;;  %v3338_v16 = vpack.c.bf16 %v3180_v11, %v3179_v10  ;;  %v3185_v21 = vld [vmem:[%s5047_s1 + $0x40] sm:$0xff]  ;;  %3797 = vset.pattern.permute.xlu0 %v3978_v33  ;;  %s3979_s22 = smov 16  }
  0x7b   : > { %s464_s17 = scalar_lea.vmem %s5046_s0, %s3172_s25  ;;  %3334 = vmatprep.subr.bf16.mxu0 %v3975_v0  ;;  %v3347_v13 = vpack.c.bf16 %v3189_v12, %v3188_v9  ;;  %v3195_v15 = vld [vmem:[%s5047_s1 + $0x78] sm:$0xff]  ;;  %v3182_v17 = vld [vmem:[%s5047_s1 + $0x30] sm:$0xff]  ;;  %v3186_v22 = vld [vmem:[%s5047_s1 + $0x48] sm:$0xff]  ;;  %3798 = vset.pattern.permute.xlu1 %v3978_v33  ;;  %s3980_s23 = smov 17  }
  0x7c   : > { %v470_v7 = vld [vmem:[%s464_s17] sm:$0xff]  ;;  %v3183_v18 = vld [vmem:[%s5047_s1 + $0x38] sm:$0xff]  ;;  %v3353_v19 = vpack.c.bf16 %v3195_v15, %v3194_v14  ;;  %v3344_v23 = vpack.c.bf16 %v3186_v22, %v3185_v21  ;;  %v3192_v25 = vld [vmem:[%s5047_s1 + $0x68] sm:$0xff]  ;;  %s3981_s30 = smov 15   ;;  %s3982_s27 = smov 1  }
  0x7d   : > { %3252 = vmatmul.mubr.msk.f32.vlgmr.msra.gmra.mrb[0].mxu0 %vm473_vm1, %v470_v7  ;;  %3348 = vmatpush3.bf16.msra.mxu1 %v3347_v13  ;;  %v3341_v20 = vpack.c.bf16 %v3183_v18, %v3182_v17  ;;  %v3191_v24 = vld [vmem:[%s5047_s1 + $0x60] sm:$0xff]  ;;  %v3198_v28 = vld [vmem:[%s5047_s1 + $0x88] sm:$0xff]  ;;  %v1214_v31 = vld [vmem:[#allocation2 + $0x8] sm:$0xff]  ;;  %s3983_s26 = smov 127   ;;  %s3984_s21 = smov 113  }
  0x7e   : > { %3336 = vmatpush3.bf16.msra.mxu0 %v3335_v8  ;;  %3258 = vmatprep.mubr.msk.f32.mxu0 %vm3976_vm0, %v5062_v1  ;;  %v3350_v26 = vpack.c.bf16 %v3192_v25, %v3191_v24  ;;  %v3197_v27 = vld [vmem:[%s5047_s1 + $0x80] sm:$0xff]  ;;  %v1213_v35 = vld [vmem:[#allocation2] sm:$0xff]  ;;  %v1215_v36 = vld [vmem:[#allocation2 + $0x10] sm:$0xff]  ;;  %s3985_s29 = smov 112   ;;  %s3986_s25 = smov 111  }
  0x7f   : > { %3337 = vmatprep.subr.bf16.mxu0 %v3975_v0  ;;  %3352 = vmatprep.subr.bf16.mxu1 %v3975_v0  ;;  %v3356_v29 = vpack.c.bf16 %v3198_v28, %v3197_v27  ;;  %v1132_v30 = vld [vmem:[%s5049_s3] sm:$0xff]  ;;  %v1218_v37 = vld [vmem:[#allocation2 + $0x28] sm:$0xff]  ;;  %v3372_v38 = vpack.c.bf16 %v1215_v36, %v1213_v35  ;;  %v1217_v40 = vld [vmem:[#allocation2 + $0x20] sm:$0xff]  ;;  %s3987_s15 = smov 33   ;;  %s3988_s16 = smov 97  }
  0x80   : > { %3287 = vmatmul.mubr.msk.f32.vlgmr.msra.gmra.mrb[0].mxu1 %vm473_vm1, %v470_v7  ;;  %v1216_v32 = vld [vmem:[#allocation2 + $0x18] sm:$0xff]  ;;  %1135 = vperm.xlu0 %3797, %v1132_v30   ;;  %v1219_v41 = vld [vmem:[#allocation2 + $0x30] sm:$0xff]  ;;  %v1222_v43 = vld [vmem:[#allocation2 + $0x48] sm:$0xff]  ;;  %s3989_s17 = smov 95   ;;  %s3990_s19 = smov 32  }
  0x81   : > { %3259 = vmatmul.mubr.msk.f32.vlgmr.msra.gmra.mrb[2].mxu0 %vm473_vm1, %v470_v7  ;;  %3354 = vmatpush3.bf16.msra.mxu1 %v3353_v19  ;;  %v3370_v34 = vpack.c.bf16 %v1216_v32, %v1214_v31  ;;  %v1220_v39 = vld [vmem:[#allocation2 + $0x38] sm:$0xff]  ;;  %v3376_v45 = vpack.c.bf16 %v1219_v41, %v1217_v40  ;;  %v1221_v47 = vld [vmem:[#allocation2 + $0x40] sm:$0xff]  ;;  %v1223_v48 = vld [vmem:[#allocation2 + $0x50] sm:$0xff]  ;;  %s3991_s20 = smov 31  }
  0x82   : > { %3339 = vmatpush3.bf16.msra.mxu0 %v3338_v16  ;;  %3265 = vmatprep.mubr.msk.f32.mxu0 %vm3976_vm0, %v5062_v1  ;;  %v3374_v42 = vpack.c.bf16 %v1220_v39, %v1218_v37  ;;  %v1224_v44 = vld [vmem:[#allocation2 + $0x58] sm:$0xff]  ;;  %v3380_v49 = vpack.c.bf16 %v1223_v48, %v1221_v47  ;;  %v1226_v11 = vld [vmem:[#allocation2 + $0x68] sm:$0xff]  ;;  %v1225_v13 = vld [vmem:[#allocation2 + $0x60] sm:$0xff] }
  0x83   : > { %3340 = vmatprep.subr.bf16.mxu0 %v3975_v0  ;;  %3300 = vmatprep.mubr.msk.f32.mxu1 %vm3976_vm0, %v5062_v1  ;;  %v3378_v46 = vpack.c.bf16 %v1224_v44, %v1222_v43  ;;  %v1131_v10 = vld [vmem:[%s5048_s2] sm:$0xff]  ;;  %v1227_v14 = vld [vmem:[#allocation2 + $0x70] sm:$0xff] }
  0x84   : > { %3358 = vmatprep.subr.bf16.mxu1 %v3975_v0  ;;  %3301 = vmatmul.mubr.msk.f32.vlgmr.msra.gmra.mrb[2].mxu1 %vm473_vm1, %v470_v7  ;;  %v1228_v12 = vld [vmem:[#allocation2 + $0x78] sm:$0xff]  ;;  %v3384_v15 = vpack.c.bf16 %v1227_v14, %v1225_v13 }
  0x85   : > { %3266 = vmatmul.mubr.msk.f32.vlgmr.msra.gmra.mrb[4].mxu0 %vm473_vm1, %v470_v7  ;;  %3328 = vmatprep.mubr.msk.f32.mxu1 %vm3976_vm0, %v5062_v1  ;;  %v1573_v24 = vld [vmem:[#allocation6 + $0x48] sm:$0xff]  ;;  %v1572_v27 = vld [vmem:[#allocation6 + $0x40] sm:$0xff] }
  0x86   : > { %3342 = vmatpush3.bf16.msra.mxu0 %v3341_v20  ;;  %3272 = vmatprep.mubr.msk.f32.mxu0 %vm3976_vm0, %v5062_v1  ;;  %v1589_v30 = vld [vmem:[#allocation6 + $0xc8] sm:$0xff]  ;;  %v1580_v32 = vld [vmem:[#allocation6 + $0x80] sm:$0xff] }
  0x87   : > { %3343 = vmatprep.subr.bf16.mxu0 %v3975_v0  ;;  %v1588_v33 = vld [vmem:[#allocation6 + $0xc0] sm:$0xff]  ;;  %v1597_v35 = vld [vmem:[#allocation6 + $0x108] sm:$0xff] }
  0x88   : > { %v1605_v36 = vld [vmem:[#allocation6 + $0x148] sm:$0xff]  ;;  %v1596_v39 = vld [vmem:[#allocation6 + $0x100] sm:$0xff] }
  0x89   : > { %3273 = vmatmul.mubr.msk.f32.vlgmr.msra.gmra.mrb[6].mxu0 %vm473_vm1, %v470_v7  ;;  %v1482_v37 = vld [vmem:[%s5053_s7] sm:$0xff] }
  0x8a   : > { %3345 = vmatpush3.bf16.msra.mxu0 %v3344_v23  ;;  %3279 = vmatprep.mubr.msk.f32.mxu0 %vm3976_vm0, %v5062_v1  ;;  %v1565_v23 = vld [vmem:[#allocation6 + $0x8] sm:$0xff]  ;;  %v1604_v40 = vld [vmem:[#allocation6 + $0x140] sm:$0xff] }
  0x8b   : > { %3349 = vmatprep.subr.bf16.mxu0 %v3975_v0  ;;  %v3402_v25 = vpack.c.bf16 %v1573_v24, %v1565_v23  ;;  %v3412_v41 = vpack.c.bf16 %v1604_v40, %v1596_v39  ;;  %v1621_v43 = vld [vmem:[#allocation6 + $0x1c8] sm:$0xff]  ;;  %v1700_v13 = vld [vmem:[#allocation6 + $0x440] sm:$0xff] }
  0x8c   : > { %v1629_v48 = vld [vmem:[#allocation6 + $0x208] sm:$0xff]  ;;  %v1764_v39 = vld [vmem:[#allocation6 + $0x640] sm:$0xff] }
  0x8d   : > { %3280 = vmatmul.mubr.msk.f32.vlgmr.msra.gmra.mrb[8].mxu0 %vm473_vm1, %v470_v7  ;;  %v1725_v23 = vld [vmem:[#allocation6 + $0x508] sm:$0xff] }
  0x8e   : > { %3351 = vmatpush3.bf16.msra.mxu0 %v3350_v26  ;;  %3293 = vmatprep.mubr.msk.f32.mxu0 %vm3976_vm0, %v5062_v1  ;;  %v1564_v26 = vld [vmem:[#allocation6] sm:$0xff]  ;;  %v1733_v24 = vld [vmem:[#allocation6 + $0x548] sm:$0xff] }
  0x8f   : > { %3355 = vmatprep.subr.bf16.mxu0 %v3975_v0  ;;  %v3404_v28 = vpack.c.bf16 %v1572_v27, %v1564_v26  ;;  %v1724_v26 = vld [vmem:[#allocation6 + $0x500] sm:$0xff] }
  0x90   : > { %v1732_v27 = vld [vmem:[#allocation6 + $0x540] sm:$0xff] }
  0x91   : > { %3294 = vmatmul.mubr.msk.f32.vlgmr.msra.gmra.mrb[10].mxu0 %vm473_vm1, %v470_v7 }
  0x92   : > { %3357 = vmatpush3.bf16.msra.mxu0 %v3356_v29  ;;  %3307 = vmatprep.mubr.msk.f32.mxu0 %vm3976_vm0, %v5062_v1  ;;  %v1581_v29 = vld [vmem:[#allocation6 + $0x88] sm:$0xff] }
  0x93   : > { %3371 = vmatprep.subr.bf16.mxu0 %v3370_v34  ;;  %v3406_v31 = vpack.c.bf16 %v1589_v30, %v1581_v29  ;;  %v3408_v34 = vpack.c.bf16 %v1588_v33, %v1580_v32  ;;  %v1741_v29 = vld [vmem:[#allocation6 + $0x588] sm:$0xff]  ;;  %v1740_v32 = vld [vmem:[#allocation6 + $0x580] sm:$0xff] }
  0x94   : > { %v1749_v30 = vld [vmem:[#allocation6 + $0x5c8] sm:$0xff]  ;;  %v1748_v33 = vld [vmem:[#allocation6 + $0x5c0] sm:$0xff] }
  0x95   : > { %3308 = vmatmul.mubr.msk.f32.vlgmr.msra.gmra.mrb[12].mxu0 %vm473_vm1, %v470_v7 }
  0x96   : > { %1297 = vmatprep.mubr.f32.mxu0 %v5062_v1  ;;  %3373 = vmatpush1.bf16.msra.mxu0 %v3372_v38  ;;  %v3410_v38 = vpack.c.bf16 %v1605_v36, %v1597_v35  ;;  %v1757_v35 = vld [vmem:[#allocation6 + $0x608] sm:$0xff] }
  0x97   : > { %3375 = vmatprep.subr.bf16.mxu0 %v3374_v42  ;;  %v1613_v42 = vld [vmem:[#allocation6 + $0x188] sm:$0xff] }
  0x98   : > { %v3414_v44 = vpack.c.bf16 %v1621_v43, %v1613_v42  ;;  %v1765_v36 = vld [vmem:[#allocation6 + $0x648] sm:$0xff] }
  0x99   : > { %v1781_v42 = vld [vmem:[#allocation6 + $0x6c8] sm:$0xff] }
  0x9a   : > { %3377 = vmatpush1.bf16.msra.mxu0 %v3376_v45  ;;  %v1612_v45 = vld [vmem:[#allocation6 + $0x180] sm:$0xff] }
  0x9b   : > { %3379 = vmatprep.subr.bf16.mxu0 %v3378_v46  ;;  %v1620_v46 = vld [vmem:[#allocation6 + $0x1c0] sm:$0xff] }
  0x9c   : > { %v3416_v47 = vpack.c.bf16 %v1620_v46, %v1612_v45  ;;  %v1780_v45 = vld [vmem:[#allocation6 + $0x6c0] sm:$0xff] }
  0x9e   : > { %3381 = vmatpush1.bf16.msra.mxu0 %v3380_v49  ;;  %v1637_v49 = vld [vmem:[#allocation6 + $0x248] sm:$0xff] }
  0xff   : > { %v1136_v16 = vpop.permute.xlu0 %1135 }
 0x150   : > { %v543_v50 = vpop.f32.mrb[0].mxu0 }
 0x151   : > { %v3253_v51 = vpop.f32.mrb[1].mxu0 }
 0x152   : > { %v1628_v51 = vld [vmem:[#allocation6 + $0x200] sm:$0xff] }
 0x153   : > { %v908_v55 = vpop.f32.mrb[0].mxu1 }
 0x154   : > { %v616_v52 = vpop.f32.mrb[2].mxu0  ;;  %v3288_v56 = vpop.f32.mrb[1].mxu1 }
 0x155   : > { %v3359_v53 = vpack.c.bf16 %v616_v52, %v543_v50  ;;  %v3260_v54 = vpop.f32.mrb[3].mxu0  ;;  %v3418_v50 = vpack.c.bf16 %v1637_v49, %v1629_v48  ;;  %v1636_v52 = vld [vmem:[#allocation6 + $0x240] sm:$0xff]  ;;  %v1797_v48 = vld [vmem:[#allocation6 + $0x748] sm:$0xff] }
 0x156   : > { %v1645_v54 = vld [vmem:[#allocation6 + $0x288] sm:$0xff] }
 0x157   : > { %3360 = vmatpush3.bf16.msra.mxu1 %v3359_v53  ;;  %v1054_v59 = vpop.f32.mrb[2].mxu1  ;;  %v3420_v53 = vpack.c.bf16 %v1636_v52, %v1628_v51  ;;  %v1796_v51 = vld [vmem:[#allocation6 + $0x740] sm:$0xff] }
 0x158   : > { %v689_v57 = vpop.f32.mrb[4].mxu0  ;;  %3361 = vmatprep.subr.bf16.mxu1 %v3975_v0  ;;  %v3302_v60 = vpop.f32.mrb[3].mxu1 }
 0x159   : > { %v3267_v58 = vpop.f32.mrb[5].mxu0  ;;  %v1661_v60 = vld [vmem:[#allocation6 + $0x308] sm:$0xff] }
 0x15a   : > { %v1652_v58 = vld [vmem:[#allocation6 + $0x2c0] sm:$0xff] }
 0x15c   : > { %v762_v61 = vpop.f32.mrb[6].mxu0 }
 0x15d   : > { %v3362_v62 = vpack.c.bf16 %v762_v61, %v689_v57  ;;  %v3274_v63 = vpop.f32.mrb[7].mxu0  ;;  %v1644_v57 = vld [vmem:[#allocation6 + $0x280] sm:$0xff]  ;;  %v1669_v61 = vld [vmem:[#allocation6 + $0x348] sm:$0xff] }
 0x15e   : > { %v1660_v63 = vld [vmem:[#allocation6 + $0x300] sm:$0xff] }
 0x15f   : > { %3363 = vmatpush3.bf16.msra.mxu1 %v3362_v62  ;;  %v3426_v62 = vpack.c.bf16 %v1669_v61, %v1661_v60 }
 0x160   : > { %v835_v2 = vpop.f32.mrb[8].mxu0  ;;  %3364 = vmatprep.subr.bf16.mxu1 %v3975_v0 }
 0x161   : > { %v3365_v3 = vpack.c.bf16 %v908_v55, %v835_v2  ;;  %v3281_v4 = vpop.f32.mrb[9].mxu0  ;;  %v1653_v55 = vld [vmem:[#allocation6 + $0x2c8] sm:$0xff]  ;;  %v1668_v2 = vld [vmem:[#allocation6 + $0x340] sm:$0xff] }
 0x162   : > { %v3422_v56 = vpack.c.bf16 %v1653_v55, %v1645_v54  ;;  %v1677_v4 = vld [vmem:[#allocation6 + $0x388] sm:$0xff] }
 0x163   : > { %3366 = vmatpush3.bf16.msra.mxu1 %v3365_v3  ;;  %v3428_v3 = vpack.c.bf16 %v1668_v2, %v1660_v63  ;;  %v1379_v63 = vld [vmem:[#allocation4 + $0x6] sm:$0x3]  ;;  %v1313_v2 = vld [vmem:[#allocation4] sm:$0x3] }
 0x164   : > { %v981_v5 = vpop.f32.mrb[10].mxu0  ;;  %3367 = vmatprep.subr.bf16.mxu1 %v3975_v0  ;;  %v3382_v0 = vpack.c.bf16 %v1228_v12, %v1226_v11  ;;  %v1701_v11 = vld [vmem:[#allocation6 + $0x448] sm:$0xff] }
 0x165   : > { %v3368_v6 = vpack.c.bf16 %v1054_v59, %v981_v5  ;;  %v3295_v7 = vpop.f32.mrb[11].mxu0  ;;  %v3424_v59 = vpack.c.bf16 %v1652_v58, %v1644_v57  ;;  %v1685_v5 = vld [vmem:[#allocation6 + $0x3c8] sm:$0xff] }
 0x166   : > { %3383 = vmatprep.subr.bf16.mxu0 %v3382_v0  ;;  %v1676_v7 = vld [vmem:[#allocation6 + $0x380] sm:$0xff] }
 0x167   : > { %3369 = vmatpush3.bf16.msra.mxu1 %v3368_v6  ;;  %3385 = vmatpush1.bf16.msra.mxu0 %v3384_v15  ;;  %v3430_v6 = vpack.c.bf16 %v1685_v5, %v1677_v4  ;;  %v1692_v0 = vld [vmem:[#allocation6 + $0x400] sm:$0xff]  ;;  %v1709_v15 = vld [vmem:[#allocation6 + $0x488] sm:$0xff] }
 0x168   : > { %v1127_v8 = vpop.f32.mrb[12].mxu0  ;;  %3326 = vmatprep.subr.mxu1 %v5062_v1  ;;  %3403 = vmatprep.subr.bf16.mxu0 %v3402_v25  ;;  %v3436_v14 = vpack.c.bf16 %v1700_v13, %v1692_v0  ;;  %v3442_v25 = vpack.c.bf16 %v1733_v24, %v1725_v23 }
 0x169   : > { %v3309_v9 = vpop.f32.mrb[13].mxu0 }
 0x16b   : > { %3327 = vmatpush3.msra.mxu1 %v1127_v8  ;;  %v1684_v8 = vld [vmem:[#allocation6 + $0x3c0] sm:$0xff] }
 0x16c   : > { %3329 = vmatmul.mubr.msk.f32.vlgmr.msra.gmra.mrb[4].mxu1 %vm1138_vm2, %v1131_v10  ;;  %v3432_v9 = vpack.c.bf16 %v1684_v8, %v1676_v7  ;;  %v1693_v10 = vld [vmem:[#allocation6 + $0x408] sm:$0xff] }
 0x16d   : > { %1555 = vmatprep.mubr.f32.mxu1 %v5062_v1  ;;  %v3434_v12 = vpack.c.bf16 %v1701_v11, %v1693_v10  ;;  %v1401_v10 = vld [vmem:[#allocation4 + $0xa] sm:$0x3] }
 0x23f   : > { %v1208_v17 = vpop.f32.mrb[4].mxu1 }
 0x240   : > { %v1209_v18 = vadd.f32 %v1208_v17, %v1136_v16  ;;  %v3330_v19 = vpop.f32.mrb[5].mxu1  ;;  %v1717_v16 = vld [vmem:[#allocation6 + $0x4c8] sm:$0xff] }
 0x241   : > { %v3438_v17 = vpack.c.bf16 %v1717_v16, %v1709_v15  ;;  %v1716_v19 = vld [vmem:[#allocation6 + $0x4c0] sm:$0xff] }
 0x242   : > { %v1212_v20 = vmax.f32 %v1209_v18, 0.0  ;;  %v1708_v18 = vld [vmem:[#allocation6 + $0x480] sm:$0xff] }
 0x244   : > { %3201 = vmatmul.mubr.msk.f32.vlgmr.msra.gmra.mrb[14].mxu0 %vm1229_vm3, %v1212_v20  ;;  %v3440_v20 = vpack.c.bf16 %v1716_v19, %v1708_v18 }
 0x245   : > { %3405 = vmatpush1.bf16.msra.mxu0 %v3404_v28  ;;  %v3444_v28 = vpack.c.bf16 %v1732_v27, %v1724_v26 }
 0x246   : > { %3407 = vmatprep.subr.bf16.mxu0 %v3406_v31  ;;  %v3446_v31 = vpack.c.bf16 %v1749_v30, %v1741_v29 }
 0x249   : > { %3409 = vmatpush1.bf16.msra.mxu0 %v3408_v34  ;;  %v3448_v34 = vpack.c.bf16 %v1748_v33, %v1740_v32 }
 0x24a   : > { %3411 = vmatprep.subr.bf16.mxu0 %v3410_v38  ;;  %v1756_v38 = vld [vmem:[#allocation6 + $0x600] sm:$0xff] }
 0x24b   : > { %v3452_v40 = vpack.c.bf16 %v1764_v39, %v1756_v38 }
 0x24d   : > { %3413 = vmatpush1.bf16.msra.mxu0 %v3412_v41  ;;  %v1773_v41 = vld [vmem:[#allocation6 + $0x688] sm:$0xff] }
 0x24e   : > { %3415 = vmatprep.subr.bf16.mxu0 %v3414_v44  ;;  %v3454_v43 = vpack.c.bf16 %v1781_v42, %v1773_v41  ;;  %v1772_v44 = vld [vmem:[#allocation6 + $0x680] sm:$0xff] }
 0x24f   : > { %v3456_v46 = vpack.c.bf16 %v1780_v45, %v1772_v44  ;;  %v1445_v45 = vld [vmem:[#allocation4 + $0xe] sm:$0x3] }
 0x251   : > { %3417 = vmatpush1.bf16.msra.mxu0 %v3416_v47  ;;  %v1789_v47 = vld [vmem:[#allocation6 + $0x708] sm:$0xff] }
 0x252   : > { %3419 = vmatprep.subr.bf16.mxu0 %v3418_v50  ;;  %v3458_v49 = vpack.c.bf16 %v1797_v48, %v1789_v47  ;;  %v1788_v50 = vld [vmem:[#allocation6 + $0x700] sm:$0xff] }
 0x253   : > { %v3460_v52 = vpack.c.bf16 %v1796_v51, %v1788_v50 }
 0x255   : > { %3421 = vmatpush1.bf16.msra.mxu0 %v3420_v53  ;;  %v1308_v53 = vlaneseq }
 0x256   : > { %3423 = vmatprep.subr.bf16.mxu0 %v3422_v56 }
 0x257   : > { %v4331_v56 = vshrl.u32 %v1308_v53, 7  ;;  %v4333_v57 = vand.u32 127, %v1308_v53 }
 0x259   : > { %3425 = vmatpush1.bf16.msra.mxu0 %v3424_v59  ;;  %v4336_v59 = vsub.s32 0, %v4331_v56  ;;  %v4339_v60 = vsub.s32 1, %v4331_v56  ;;  %vm1331_vm4 = vcmp.lt.s32.totalorder %v4333_v57, 16  ;;  %vm1353_vm5 = vcmp.lt.s32.totalorder %v4333_v57, 15 }
 0x25a   : > { %3427 = vmatprep.subr.bf16.mxu0 %v3426_v62  ;;  %v1335_v62 = vld [vmem:[#allocation4 + $0x2] sm:$0x3]  ;;  %vm1375_vm6 = vcmp.lt.s32.totalorder %v4333_v57, 1  ;;  %vm1310_vm7 = vcmp.lt.s32.totalorder %v4333_v57, 17  ;;  %vm1397_vm8 = vcmp.lt.s32.totalorder %v4333_v57, 127  ;;  %vm1419_vm9 = vcmp.lt.s32.totalorder %v4333_v57, 113 }
 0x25b   : > { %v1344_v4 = vrot.slane %v1335_v62, %v4339_v60  ;;  %v1388_v11 = vrot.slane %v1379_v63, %v4339_v60  ;;  %v1322_v0 = vrot.slane %v1313_v2, %v4339_v60  ;;  %v1410_v19 = vrot.slane %v1401_v10, %v4339_v60 }
 0x25c   : > { %v1406_v38 = vrot.slane %v1401_v10, %v4336_v59  ;;  %vm1441_vm10 = vcmp.lt.s32.totalorder %v4333_v57, 112  ;;  %v1450_v53 = vrot.slane %v1445_v45, %v4336_v59  ;;  %vm1463_vm11 = vcmp.lt.s32.totalorder %v4333_v57, 111 }
 0x25d   : > { %3429 = vmatpush1.bf16.msra.mxu0 %v3428_v3  ;;  %v1340_v3 = vrot.slane %v1335_v62, %v4336_v59  ;;  %vm2120_vm12 = vcmp.lt.s32.totalorder %v4333_v57, 33  ;;  %vm2195_vm13 = vcmp.lt.s32.totalorder %v4333_v57, 32  ;;  %vm2271_vm14 = vcmp.lt.s32.totalorder %v4333_v57, 31 }
 0x25e   : > { %3431 = vmatprep.subr.bf16.mxu0 %v3430_v6  ;;  %v1357_v6 = vld [vmem:[#allocation4 + $0x4] sm:$0x3]  ;;  %vm2497_vm15 = vcmp.lt.s32.totalorder %v4333_v57, 97  ;;  %vm2573_vm0 = vcmp.lt.s32.totalorder %v4333_v57, 96  ;;  %vm2649_vm1 = vcmp.lt.s32.totalorder %v4333_v57, 95 }
 0x25f   : > { %v1366_v13 = vrot.slane %v1357_v6, %v4339_v60  ;;  %v1362_v30 = vrot.slane %v1357_v6, %v4336_v59 }
 0x261   : > { %3433 = vmatpush1.bf16.msra.mxu0 %v3432_v9 }
 0x262   : > { %3435 = vmatprep.subr.bf16.mxu0 %v3434_v12  ;;  %v1318_v12 = vrot.slane %v1313_v2, %v4336_v59 }
 0x265   : > { %3437 = vmatpush1.bf16.msra.mxu0 %v3436_v14  ;;  %v1384_v14 = vrot.slane %v1379_v63, %v4336_v59 }
 0x266   : > { %3439 = vmatprep.subr.bf16.mxu0 %v3438_v17 }
 0x269   : > { %3441 = vmatpush1.bf16.msra.mxu0 %v3440_v20 }
 0x26a   : > { %3443 = vmatprep.subr.bf16.mxu0 %v3442_v25 }
 0x26d   : > { %3445 = vmatpush1.bf16.msra.mxu0 %v3444_v28 }
 0x26e   : > { %3447 = vmatprep.subr.bf16.mxu0 %v3446_v31 }
 0x271   : > { %3449 = vmatpush1.bf16.msra.mxu0 %v3448_v34 }
 0x317   : > { %v4304_v21 = vpop.f32.mrb[14].mxu0 }
 0x318   : > { %1327 = vrot.lane.b32.xlu1 %v4304_v21, %s3979_s22  ;;  %1304 = vrot.lane.b32.xlu0 %v4304_v21, %s3980_s23  ;;  %v4308_v22 = vpop.f32.mrb[15].mxu0 }
 0x31c   : > { %1349 = vrot.lane.b32.xlu1 %v4304_v21, %s3981_s30  ;;  %1329 = vrot.lane.b32.xlu0 %v4308_v22, %s3979_s22  ;;  %s3992_s22 = smov 96  }
 0x320   : > { %1371 = vrot.lane.b32.xlu1 %v4304_v21, %s3982_s27  ;;  %1351 = vrot.lane.b32.xlu0 %v4308_v22, %s3981_s30 }
 0x324   : > { %1373 = vrot.lane.b32.xlu0 %v4308_v22, %s3982_s27  ;;  %1306 = vrot.lane.b32.xlu1 %v4308_v22, %s3980_s23 }
 0x328   : > { %1395 = vrot.lane.b32.xlu0 %v4308_v22, %s3983_s26  ;;  %1393 = vrot.lane.b32.xlu1 %v4304_v21, %s3983_s26 }
 0x32c   : > { %1417 = vrot.lane.b32.xlu0 %v4308_v22, %s3984_s21  ;;  %1415 = vrot.lane.b32.xlu1 %v4304_v21, %s3984_s21  ;;  %s3209_s21 = sshll.u32 %s5130_s24, 5 }
 0x32d   : > { %s5037_s28 = scalar_lea.vmem %s5058_s12, %s3209_s21 }
 0x330   : > { %1439 = vrot.lane.b32.xlu0 %v4308_v22, %s3985_s29  ;;  %1437 = vrot.lane.b32.xlu1 %v4304_v21, %s3985_s29 }
 0x334   : > { %1461 = vrot.lane.b32.xlu0 %v4308_v22, %s3986_s25  ;;  %1459 = vrot.lane.b32.xlu1 %v4304_v21, %s3986_s25 }
 0x338   : > { %1485 = vperm.xlu1 %3798, %v1482_v37   ;;  %v3450_v37 = vpack.c.bf16 %v1765_v36, %v1757_v35 }
 0x33a   : > { %3451 = vmatprep.subr.bf16.mxu0 %v3450_v37 }
 0x33b   : > { %3453 = vmatpush1.bf16.msra.mxu0 %v3452_v40 }
 0x33c   : > { %3455 = vmatprep.subr.bf16.mxu0 %v3454_v43  ;;  %v1423_v43 = vld [vmem:[#allocation4 + $0xc] sm:$0x3] }
 0x33d   : > { %v1428_v50 = vrot.slane %v1423_v43, %v4336_v59  ;;  %v1432_v51 = vrot.slane %v1423_v43, %v4339_v60  ;;  %v1639_v43 = vld [vmem:[#allocation6 + $0x258] sm:$0xff] }
 0x33f   : > { %3457 = vmatpush1.bf16.msra.mxu0 %v3456_v46 }
 0x340   : > { %3459 = vmatprep.subr.bf16.mxu0 %v3458_v49 }
 0x343   : > { %3461 = vmatpush1.bf16.msra.mxu0 %v3460_v52 }
 0x38a   : > { %v1328_v54 = vpop.permute.xlu1 %1327  ;;  %v1305_v55 = vpop.permute.xlu0 %1304 }
 0x38e   : > { %v1350_v58 = vpop.permute.xlu1 %1349  ;;  %v1330_v61 = vpop.permute.xlu0 %1329 }
 0x38f   : > { %v1332_v8 = vsel %vm1331_vm4, %v1328_v54, %v1330_v61  ;;  %v1333_v9 = vsel %vm1331_vm4, %v1330_v61, %v1328_v54  ;;  %v1454_v54 = vrot.slane %v1445_v45, %v4339_v60 }
 0x390   : > { %v1347_v15 = vmul.f32 %v1340_v3, %v1333_v9  ;;  %v1348_v16 = vmul.f32 %v1344_v4, %v1332_v8 }
 0x392   : > { %v1372_v5 = vpop.permute.xlu1 %1371  ;;  %v1352_v7 = vpop.permute.xlu0 %1351 }
 0x393   : > { %v1354_v20 = vsel %vm1353_vm5, %v1350_v58, %v1352_v7  ;;  %v1355_v31 = vsel %vm1353_vm5, %v1352_v7, %v1350_v58 }
 0x394   : > { %v1370_v32 = vmul.f32 %v1366_v13, %v1354_v20  ;;  %v1369_v44 = vmul.f32 %v1362_v30, %v1355_v31  ;;  %v1591_v20 = vld [vmem:[#allocation6 + $0xd8] sm:$0xff] }
 0x395   : > { %v1599_v30 = vld [vmem:[#allocation6 + $0x118] sm:$0xff] }
 0x396   : > { %v1374_v17 = vpop.permute.xlu0 %1373  ;;  %v1307_v18 = vpop.permute.xlu1 %1306  ;;  %v1607_v31 = vld [vmem:[#allocation6 + $0x158] sm:$0xff] }
 0x397   : > { %v1376_v23 = vsel %vm1375_vm6, %v1372_v5, %v1374_v17  ;;  %v1311_v24 = vsel %vm1310_vm7, %v1305_v55, %v1307_v18  ;;  %v1312_v25 = vsel %vm1310_vm7, %v1307_v18, %v1305_v55  ;;  %v1377_v26 = vsel %vm1375_vm6, %v1374_v17, %v1372_v5  ;;  %v1467_v55 = vld [vmem:[#allocation4 + $0x10] sm:$0x3]  ;;  %v1566_v17 = vld [vmem:[#allocation6 + $0x10] sm:$0xff] }
 0x398   : > { %v1392_v27 = vmul.f32 %v1388_v11, %v1376_v23  ;;  %v1325_v28 = vmul.f32 %v1318_v12, %v1312_v25  ;;  %v1326_v29 = vmul.f32 %v1322_v0, %v1311_v24  ;;  %v1391_v37 = vmul.f32 %v1384_v14, %v1377_v26  ;;  %v1567_v14 = vld [vmem:[#allocation6 + $0x18] sm:$0xff]  ;;  %v1574_v18 = vld [vmem:[#allocation6 + $0x50] sm:$0xff]  ;;  %v1481_v25 = vld [vmem:[%s5052_s6] sm:$0xff] }
 0x399   : > { %v1472_v0 = vrot.slane %v1467_v55, %v4336_v59  ;;  %v3468_v26 = vpack.c.bf16 %v1574_v18, %v1566_v17  ;;  %v1727_v17 = vld [vmem:[#allocation6 + $0x518] sm:$0xff] }
 0x39a   : > { %v3388_v33 = vpack.c.bf16 %v1347_v15, %v1325_v28  ;;  %v1396_v34 = vpop.permute.xlu0 %1395  ;;  %v1394_v35 = vpop.permute.xlu1 %1393  ;;  %v3386_v36 = vpack.c.bf16 %v1348_v16, %v1326_v29  ;;  %v3390_v42 = vpack.c.bf16 %v1392_v27, %v1370_v32  ;;  %v3392_v48 = vpack.c.bf16 %v1391_v37, %v1369_v44  ;;  %v1582_v28 = vld [vmem:[#allocation6 + $0x90] sm:$0xff]  ;;  %v1623_v37 = vld [vmem:[#allocation6 + $0x1d8] sm:$0xff] }
 0x39b   : > { %v1399_v39 = vsel %vm1397_vm8, %v1396_v34, %v1394_v35  ;;  %v1398_v40 = vsel %vm1397_vm8, %v1394_v35, %v1396_v34  ;;  %v1590_v29 = vld [vmem:[#allocation6 + $0xd0] sm:$0xff]  ;;  %v1735_v18 = vld [vmem:[#allocation6 + $0x558] sm:$0xff] }
 0x39c   : > { %v1414_v41 = vmul.f32 %v1410_v19, %v1399_v39  ;;  %3387 = vmatprep.subr.bf16.mxu1 %v3386_v36  ;;  %v1413_v49 = vmul.f32 %v1406_v38, %v1398_v40  ;;  %v1583_v19 = vld [vmem:[#allocation6 + $0x98] sm:$0xff]  ;;  %v3472_v32 = vpack.c.bf16 %v1590_v29, %v1582_v28  ;;  %v1598_v34 = vld [vmem:[#allocation6 + $0x110] sm:$0xff] }
 0x39d   : > { %3389 = vmatpush1.bf16.msra.mxu1 %v3388_v33  ;;  %v3470_v27 = vpack.c.bf16 %v1591_v20, %v1583_v19  ;;  %v3474_v33 = vpack.c.bf16 %v1607_v31, %v1599_v30  ;;  %v1606_v35 = vld [vmem:[#allocation6 + $0x150] sm:$0xff]  ;;  %v1615_v36 = vld [vmem:[#allocation6 + $0x198] sm:$0xff]  ;;  %v3506_v20 = vpack.c.bf16 %v1735_v18, %v1727_v17  ;;  %v1593_v17 = vld [vmem:[#allocation6 + $0xe8] sm:$0xff] }
 0x39e   : > { %v1418_v46 = vpop.permute.xlu0 %1417  ;;  %3391 = vmatprep.subr.bf16.mxu1 %v3390_v42  ;;  %v1416_v47 = vpop.permute.xlu1 %1415  ;;  %v3394_v52 = vpack.c.bf16 %v1414_v41, %v4308_v22  ;;  %v3396_v2 = vpack.c.bf16 %v1413_v49, %v4304_v21  ;;  %v1476_v22 = vrot.slane %v1467_v55, %v4339_v60  ;;  %v1575_v21 = vld [vmem:[#allocation6 + $0x58] sm:$0xff]  ;;  %v3476_v38 = vpack.c.bf16 %v1606_v35, %v1598_v34  ;;  %v1614_v40 = vld [vmem:[#allocation6 + $0x190] sm:$0xff] }
 0x39f   : > { %v1420_v58 = vsel %vm1419_vm9, %v1416_v47, %v1418_v46  ;;  %v1421_v61 = vsel %vm1419_vm9, %v1418_v46, %v1416_v47  ;;  %v3466_v23 = vpack.c.bf16 %v1575_v21, %v1567_v14  ;;  %v3478_v39 = vpack.c.bf16 %v1623_v37, %v1615_v36  ;;  %v1622_v41 = vld [vmem:[#allocation6 + $0x1d0] sm:$0xff]  ;;  %v1631_v42 = vld [vmem:[#allocation6 + $0x218] sm:$0xff] }
 0x3a0   : > { %v1435_v5 = vmul.f32 %v1428_v50, %v1420_v58  ;;  %v1436_v6 = vmul.f32 %v1432_v51, %v1421_v61  ;;  %v3480_v44 = vpack.c.bf16 %v1622_v41, %v1614_v40  ;;  %v3482_v45 = vpack.c.bf16 %v1639_v43, %v1631_v42  ;;  %v1630_v46 = vld [vmem:[#allocation6 + $0x210] sm:$0xff]  ;;  %v1655_v49 = vld [vmem:[#allocation6 + $0x2d8] sm:$0xff] }
 0x3a1   : > { %3393 = vmatpush1.bf16.msra.mxu1 %v3392_v48  ;;  %v1638_v47 = vld [vmem:[#allocation6 + $0x250] sm:$0xff]  ;;  %v1647_v48 = vld [vmem:[#allocation6 + $0x298] sm:$0xff] }
 0x3a2   : > { %v1440_v62 = vpop.permute.xlu0 %1439  ;;  %3395 = vmatprep.subr.bf16.mxu1 %v3394_v52  ;;  %v1438_v63 = vpop.permute.xlu1 %1437  ;;  %v3484_v50 = vpack.c.bf16 %v1638_v47, %v1630_v46  ;;  %v3486_v51 = vpack.c.bf16 %v1655_v49, %v1647_v48  ;;  %v1646_v52 = vld [vmem:[#allocation6 + $0x290] sm:$0xff]  ;;  %v1671_v55 = vld [vmem:[#allocation6 + $0x358] sm:$0xff] }
 0x3a3   : > { %v1442_v3 = vsel %vm1441_vm10, %v1438_v63, %v1440_v62  ;;  %v1443_v4 = vsel %vm1441_vm10, %v1440_v62, %v1438_v63  ;;  %v1662_v62 = vld [vmem:[#allocation6 + $0x310] sm:$0xff]  ;;  %v1759_v31 = vld [vmem:[#allocation6 + $0x618] sm:$0xff] }
 0x3a4   : > { %v1457_v7 = vmul.f32 %v1450_v53, %v1442_v3  ;;  %v1458_v8 = vmul.f32 %v1454_v54, %v1443_v4  ;;  %v1654_v53 = vld [vmem:[#allocation6 + $0x2d0] sm:$0xff]  ;;  %v1663_v54 = vld [vmem:[#allocation6 + $0x318] sm:$0xff] }
 0x3a5   : > { %3397 = vmatpush1.bf16.msra.mxu1 %v3396_v2  ;;  %v3488_v58 = vpack.c.bf16 %v1654_v53, %v1646_v52  ;;  %v3490_v61 = vpack.c.bf16 %v1671_v55, %v1663_v54  ;;  %v1670_v63 = vld [vmem:[#allocation6 + $0x350] sm:$0xff]  ;;  %v1679_v2 = vld [vmem:[#allocation6 + $0x398] sm:$0xff]  ;;  %v1804_v55 = vld [vmem:[#allocation6 + $0x780] sm:$0xff] }
 0x3a6   : > { %v3400_v9 = vpack.c.bf16 %v1457_v7, %v1435_v5  ;;  %v1462_v10 = vpop.permute.xlu0 %1461  ;;  %v1460_v11 = vpop.permute.xlu1 %1459  ;;  %v3398_v12 = vpack.c.bf16 %v1458_v8, %v1436_v6  ;;  %v1687_v3 = vld [vmem:[#allocation6 + $0x3d8] sm:$0xff]  ;;  %v3492_v4 = vpack.c.bf16 %v1670_v63, %v1662_v62  ;;  %v1678_v5 = vld [vmem:[#allocation6 + $0x390] sm:$0xff] }
 0x3a7   : > { %v1465_v13 = vsel %vm1463_vm11, %v1462_v10, %v1460_v11  ;;  %v1464_v15 = vsel %vm1463_vm11, %v1460_v11, %v1462_v10  ;;  %v1686_v6 = vld [vmem:[#allocation6 + $0x3d0] sm:$0xff]  ;;  %v1695_v7 = vld [vmem:[#allocation6 + $0x418] sm:$0xff] }
 0x3a8   : > { %v1480_v16 = vmul.f32 %v1476_v22, %v1465_v13  ;;  %3399 = vmatprep.subr.bf16.mxu1 %v3398_v12  ;;  %v1479_v24 = vmul.f32 %v1472_v0, %v1464_v15  ;;  %v3494_v22 = vpack.c.bf16 %v1687_v3, %v1679_v2  ;;  %v1703_v8 = vld [vmem:[#allocation6 + $0x458] sm:$0xff]  ;;  %v1694_v11 = vld [vmem:[#allocation6 + $0x410] sm:$0xff] }
 0x3a9   : > { %3401 = vmatpush1.bf16.msra.mxu1 %v3400_v9  ;;  %v3496_v9 = vpack.c.bf16 %v1686_v6, %v1678_v5  ;;  %v3498_v10 = vpack.c.bf16 %v1703_v8, %v1695_v7  ;;  %v1702_v12 = vld [vmem:[#allocation6 + $0x450] sm:$0xff]  ;;  %v1711_v0 = vld [vmem:[#allocation6 + $0x498] sm:$0xff] }
 0x3aa   : > { %1507 = vmatprep.subr.mxu1 %v1480_v16  ;;  %v1719_v13 = vld [vmem:[#allocation6 + $0x4d8] sm:$0xff]  ;;  %v3500_v14 = vpack.c.bf16 %v1702_v12, %v1694_v11  ;;  %v1710_v15 = vld [vmem:[#allocation6 + $0x490] sm:$0xff]  ;;  %v1568_v11 = vld [vmem:[#allocation6 + $0x20] sm:$0xff] }
 0x3ab   : > { %v3502_v21 = vpack.c.bf16 %v1719_v13, %v1711_v0  ;;  %v1718_v16 = vld [vmem:[#allocation6 + $0x4d0] sm:$0xff]  ;;  %v1775_v37 = vld [vmem:[#allocation6 + $0x698] sm:$0xff]  ;;  %v1576_v13 = vld [vmem:[#allocation6 + $0x60] sm:$0xff] }
 0x3ac   : > { %v3504_v19 = vpack.c.bf16 %v1718_v16, %v1710_v15  ;;  %v1742_v29 = vld [vmem:[#allocation6 + $0x590] sm:$0xff]  ;;  %v1791_v43 = vld [vmem:[#allocation6 + $0x718] sm:$0xff]  ;;  %v1585_v16 = vld [vmem:[#allocation6 + $0xa8] sm:$0xff] }
 0x3ad   : > { %1508 = vmatpush1.msra.mxu1 %v1479_v24  ;;  %v1734_v24 = vld [vmem:[#allocation6 + $0x550] sm:$0xff]  ;;  %v1807_v52 = vld [vmem:[#allocation6 + $0x798] sm:$0xff] }
 0x3ae   : > { %3202 = vmatmul.mubr.msk.f32.vlgmr.msra.gmra.mrb[6].mxu1 %vm1138_vm2, %v1481_v25  ;;  %3467 = vmatprep.subr.bf16.mxu1 %v3466_v23  ;;  %v1726_v23 = vld [vmem:[#allocation6 + $0x510] sm:$0xff]  ;;  %v1743_v25 = vld [vmem:[#allocation6 + $0x598] sm:$0xff] }
 0x3af   : > { %3469 = vmatpush1.bf16.msra.mxu1 %v3468_v26  ;;  %v1751_v26 = vld [vmem:[#allocation6 + $0x5d8] sm:$0xff]  ;;  %v1750_v30 = vld [vmem:[#allocation6 + $0x5d0] sm:$0xff] }
 0x3b0   : > { %3471 = vmatprep.subr.bf16.mxu1 %v3470_v27  ;;  %v3508_v27 = vpack.c.bf16 %v1734_v24, %v1726_v23  ;;  %v3510_v28 = vpack.c.bf16 %v1751_v26, %v1743_v25  ;;  %v1758_v35 = vld [vmem:[#allocation6 + $0x610] sm:$0xff]  ;;  %v1815_v54 = vld [vmem:[#allocation6 + $0x7d8] sm:$0xff]  ;;  %v3532_v23 = vpack.c.bf16 %v1576_v13, %v1568_v11  ;;  %v1584_v25 = vld [vmem:[#allocation6 + $0xa0] sm:$0xff] }
 0x3b1   : > { %v1766_v36 = vld [vmem:[#allocation6 + $0x650] sm:$0xff]  ;;  %v1571_v5 = vld [vmem:[#allocation6 + $0x38] sm:$0xff]  ;;  %v1592_v26 = vld [vmem:[#allocation6 + $0xe0] sm:$0xff] }
 0x3b2   : > { %v1774_v41 = vld [vmem:[#allocation6 + $0x690] sm:$0xff]  ;;  %v1579_v7 = vld [vmem:[#allocation6 + $0x78] sm:$0xff] }
 0x3b3   : > { %3473 = vmatpush1.bf16.msra.mxu1 %v3472_v32  ;;  %v1767_v32 = vld [vmem:[#allocation6 + $0x658] sm:$0xff]  ;;  %v1782_v42 = vld [vmem:[#allocation6 + $0x6d0] sm:$0xff]  ;;  %v3594_v8 = vpack.c.bf16 %v1579_v7, %v1571_v5 }
 0x3b4   : > { %3475 = vmatprep.subr.bf16.mxu1 %v3474_v33  ;;  %v3512_v33 = vpack.c.bf16 %v1750_v30, %v1742_v29  ;;  %v3514_v34 = vpack.c.bf16 %v1767_v32, %v1759_v31  ;;  %v1790_v47 = vld [vmem:[#allocation6 + $0x710] sm:$0xff]  ;;  %v1587_v18 = vld [vmem:[#allocation6 + $0xb8] sm:$0xff]  ;;  %v1601_v30 = vld [vmem:[#allocation6 + $0x128] sm:$0xff]  ;;  %v3534_v31 = vpack.c.bf16 %v1593_v17, %v1585_v16 }
 0x3b5   : > { %v1798_v48 = vld [vmem:[#allocation6 + $0x750] sm:$0xff]  ;;  %v1651_v11 = vld [vmem:[#allocation6 + $0x2b8] sm:$0xff] }
 0x3b6   : > { %v3524_v49 = vpack.c.bf16 %v1798_v48, %v1790_v47  ;;  %v1806_v63 = vld [vmem:[#allocation6 + $0x790] sm:$0xff]  ;;  %v1627_v47 = vld [vmem:[#allocation6 + $0x1f8] sm:$0xff] }
 0x3b7   : > { %3477 = vmatpush1.bf16.msra.mxu1 %v3476_v38  ;;  %v1783_v38 = vld [vmem:[#allocation6 + $0x6d8] sm:$0xff]  ;;  %v1814_v2 = vld [vmem:[#allocation6 + $0x7d0] sm:$0xff] }
 0x3b8   : > { %3479 = vmatprep.subr.bf16.mxu1 %v3478_v39  ;;  %v3516_v39 = vpack.c.bf16 %v1766_v36, %v1758_v35  ;;  %v3518_v40 = vpack.c.bf16 %v1783_v38, %v1775_v37  ;;  %v3528_v3 = vpack.c.bf16 %v1814_v2, %v1806_v63  ;;  %v1594_v29 = vld [vmem:[#allocation6 + $0xf0] sm:$0xff]  ;;  %v1611_v35 = vld [vmem:[#allocation6 + $0x178] sm:$0xff]  ;;  %v3536_v36 = vpack.c.bf16 %v1592_v26, %v1584_v25  ;;  %v1600_v38 = vld [vmem:[#allocation6 + $0x120] sm:$0xff] }
 0x3b9   : > { %v1643_v63 = vld [vmem:[#allocation6 + $0x278] sm:$0xff]  ;;  %v1634_v7 = vld [vmem:[#allocation6 + $0x230] sm:$0xff] }
 0x3ba   : > { %v1650_v17 = vld [vmem:[#allocation6 + $0x2b0] sm:$0xff] }
 0x3bb   : > { %3481 = vmatpush1.bf16.msra.mxu1 %v3480_v44  ;;  %v1799_v44 = vld [vmem:[#allocation6 + $0x758] sm:$0xff] }
 0x3bc   : > { %3483 = vmatprep.subr.bf16.mxu1 %v3482_v45  ;;  %v3520_v45 = vpack.c.bf16 %v1782_v42, %v1774_v41  ;;  %v3522_v46 = vpack.c.bf16 %v1799_v44, %v1791_v43  ;;  %v1602_v42 = vld [vmem:[#allocation6 + $0x130] sm:$0xff]  ;;  %v1617_v44 = vld [vmem:[#allocation6 + $0x1a8] sm:$0xff] }
 0x3bd   : > { %v1610_v43 = vld [vmem:[#allocation6 + $0x170] sm:$0xff] }
 0x3bf   : > { %3485 = vmatpush1.bf16.msra.mxu1 %v3484_v50  ;;  %v1805_v50 = vld [vmem:[#allocation6 + $0x788] sm:$0xff] }
 0x3c0   : > { %3487 = vmatprep.subr.bf16.mxu1 %v3486_v51  ;;  %v1813_v51 = vld [vmem:[#allocation6 + $0x7c8] sm:$0xff] }
 0x3c1   : > { %v3462_v53 = vpack.c.bf16 %v1813_v51, %v1805_v50  ;;  %v1616_v50 = vld [vmem:[#allocation6 + $0x1a0] sm:$0xff] }
 0x3c2   : > { %v1624_v51 = vld [vmem:[#allocation6 + $0x1e0] sm:$0xff] }
 0x3c3   : > { %3489 = vmatpush1.bf16.msra.mxu1 %v3488_v58  ;;  %v1812_v58 = vld [vmem:[#allocation6 + $0x7c0] sm:$0xff]  ;;  %3463 = vmatprep.subr.bf16.mxu0 %v3462_v53  ;;  %v3544_v2 = vpack.c.bf16 %v1624_v51, %v1616_v50 }
 0x3c4   : > { %3491 = vmatprep.subr.bf16.mxu1 %v3490_v61  ;;  %v3526_v61 = vpack.c.bf16 %v1815_v54, %v1807_v52  ;;  %v3464_v62 = vpack.c.bf16 %v1812_v58, %v1804_v55  ;;  %v1618_v54 = vld [vmem:[#allocation6 + $0x1b0] sm:$0xff]  ;;  %v1633_v58 = vld [vmem:[#allocation6 + $0x228] sm:$0xff] }
 0x3c5   : > { %v1626_v55 = vld [vmem:[#allocation6 + $0x1f0] sm:$0xff] }
 0x3c6   : > { %3465 = vmatpush1.bf16.msra.mxu0 %v3464_v62  ;;  %v1635_v62 = vld [vmem:[#allocation6 + $0x238] sm:$0xff] }
 0x3c7   : > { %3493 = vmatpush1.bf16.msra.mxu1 %v3492_v4  ;;  %v1569_v4 = vld [vmem:[#allocation6 + $0x28] sm:$0xff] }
 0x3c8   : > { %3495 = vmatprep.subr.bf16.mxu1 %v3494_v22  ;;  %v1577_v22 = vld [vmem:[#allocation6 + $0x68] sm:$0xff] }
 0x3c9   : > { %v3530_v6 = vpack.c.bf16 %v1577_v22, %v1569_v4  ;;  %v1632_v4 = vld [vmem:[#allocation6 + $0x220] sm:$0xff] }
 0x3ca   : > { %v1640_v22 = vld [vmem:[#allocation6 + $0x260] sm:$0xff] }
 0x3cb   : > { %3497 = vmatpush1.bf16.msra.mxu1 %v3496_v9  ;;  %3531 = vmatprep.subr.bf16.mxu0 %v3530_v6  ;;  %v1486_v9 = vpop.permute.xlu1 %1485  ;;  %v3610_v6 = vpack.c.bf16 %v1643_v63, %v1635_v62  ;;  %v1713_v62 = vld [vmem:[#allocation6 + $0x4a8] sm:$0xff] }
 0x3cc   : > { %3499 = vmatprep.subr.bf16.mxu1 %v3498_v10  ;;  %v1721_v63 = vld [vmem:[#allocation6 + $0x4e8] sm:$0xff] }
 0x3cf   : > { %3501 = vmatpush1.bf16.msra.mxu1 %v3500_v14  ;;  %v1570_v14 = vld [vmem:[#allocation6 + $0x30] sm:$0xff] }
 0x3d0   : > { %3503 = vmatprep.subr.bf16.mxu1 %v3502_v21  ;;  %v1578_v21 = vld [vmem:[#allocation6 + $0x70] sm:$0xff] }
 0x3d1   : > { %v3596_v24 = vpack.c.bf16 %v1578_v21, %v1570_v14  ;;  %v1648_v14 = vld [vmem:[#allocation6 + $0x2a0] sm:$0xff] }
 0x3d2   : > { %v1656_v21 = vld [vmem:[#allocation6 + $0x2e0] sm:$0xff] }
 0x3d3   : > { %3505 = vmatpush1.bf16.msra.mxu1 %v3504_v19  ;;  %v1595_v19 = vld [vmem:[#allocation6 + $0xf8] sm:$0xff]  ;;  %v3552_v25 = vpack.c.bf16 %v1656_v21, %v1648_v14 }
 0x3d4   : > { %3507 = vmatprep.subr.bf16.mxu1 %v3506_v20  ;;  %v3598_v32 = vpack.c.bf16 %v1595_v19, %v1587_v18  ;;  %v1658_v18 = vld [vmem:[#allocation6 + $0x2f0] sm:$0xff]  ;;  %v1665_v19 = vld [vmem:[#allocation6 + $0x328] sm:$0xff] }
 0x3d5   : > { %v3616_v26 = vpack.c.bf16 %v1658_v18, %v1650_v17 }
 0x3d7   : > { %3509 = vmatpush1.bf16.msra.mxu1 %v3508_v27 }
 0x3d8   : > { %3511 = vmatprep.subr.bf16.mxu1 %v3510_v28  ;;  %v1586_v28 = vld [vmem:[#allocation6 + $0xb0] sm:$0xff] }
 0x3d9   : > { %v3600_v37 = vpack.c.bf16 %v1594_v29, %v1586_v28  ;;  %v1664_v28 = vld [vmem:[#allocation6 + $0x320] sm:$0xff] }
 0x3da   : > { %v1672_v29 = vld [vmem:[#allocation6 + $0x360] sm:$0xff] }
 0x3db   : > { %3513 = vmatpush1.bf16.msra.mxu1 %v3512_v33  ;;  %v1609_v33 = vld [vmem:[#allocation6 + $0x168] sm:$0xff] }
 0x3dc   : > { %3515 = vmatprep.subr.bf16.mxu1 %v3514_v34  ;;  %v1603_v34 = vld [vmem:[#allocation6 + $0x138] sm:$0xff] }
 0x3dd   : > { %v3602_v41 = vpack.c.bf16 %v1611_v35, %v1603_v34  ;;  %v1681_v34 = vld [vmem:[#allocation6 + $0x3a8] sm:$0xff] }
 0x3de   : > { %v1689_v35 = vld [vmem:[#allocation6 + $0x3e8] sm:$0xff] }
 0x3df   : > { %3517 = vmatpush1.bf16.msra.mxu1 %v3516_v39  ;;  %v1608_v39 = vld [vmem:[#allocation6 + $0x160] sm:$0xff] }
 0x3e0   : > { %3519 = vmatprep.subr.bf16.mxu1 %v3518_v40  ;;  %v3538_v40 = vpack.c.bf16 %v1609_v33, %v1601_v30  ;;  %v3540_v48 = vpack.c.bf16 %v1608_v39, %v1600_v38  ;;  %v1674_v33 = vld [vmem:[#allocation6 + $0x370] sm:$0xff]  ;;  %v3556_v38 = vpack.c.bf16 %v1672_v29, %v1664_v28 }
 0x3e3   : > { %3521 = vmatpush1.bf16.msra.mxu1 %v3520_v45  ;;  %v1625_v45 = vld [vmem:[#allocation6 + $0x1e8] sm:$0xff] }
 0x3e4   : > { %3523 = vmatprep.subr.bf16.mxu1 %v3522_v46  ;;  %v1619_v46 = vld [vmem:[#allocation6 + $0x1b8] sm:$0xff]  ;;  %v3542_v52 = vpack.c.bf16 %v1625_v45, %v1617_v44  ;;  %v1682_v44 = vld [vmem:[#allocation6 + $0x3b0] sm:$0xff] }
 0x3e5   : > { %v3606_v53 = vpack.c.bf16 %v1627_v47, %v1619_v46  ;;  %v1690_v45 = vld [vmem:[#allocation6 + $0x3f0] sm:$0xff]  ;;  %v1697_v46 = vld [vmem:[#allocation6 + $0x428] sm:$0xff] }
 0x3e6   : > { %v1705_v47 = vld [vmem:[#allocation6 + $0x468] sm:$0xff]  ;;  %v3624_v51 = vpack.c.bf16 %v1690_v45, %v1682_v44 }
 0x3e7   : > { %3525 = vmatpush1.bf16.msra.mxu1 %v3524_v49  ;;  %v3604_v49 = vpack.c.bf16 %v1610_v43, %v1602_v42  ;;  %v3558_v42 = vpack.c.bf16 %v1689_v35, %v1681_v34  ;;  %v1746_v34 = vld [vmem:[#allocation6 + $0x5b0] sm:$0xff] }
 0x3e8   : > { %3527 = vmatprep.subr.bf16.mxu1 %v3526_v61  ;;  %v1641_v61 = vld [vmem:[#allocation6 + $0x268] sm:$0xff]  ;;  %v1754_v35 = vld [vmem:[#allocation6 + $0x5f0] sm:$0xff] }
 0x3e9   : > { %v3546_v5 = vpack.c.bf16 %v1641_v61, %v1633_v58  ;;  %v1698_v58 = vld [vmem:[#allocation6 + $0x430] sm:$0xff] }
 0x3ea   : > { %v1706_v61 = vld [vmem:[#allocation6 + $0x470] sm:$0xff] }
 0x3eb   : > { %3529 = vmatpush1.bf16.msra.mxu1 %v3528_v3  ;;  %v3608_v3 = vpack.c.bf16 %v1626_v55, %v1618_v54  ;;  %v3562_v54 = vpack.c.bf16 %v1705_v47, %v1697_v46  ;;  %v1762_v46 = vld [vmem:[#allocation6 + $0x630] sm:$0xff] }
 0x3ec   : > { %3595 = vmatprep.subr.bf16.mxu1 %v3594_v8  ;;  %v1642_v8 = vld [vmem:[#allocation6 + $0x270] sm:$0xff] }
 0x3ed   : > { %v3612_v13 = vpack.c.bf16 %v1642_v8, %v1634_v7  ;;  %v3566_v7 = vpack.c.bf16 %v1721_v63, %v1713_v62  ;;  %v1770_v47 = vld [vmem:[#allocation6 + $0x670] sm:$0xff] }
 0x3ee   : > { %v1778_v62 = vld [vmem:[#allocation6 + $0x6b0] sm:$0xff] }
 0x3ef   : > { %v1786_v63 = vld [vmem:[#allocation6 + $0x6f0] sm:$0xff] }
 0x481   : > { %v1557_v10 = vpop.f32.mrb[6].mxu1 }
 0x482   : > { %v1559_v12 = vpop.f32.mrb[7].mxu1  ;;  %v1558_v0 = vadd.f32 %v1557_v10, %v1486_v9  ;;  %v1657_v10 = vld [vmem:[#allocation6 + $0x2e8] sm:$0xff] }
 0x483   : > { %v1560_v15 = vadd.f32 %v1559_v12, %v1486_v9  ;;  %v1649_v9 = vld [vmem:[#allocation6 + $0x2a8] sm:$0xff]  ;;  %v1659_v12 = vld [vmem:[#allocation6 + $0x2f8] sm:$0xff] }
 0x484   : > { %v4387_v27 = vmax.f32 %v1558_v0, 0.0  ;;  %v3548_v0 = vpack.c.bf16 %v1640_v22, %v1632_v4  ;;  %v3614_v16 = vpack.c.bf16 %v1659_v12, %v1651_v11  ;;  %v3628_v22 = vpack.c.bf16 %v1706_v61, %v1698_v58  ;;  %v1729_v11 = vld [vmem:[#allocation6 + $0x528] sm:$0xff] }
 0x485   : > { %v1563_v20 = vmax.f32 %v1560_v15, 0.0  ;;  %v3550_v15 = vpack.c.bf16 %v1657_v10, %v1649_v9  ;;  %v1714_v9 = vld [vmem:[#allocation6 + $0x4b0] sm:$0xff]  ;;  %v1737_v12 = vld [vmem:[#allocation6 + $0x568] sm:$0xff] }
 0x486   : > { %v1722_v10 = vld [vmem:[#allocation6 + $0x4f0] sm:$0xff]  ;;  %v3570_v17 = vpack.c.bf16 %v1737_v12, %v1729_v11 }
 0x487   : > { %1884 = vmatprep.mubr.f32.mxu0 %v1563_v20  ;;  %1955 = vmatprep.mubr.f32.mxu1 %v1563_v20  ;;  %v3632_v21 = vpack.c.bf16 %v1722_v10, %v1714_v9  ;;  %v1794_v11 = vld [vmem:[#allocation6 + $0x730] sm:$0xff] }
 0x488   : > { %1885 = vmatmul.mubr.f32.vlgmr.msra.gmra.mrb[16].mxu0 %v4387_v27  ;;  %1956 = vmatmul.mubr.f32.vlgmr.msra.gmra.mrb[8].mxu1 %v4387_v27  ;;  %v1802_v12 = vld [vmem:[#allocation6 + $0x770] sm:$0xff] }
 0x489   : > { %3533 = vmatpush1.bf16.msra.mxu0 %v3532_v23  ;;  %3597 = vmatpush1.bf16.msra.mxu1 %v3596_v24  ;;  %v1667_v23 = vld [vmem:[#allocation6 + $0x338] sm:$0xff] }
 0x48a   : > { %2026 = vmatprep.mubr.f32.mxu0 %v1563_v20  ;;  %2097 = vmatprep.mubr.f32.mxu1 %v1563_v20  ;;  %v1673_v20 = vld [vmem:[#allocation6 + $0x368] sm:$0xff]  ;;  %v1675_v24 = vld [vmem:[#allocation6 + $0x378] sm:$0xff] }
 0x48b   : > { %3535 = vmatprep.subr.bf16.mxu0 %v3534_v31  ;;  %3599 = vmatprep.subr.bf16.mxu1 %v3598_v32  ;;  %v3554_v30 = vpack.c.bf16 %v1673_v20, %v1665_v19  ;;  %v3618_v31 = vpack.c.bf16 %v1675_v24, %v1667_v23  ;;  %v1666_v32 = vld [vmem:[#allocation6 + $0x330] sm:$0xff]  ;;  %v1745_v23 = vld [vmem:[#allocation6 + $0x5a8] sm:$0xff] }
 0x48c   : > { %v3620_v39 = vpack.c.bf16 %v1674_v33, %v1666_v32  ;;  %v1730_v19 = vld [vmem:[#allocation6 + $0x530] sm:$0xff]  ;;  %v1753_v24 = vld [vmem:[#allocation6 + $0x5e8] sm:$0xff] }
 0x48d   : > { %3537 = vmatpush1.bf16.msra.mxu0 %v3536_v36  ;;  %3601 = vmatpush1.bf16.msra.mxu1 %v3600_v37  ;;  %v1683_v36 = vld [vmem:[#allocation6 + $0x3b8] sm:$0xff]  ;;  %v1738_v20 = vld [vmem:[#allocation6 + $0x570] sm:$0xff]  ;;  %v3574_v32 = vpack.c.bf16 %v1753_v24, %v1745_v23 }
 0x48e   : > { %3539 = vmatprep.subr.bf16.mxu0 %v3538_v40  ;;  %3603 = vmatprep.subr.bf16.mxu1 %v3602_v41  ;;  %v1691_v37 = vld [vmem:[#allocation6 + $0x3f8] sm:$0xff]  ;;  %v1680_v40 = vld [vmem:[#allocation6 + $0x3a0] sm:$0xff]  ;;  %v3636_v29 = vpack.c.bf16 %v1738_v20, %v1730_v19  ;;  %v1810_v23 = vld [vmem:[#allocation6 + $0x7b0] sm:$0xff] }
 0x48f   : > { %v1688_v41 = vld [vmem:[#allocation6 + $0x3e0] sm:$0xff]  ;;  %v3622_v43 = vpack.c.bf16 %v1691_v37, %v1683_v36  ;;  %v1761_v36 = vld [vmem:[#allocation6 + $0x628] sm:$0xff]  ;;  %v1818_v24 = vld [vmem:[#allocation6 + $0x7f0] sm:$0xff] }
 0x490   : > { %v3560_v50 = vpack.c.bf16 %v1688_v41, %v1680_v40  ;;  %v1769_v37 = vld [vmem:[#allocation6 + $0x668] sm:$0xff]  ;;  %v3640_v41 = vpack.c.bf16 %v1754_v35, %v1746_v34  ;;  %v1816_v20 = vld [vmem:[#allocation6 + $0x7e0] sm:$0xff] }
 0x491   : > { %3541 = vmatpush1.bf16.msra.mxu0 %v3540_v48  ;;  %3605 = vmatpush1.bf16.msra.mxu1 %v3604_v49  ;;  %v1699_v48 = vld [vmem:[#allocation6 + $0x438] sm:$0xff]  ;;  %v3578_v44 = vpack.c.bf16 %v1769_v37, %v1761_v36 }
 0x492   : > { %3543 = vmatprep.subr.bf16.mxu0 %v3542_v52  ;;  %3607 = vmatprep.subr.bf16.mxu1 %v3606_v53  ;;  %v1707_v49 = vld [vmem:[#allocation6 + $0x478] sm:$0xff]  ;;  %v1696_v52 = vld [vmem:[#allocation6 + $0x420] sm:$0xff] }
 0x493   : > { %v1704_v53 = vld [vmem:[#allocation6 + $0x460] sm:$0xff]  ;;  %v3626_v55 = vpack.c.bf16 %v1707_v49, %v1699_v48  ;;  %v1777_v48 = vld [vmem:[#allocation6 + $0x6a8] sm:$0xff] }
 0x494   : > { %v3564_v4 = vpack.c.bf16 %v1704_v53, %v1696_v52  ;;  %v1785_v49 = vld [vmem:[#allocation6 + $0x6e8] sm:$0xff]  ;;  %v3644_v53 = vpack.c.bf16 %v1770_v47, %v1762_v46 }
 0x495   : > { %3545 = vmatpush1.bf16.msra.mxu0 %v3544_v2  ;;  %3609 = vmatpush1.bf16.msra.mxu1 %v3608_v3  ;;  %v1715_v2 = vld [vmem:[#allocation6 + $0x4b8] sm:$0xff]  ;;  %v3582_v58 = vpack.c.bf16 %v1785_v49, %v1777_v48  ;;  %v4562_v48 = vsub.s32 3, %v4331_v56 }
 0x496   : > { %3547 = vmatprep.subr.bf16.mxu0 %v3546_v5  ;;  %3611 = vmatprep.subr.bf16.mxu1 %v3610_v6  ;;  %v1723_v3 = vld [vmem:[#allocation6 + $0x4f8] sm:$0xff]  ;;  %v1712_v5 = vld [vmem:[#allocation6 + $0x4a0] sm:$0xff] }
 0x497   : > { %v1720_v6 = vld [vmem:[#allocation6 + $0x4e0] sm:$0xff]  ;;  %v3630_v8 = vpack.c.bf16 %v1723_v3, %v1715_v2  ;;  %v1793_v2 = vld [vmem:[#allocation6 + $0x728] sm:$0xff] }
 0x498   : > { %v3568_v14 = vpack.c.bf16 %v1720_v6, %v1712_v5  ;;  %v1801_v3 = vld [vmem:[#allocation6 + $0x768] sm:$0xff]  ;;  %v3648_v6 = vpack.c.bf16 %v1786_v63, %v1778_v62 }
 0x499   : > { %3549 = vmatpush1.bf16.msra.mxu0 %v3548_v0  ;;  %3613 = vmatpush1.bf16.msra.mxu1 %v3612_v13  ;;  %v1731_v0 = vld [vmem:[#allocation6 + $0x538] sm:$0xff]  ;;  %v3586_v9 = vpack.c.bf16 %v1801_v3, %v1793_v2 }
 0x49a   : > { %3551 = vmatprep.subr.bf16.mxu0 %v3550_v15  ;;  %3615 = vmatprep.subr.bf16.mxu1 %v3614_v16  ;;  %v1739_v13 = vld [vmem:[#allocation6 + $0x578] sm:$0xff]  ;;  %v1728_v15 = vld [vmem:[#allocation6 + $0x520] sm:$0xff] }
 0x49b   : > { %v1736_v16 = vld [vmem:[#allocation6 + $0x560] sm:$0xff]  ;;  %v3634_v18 = vpack.c.bf16 %v1739_v13, %v1731_v0  ;;  %v1809_v0 = vld [vmem:[#allocation6 + $0x7a8] sm:$0xff] }
 0x49c   : > { %v3572_v28 = vpack.c.bf16 %v1736_v16, %v1728_v15  ;;  %v1817_v13 = vld [vmem:[#allocation6 + $0x7e8] sm:$0xff]  ;;  %v3652_v16 = vpack.c.bf16 %v1802_v12, %v1794_v11 }
 0x49d   : > { %3553 = vmatpush1.bf16.msra.mxu0 %v3552_v25  ;;  %3617 = vmatpush1.bf16.msra.mxu1 %v3616_v26  ;;  %v1747_v25 = vld [vmem:[#allocation6 + $0x5b8] sm:$0xff] }
 0x49e   : > { %3555 = vmatprep.subr.bf16.mxu0 %v3554_v30  ;;  %3619 = vmatprep.subr.bf16.mxu1 %v3618_v31  ;;  %v1755_v26 = vld [vmem:[#allocation6 + $0x5f8] sm:$0xff]  ;;  %v1744_v30 = vld [vmem:[#allocation6 + $0x5a0] sm:$0xff] }
 0x49f   : > { %v1752_v31 = vld [vmem:[#allocation6 + $0x5e0] sm:$0xff]  ;;  %v3638_v33 = vpack.c.bf16 %v1755_v26, %v1747_v25  ;;  %v3656_v26 = vpack.c.bf16 %v1818_v24, %v1810_v23 }
 0x4a0   : > { %v3576_v40 = vpack.c.bf16 %v1752_v31, %v1744_v30 }
 0x4a1   : > { %3557 = vmatpush1.bf16.msra.mxu0 %v3556_v38  ;;  %3621 = vmatpush1.bf16.msra.mxu1 %v3620_v39  ;;  %v1763_v38 = vld [vmem:[#allocation6 + $0x638] sm:$0xff] }
 0x4a2   : > { %3559 = vmatprep.subr.bf16.mxu0 %v3558_v42  ;;  %3623 = vmatprep.subr.bf16.mxu1 %v3622_v43  ;;  %v1771_v39 = vld [vmem:[#allocation6 + $0x678] sm:$0xff]  ;;  %v1760_v42 = vld [vmem:[#allocation6 + $0x620] sm:$0xff] }
 0x4a3   : > { %v1768_v43 = vld [vmem:[#allocation6 + $0x660] sm:$0xff]  ;;  %v3642_v45 = vpack.c.bf16 %v1771_v39, %v1763_v38 }
 0x4a4   : > { %v3580_v52 = vpack.c.bf16 %v1768_v43, %v1760_v42  ;;  %v4549_v43 = vld [vmem:[#allocation7] sm:$0xff] }
 0x4a5   : > { %3561 = vmatpush1.bf16.msra.mxu0 %v3560_v50  ;;  %3625 = vmatpush1.bf16.msra.mxu1 %v3624_v51  ;;  %v1779_v50 = vld [vmem:[#allocation6 + $0x6b8] sm:$0xff]  ;;  %v2138_v49 = vrot.slane %v4549_v43, %v4339_v60 }
 0x4a6   : > { %3563 = vmatprep.subr.bf16.mxu0 %v3562_v54  ;;  %3627 = vmatprep.subr.bf16.mxu1 %v3626_v55  ;;  %v1787_v51 = vld [vmem:[#allocation6 + $0x6f8] sm:$0xff]  ;;  %v1776_v54 = vld [vmem:[#allocation6 + $0x6a0] sm:$0xff] }
 0x4a7   : > { %v1784_v55 = vld [vmem:[#allocation6 + $0x6e0] sm:$0xff]  ;;  %v3646_v61 = vpack.c.bf16 %v1787_v51, %v1779_v50  ;;  %v4570_v51 = vsub.s32 2, %v4331_v56 }
 0x4a8   : > { %v3584_v5 = vpack.c.bf16 %v1784_v55, %v1776_v54  ;;  %v2146_v55 = vrot.slane %v4549_v43, %v4562_v48 }
 0x4a9   : > { %3565 = vmatpush1.bf16.msra.mxu0 %v3564_v4  ;;  %3629 = vmatpush1.bf16.msra.mxu1 %v3628_v22  ;;  %v1795_v4 = vld [vmem:[#allocation6 + $0x738] sm:$0xff] }
 0x4aa   : > { %3567 = vmatprep.subr.bf16.mxu0 %v3566_v7  ;;  %3631 = vmatprep.subr.bf16.mxu1 %v3630_v8  ;;  %v1803_v22 = vld [vmem:[#allocation6 + $0x778] sm:$0xff]  ;;  %v1792_v7 = vld [vmem:[#allocation6 + $0x720] sm:$0xff] }
 0x4ab   : > { %v1800_v8 = vld [vmem:[#allocation6 + $0x760] sm:$0xff]  ;;  %v3650_v10 = vpack.c.bf16 %v1803_v22, %v1795_v4  ;;  %v2142_v4 = vrot.slane %v4549_v43, %v4570_v51 }
 0x4ac   : > { %v3588_v15 = vpack.c.bf16 %v1800_v8, %v1792_v7 }
 0x4ad   : > { %3569 = vmatpush1.bf16.msra.mxu0 %v3568_v14  ;;  %3633 = vmatpush1.bf16.msra.mxu1 %v3632_v21  ;;  %v1811_v14 = vld [vmem:[#allocation6 + $0x7b8] sm:$0xff] }
 0x4ae   : > { %3571 = vmatprep.subr.bf16.mxu0 %v3570_v17  ;;  %3635 = vmatprep.subr.bf16.mxu1 %v3634_v18  ;;  %v1819_v21 = vld [vmem:[#allocation6 + $0x7f8] sm:$0xff]  ;;  %v1808_v17 = vld [vmem:[#allocation6 + $0x7a0] sm:$0xff]  ;;  %v3590_v18 = vpack.c.bf16 %v1817_v13, %v1809_v0 }
 0x4af   : > { %v3654_v19 = vpack.c.bf16 %v1819_v21, %v1811_v14  ;;  %v3592_v25 = vpack.c.bf16 %v1816_v20, %v1808_v17 }
 0x4b1   : > { %3573 = vmatpush1.bf16.msra.mxu0 %v3572_v28  ;;  %3637 = vmatpush1.bf16.msra.mxu1 %v3636_v29 }
 0x4b2   : > { %3575 = vmatprep.subr.bf16.mxu0 %v3574_v32  ;;  %3639 = vmatprep.subr.bf16.mxu1 %v3638_v33 }
 0x4b5   : > { %3577 = vmatpush1.bf16.msra.mxu0 %v3576_v40  ;;  %3641 = vmatpush1.bf16.msra.mxu1 %v3640_v41 }
 0x4b6   : > { %3579 = vmatprep.subr.bf16.mxu0 %v3578_v44  ;;  %3643 = vmatprep.subr.bf16.mxu1 %v3642_v45  ;;  %v2710_v44 = vld [vmem:[%s5057_s11] sm:$0x7] }
 0x4b7   : > { %v4554_v45 = vld [vmem:[#allocation7 + $0x8] sm:$0xff] }
 0x4b8   : > { %v2214_v50 = vrot.slane %v4554_v45, %v4339_v60  ;;  %v2222_v3 = vrot.slane %v4554_v45, %v4562_v48 }
 0x4b9   : > { %3581 = vmatpush1.bf16.msra.mxu0 %v3580_v52  ;;  %3645 = vmatpush1.bf16.msra.mxu1 %v3644_v53 }
 0x4ba   : > { %3583 = vmatprep.subr.bf16.mxu0 %v3582_v58  ;;  %3647 = vmatprep.subr.bf16.mxu1 %v3646_v61  ;;  %v2218_v58 = vrot.slane %v4554_v45, %v4570_v51 }
 0x4bd   : > { %3585 = vmatpush1.bf16.msra.mxu0 %v3584_v5  ;;  %3649 = vmatpush1.bf16.msra.mxu1 %v3648_v6 }
 0x4be   : > { %3587 = vmatprep.subr.bf16.mxu0 %v3586_v9  ;;  %3651 = vmatprep.subr.bf16.mxu1 %v3650_v10 }
 0x4c1   : > { %3589 = vmatpush1.bf16.msra.mxu0 %v3588_v15  ;;  %3653 = vmatpush1.bf16.msra.mxu1 %v3652_v16 }
 0x4c2   : > { %3591 = vmatprep.subr.bf16.mxu0 %v3590_v18  ;;  %3655 = vmatprep.subr.bf16.mxu1 %v3654_v19  ;;  %v4606_v18 = vld [vmem:[#allocation7 + $0x18] sm:$0xff]  ;;  %v4608_v19 = vld [vmem:[#allocation7 + $0x10] sm:$0xff] }
 0x4c3   : > { %v2369_v24 = vrot.slane %v4606_v18, %v4570_v51 }
 0x4c5   : > { %3593 = vmatpush1.bf16.msra.mxu0 %v3592_v25  ;;  %3657 = vmatpush1.bf16.msra.mxu1 %v3656_v26  ;;  %v2298_v25 = vrot.slane %v4608_v19, %v4562_v48 }
 0x4c8   : > { %2027 = vmatmul.mubr.f32.vlgmr.msra.gmra.mrb[18].mxu0 %v4387_v27  ;;  %2098 = vmatmul.mubr.f32.vlgmr.msra.gmra.mrb[10].mxu1 %v4387_v27 }
 0x4c9   : > { %2854 = vmatprep.mubr.f32.mxu1 %v5062_v1  ;;  %2783 = vmatprep.mubr.f32.mxu0 %v5062_v1 }
 0x55b   : > { %v4395_v28 = vpop.f32.mrb[16].mxu0  ;;  %v4397_v29 = vpop.f32.mrb[8].mxu1 }
 0x55c   : > { %2410 = vrot.lane.b32.xlu1 %v4397_v29, %s3983_s26  ;;  %v4401_v30 = vpop.f32.mrb[9].mxu1  ;;  %2104 = vrot.lane.b32.xlu0 %v4395_v28, %s3987_s15  ;;  %v4405_v31 = vpop.f32.mrb[17].mxu0 }
 0x560   : > { %2481 = vrot.lane.b32.xlu1 %v4395_v28, %s3988_s16  ;;  %2108 = vrot.lane.b32.xlu0 %v4397_v29, %s3987_s15 }
 0x564   : > { %2633 = vrot.lane.b32.xlu1 %v4395_v28, %s3989_s17  ;;  %2179 = vrot.lane.b32.xlu0 %v4395_v28, %s3990_s19 }
 0x568   : > { %2183 = vrot.lane.b32.xlu0 %v4397_v29, %s3990_s19  ;;  %2106 = vrot.lane.b32.xlu1 %v4405_v31, %s3987_s15 }
 0x56c   : > { %2255 = vrot.lane.b32.xlu0 %v4395_v28, %s3991_s20  ;;  %2110 = vrot.lane.b32.xlu1 %v4401_v30, %s3987_s15 }
 0x570   : > { %2259 = vrot.lane.b32.xlu0 %v4397_v29, %s3991_s20  ;;  %2181 = vrot.lane.b32.xlu1 %v4405_v31, %s3990_s19 }
 0x574   : > { %2331 = vrot.lane.b32.xlu0 %v4395_v28, %s3982_s27  ;;  %2185 = vrot.lane.b32.xlu1 %v4401_v30, %s3990_s19 }
 0x578   : > { %2335 = vrot.lane.b32.xlu0 %v4397_v29, %s3982_s27  ;;  %2257 = vrot.lane.b32.xlu1 %v4405_v31, %s3991_s20 }
 0x57c   : > { %2406 = vrot.lane.b32.xlu0 %v4395_v28, %s3983_s26  ;;  %2261 = vrot.lane.b32.xlu1 %v4401_v30, %s3991_s20 }
 0x580   : > { %2485 = vrot.lane.b32.xlu0 %v4397_v29, %s3988_s16  ;;  %2333 = vrot.lane.b32.xlu1 %v4405_v31, %s3982_s27 }
 0x584   : > { %2561 = vrot.lane.b32.xlu0 %v4397_v29, %s3992_s22  ;;  %2337 = vrot.lane.b32.xlu1 %v4401_v30, %s3982_s27 }
 0x588   : > { %2557 = vrot.lane.b32.xlu0 %v4395_v28, %s3992_s22  ;;  %2483 = vrot.lane.b32.xlu1 %v4405_v31, %s3988_s16 }
 0x58c   : > { %2637 = vrot.lane.b32.xlu0 %v4397_v29, %s3989_s17  ;;  %2487 = vrot.lane.b32.xlu1 %v4401_v30, %s3988_s16 }
 0x590   : > { %2408 = vrot.lane.b32.xlu0 %v4405_v31, %s3983_s26  ;;  %2559 = vrot.lane.b32.xlu1 %v4405_v31, %s3992_s22 }
 0x594   : > { %2412 = vrot.lane.b32.xlu0 %v4401_v30, %s3983_s26  ;;  %2563 = vrot.lane.b32.xlu1 %v4401_v30, %s3992_s22 }
 0x598   : > { %2635 = vrot.lane.b32.xlu1 %v4405_v31, %s3989_s17 }
 0x59b   : > { %v4465_v27 = vpop.f32.mrb[18].mxu0  ;;  %v4467_v32 = vpop.f32.mrb[10].mxu1 }
 0x59c   : > { %5093 = vst [vmem:[#allocation13_spill] sm:$0xff] %v4465_v27  ;;  %5094 = vst [vmem:[#allocation14_spill] sm:$0xff] %v4467_v32  ;;  %v4469_v33 = vpop.f32.mrb[11].mxu1  ;;  %2489 = vrot.lane.b32.xlu0 %v4465_v27, %s3988_s16  ;;  %v4473_v34 = vpop.f32.mrb[19].mxu0  ;;  %2639 = vrot.lane.b32.xlu1 %v4401_v30, %s3989_s17 }
 0x59d   : > { %5095 = vst [vmem:[#allocation15_spill] sm:$0xff] %v4469_v33  ;;  %5096 = vst [vmem:[#allocation16_spill] sm:$0xff] %v4473_v34 }
 0x5a0   : > { %2565 = vrot.lane.b32.xlu0 %v4465_v27, %s3992_s22  ;;  %2414 = vrot.lane.b32.xlu1 %v4465_v27, %s3983_s26 }
 0x5a4   : > { %2187 = vrot.lane.b32.xlu0 %v4465_v27, %s3990_s19  ;;  %2112 = vrot.lane.b32.xlu1 %v4465_v27, %s3987_s15 }
 0x5a8   : > { %2191 = vrot.lane.b32.xlu0 %v4467_v32, %s3990_s19  ;;  %2116 = vrot.lane.b32.xlu1 %v4467_v32, %s3987_s15 }
 0x5ac   : > { %2641 = vrot.lane.b32.xlu0 %v4465_v27, %s3989_s17  ;;  %2339 = vrot.lane.b32.xlu1 %v4465_v27, %s3982_s27 }
 0x5b0   : > { %2263 = vrot.lane.b32.xlu0 %v4465_v27, %s3991_s20  ;;  %2343 = vrot.lane.b32.xlu1 %v4467_v32, %s3982_s27 }
 0x5b4   : > { %2267 = vrot.lane.b32.xlu0 %v4467_v32, %s3991_s20  ;;  %2193 = vrot.lane.b32.xlu1 %v4469_v33, %s3990_s19 }
 0x5b8   : > { %2118 = vrot.lane.b32.xlu0 %v4469_v33, %s3987_s15  ;;  %2345 = vrot.lane.b32.xlu1 %v4469_v33, %s3982_s27 }
 0x5bc   : > { %2269 = vrot.lane.b32.xlu0 %v4469_v33, %s3991_s20  ;;  %2418 = vrot.lane.b32.xlu1 %v4467_v32, %s3983_s26 }
 0x5c0   : > { %2493 = vrot.lane.b32.xlu0 %v4467_v32, %s3988_s16  ;;  %2569 = vrot.lane.b32.xlu1 %v4467_v32, %s3992_s22 }
 0x5c4   : > { %2114 = vrot.lane.b32.xlu0 %v4473_v34, %s3987_s15  ;;  %2189 = vrot.lane.b32.xlu1 %v4473_v34, %s3990_s19 }
 0x5c8   : > { %2341 = vrot.lane.b32.xlu0 %v4473_v34, %s3982_s27  ;;  %2265 = vrot.lane.b32.xlu1 %v4473_v34, %s3991_s20 }
 0x5cc   : > { %2416 = vrot.lane.b32.xlu0 %v4473_v34, %s3983_s26  ;;  %2491 = vrot.lane.b32.xlu1 %v4473_v34, %s3988_s16 }
 0x5ce   : > { %v4525_v35 = vpop.permute.xlu1 %2410  ;;  %v4527_v36 = vpop.permute.xlu0 %2104 }
 0x5d0   : > { %2420 = vrot.lane.b32.xlu0 %v4469_v33, %s3983_s26  ;;  %2495 = vrot.lane.b32.xlu1 %v4469_v33, %s3988_s16 }
 0x5d2   : > { %v4533_v37 = vpop.permute.xlu1 %2481  ;;  %v2109_v38 = vpop.permute.xlu0 %2108 }
 0x5d4   : > { %2567 = vrot.lane.b32.xlu0 %v4473_v34, %s3992_s22  ;;  %2643 = vrot.lane.b32.xlu1 %v4473_v34, %s3989_s17 }
 0x5d6   : > { %v4539_v39 = vpop.permute.xlu1 %2633  ;;  %v4541_v40 = vpop.permute.xlu0 %2179 }
 0x5d8   : > { %2571 = vrot.lane.b32.xlu0 %v4469_v33, %s3992_s22  ;;  %2647 = vrot.lane.b32.xlu1 %v4469_v33, %s3989_s17 }
 0x5da   : > { %v2184_v41 = vpop.permute.xlu0 %2183  ;;  %v2107_v42 = vpop.permute.xlu1 %2106 }
 0x5db   : > { %v2127_v52 = vsel %vm2120_vm12, %v4527_v36, %v2107_v42  ;;  %v2126_v5 = vsel %vm2120_vm12, %v2107_v42, %v2109_v38 }
 0x5dc   : > { %2645 = vrot.lane.b32.xlu0 %v4467_v32, %s3989_s17  ;;  %v2172_v62 = vmul.f32 %v2138_v49, %v2127_v52  ;;  %v2173_v0 = vmul.f32 %v2142_v4, %v2126_v5 }
 0x5de   : > { %v4557_v46 = vpop.permute.xlu0 %2255  ;;  %v4559_v47 = vpop.permute.xlu1 %2110 }
 0x5df   : > { %v2125_v22 = vsel %vm2120_vm12, %v2109_v38, %v4559_v47  ;;  %v2373_v38 = vrot.slane %v4606_v18, %v4562_v48 }
 0x5e0   : > { %2713 = vperm.xlu0 %3797, %v2710_v44   ;;  %v2174_v11 = vmul.f32 %v2146_v55, %v2125_v22 }
 0x5e2   : > { %v2260_v53 = vpop.permute.xlu0 %2259  ;;  %v2182_v54 = vpop.permute.xlu1 %2181 }
 0x5e3   : > { %v2202_v61 = vsel %vm2195_vm13, %v4541_v40, %v2182_v54  ;;  %v2201_v63 = vsel %vm2195_vm13, %v2182_v54, %v2184_v41 }
 0x5e4   : > { %v2248_v2 = vmul.f32 %v2214_v50, %v2202_v61  ;;  %v2249_v9 = vmul.f32 %v2218_v58, %v2201_v63 }
 0x5e6   : > { %v4593_v6 = vpop.permute.xlu0 %2331  ;;  %v4595_v7 = vpop.permute.xlu1 %2185  ;;  %v3658_v8 = vpack.c.bf16 %v2248_v2, %v2172_v62  ;;  %v3676_v15 = vpack.c.bf16 %v2249_v9, %v2173_v0 }
 0x5e7   : > { %v2200_v10 = vsel %vm2195_vm13, %v2184_v41, %v4595_v7  ;;  %v2294_v41 = vrot.slane %v4608_v19, %v4570_v51 }
 0x5e8   : > { %v2250_v12 = vmul.f32 %v2222_v3, %v2200_v10  ;;  %3659 = vmatprep.subr.bf16.mxu0 %v3658_v8 }
 0x5ea   : > { %v2336_v13 = vpop.permute.xlu0 %2335  ;;  %v4600_v14 = vpop.permute.xlu1 %2257  ;;  %v3674_v21 = vpack.c.bf16 %v2250_v12, %v2174_v11 }
 0x5eb   : > { %v2277_v44 = vsel %vm2271_vm14, %v4600_v14, %v2260_v53 }
 0x5ec   : > { %3675 = vmatprep.subr.bf16.mxu1 %v3674_v21  ;;  %v2325_v61 = vmul.f32 %v2294_v41, %v2277_v44  ;;  %v4674_v44 = vsub.s32 4, %v4331_v56 }
 0x5ed   : > { %3677 = vmatpush1.bf16.msra.mxu1 %v3676_v15 }
 0x5ee   : > { %v4602_v16 = vpop.permute.xlu0 %2406  ;;  %v4604_v17 = vpop.permute.xlu1 %2261  ;;  %5098 = vst [vmem:[#allocation18_spill] sm:$0xff] %v4674_v44  ;;  %v2150_v21 = vrot.slane %v4549_v43, %v4674_v44 }
 0x5ef   : > { %v2276_v42 = vsel %vm2271_vm14, %v2260_v53, %v4604_v17  ;;  %v4643_v53 = vld [vmem:[#allocation7 + $0x28] sm:$0xff] }
 0x5f0   : > { %v2326_v55 = vmul.f32 %v2298_v25, %v2276_v42  ;;  %v2440_v5 = vrot.slane %v4643_v53, %v4339_v60  ;;  %v2444_v12 = vrot.slane %v4643_v53, %v4570_v51  ;;  %v4671_v42 = vld [vmem:[#allocation7 + $0x38] sm:$0xff] }
 0x5f2   : > { %v4610_v20 = vpop.permute.xlu0 %2485  ;;  %v4612_v23 = vpop.permute.xlu1 %2333 }
 0x5f3   : > { %v2352_v26 = vsel %vm1375_vm6, %v4612_v23, %v2336_v13 }
 0x5f4   : > { %v2400_v52 = vmul.f32 %v2369_v24, %v2352_v26 }
 0x5f6   : > { %v4632_v49 = vpop.permute.xlu0 %2561  ;;  %v4634_v50 = vpop.permute.xlu1 %2337  ;;  %v3680_v3 = vpack.c.bf16 %v2400_v52, %v2325_v61  ;;  %v2600_v52 = vrot.slane %v4671_v42, %v4562_v48 }
 0x5f7   : > { %v2351_v54 = vsel %vm1375_vm6, %v2336_v13, %v4634_v50 }
 0x5f8   : > { %v2401_v58 = vmul.f32 %v2373_v38, %v2351_v54  ;;  %v2448_v54 = vrot.slane %v4643_v53, %v4562_v48 }
 0x5fa   : > { %v4639_v62 = vpop.permute.xlu0 %2557  ;;  %v4641_v63 = vpop.permute.xlu1 %2483  ;;  %v3678_v2 = vpack.c.bf16 %v2401_v58, %v2326_v55 }
 0x5fc   : > { %3679 = vmatprep.subr.bf16.mxu1 %v3678_v2 }
 0x5fd   : > { %3681 = vmatpush1.bf16.msra.mxu1 %v3680_v3 }
 0x5fe   : > { %v4645_v4 = vpop.permute.xlu0 %2637  ;;  %v2488_v22 = vpop.permute.xlu1 %2487 }
 0x5ff   : > { %v2502_v27 = vsel %vm2497_vm15, %v4610_v20, %v2488_v22 }
 0x602   : > { %v4649_v8 = vpop.permute.xlu0 %2408  ;;  %v4651_v9 = vpop.permute.xlu1 %2559 }
 0x603   : > { %v2427_v10 = vsel %vm1397_vm8, %v4649_v8, %v4525_v35 }
 0x604   : > { %v4657_v11 = vmul.f32 %v2440_v5, %v2427_v10  ;;  %v2226_v10 = vrot.slane %v4554_v45, %v4674_v44 }
 0x606   : > { %v2413_v0 = vpop.permute.xlu0 %2412  ;;  %v2564_v13 = vpop.permute.xlu1 %2563 }
 0x607   : > { %v2426_v15 = vsel %vm1397_vm8, %v4525_v35, %v2413_v0  ;;  %v4680_v35 = vld [vmem:[#allocation7 + $0x30] sm:$0xff] }
 0x608   : > { %v2475_v24 = vmul.f32 %v2444_v12, %v2426_v15  ;;  %5099 = vst [vmem:[#allocation19_spill] sm:$0xff] %v4680_v35  ;;  %v2524_v55 = vrot.slane %v4680_v35, %v4562_v48  ;;  %v2578_v12 = vsel %vm2573_vm0, %v4632_v49, %v2564_v13  ;;  %v2520_v1 = vrot.slane %v4680_v35, %v4570_v51 }
 0x60a   : > { %v3684_v25 = vpack.c.bf16 %v2475_v24, %v4397_v29  ;;  %v4667_v26 = vpop.permute.xlu1 %2635  ;;  %v2596_v29 = vrot.slane %v4671_v42, %v4570_v51 }
 0x60e   : > { %v4669_v38 = vpop.permute.xlu0 %2489  ;;  %v2640_v41 = vpop.permute.xlu1 %2639 }
 0x60f   : > { %5097 = vst [vmem:[#allocation17_spill] sm:$0xff] %v4669_v38  ;;  %v2501_v2 = vsel %vm2497_vm15, %v2488_v22, %v4669_v38 }
 0x612   : > { %v4688_v58 = vpop.permute.xlu0 %2565  ;;  %v4690_v61 = vpop.permute.xlu1 %2414 }
 0x613   : > { %5100 = vst [vmem:[#allocation20_spill] sm:$0xff] %v4688_v58  ;;  %5101 = vst [vmem:[#allocation21_spill] sm:$0xff] %v4690_v61  ;;  %v2577_v3 = vsel %vm2573_vm0, %v2564_v13, %v4688_v58  ;;  %v2425_v5 = vsel %vm1397_vm8, %v2413_v0, %v4690_v61  ;;  %v2552_v0 = vmul.f32 %v2524_v55, %v2501_v2 }
 0x614   : > { %v2628_v15 = vmul.f32 %v2600_v52, %v2577_v3  ;;  %v2476_v24 = vmul.f32 %v2448_v54, %v2425_v5  ;;  %v2627_v13 = vmul.f32 %v2596_v29, %v2578_v12  ;;  %v2551_v2 = vmul.f32 %v2520_v1, %v2502_v27  ;;  %v4736_v12 = vld [vmem:[#allocation7 + $0x40] sm:$0xff] }
 0x615   : > { %v2672_v1 = vrot.slane %v4736_v12, %v4570_v51  ;;  %v2654_v27 = vsel %vm2649_vm1, %v4645_v4, %v2640_v41  ;;  %v2302_v51 = vrot.slane %v4608_v19, %v4674_v44 }
 0x616   : > { %v4713_v58 = vpop.permute.xlu0 %2187  ;;  %v4715_v38 = vpop.permute.xlu1 %2112  ;;  %v3682_v33 = vpack.c.bf16 %v2476_v24, %v4401_v30  ;;  %v3686_v55 = vpack.c.bf16 %v2628_v15, %v2552_v0  ;;  %v3688_v5 = vpack.c.bf16 %v2627_v13, %v2551_v2  ;;  %v4764_v0 = vld [vmem:[%s5056_s10] sm:$0x7]  ;;  %v5108_v2 = vmov 0.0  }
 0x617   : > { %v2199_v52 = vsel %vm2195_vm13, %v4595_v7, %v4713_v58  ;;  %v2124_v54 = vsel %vm2120_vm12, %v4559_v47, %v4715_v38  ;;  %v2676_v47 = vrot.slane %v4736_v12, %v4562_v48  ;;  %v2377_v48 = vrot.slane %v4606_v18, %v4674_v44  ;;  %5105 = vst [vmem:[#allocation25_spill] sm:$0xff] %v4764_v0 }
 0x618   : > { %v4726_v3 = vmul.f32 %v2226_v10, %v2199_v52  ;;  %v4728_v22 = vmul.f32 %v2150_v21, %v2124_v54  ;;  %3683 = vmatprep.subr.bf16.mxu1 %v3682_v33  ;;  %v2703_v15 = vmul.f32 %v2672_v1, %v2654_v27  ;;  %v2210_v27 = vrot.slane %v4554_v45, %v4336_v59 }
 0x619   : > { %3685 = vmatpush1.bf16.msra.mxu1 %v3684_v25  ;;  %v2516_v30 = vrot.slane %v4680_v35, %v4339_v60 }
 0x61a   : > { %5102 = vst [vmem:[#allocation22_spill] sm:$0xff] %v4726_v3  ;;  %5103 = vst [vmem:[#allocation23_spill] sm:$0xff] %v4728_v22  ;;  %v4732_v29 = vpop.permute.xlu0 %2191  ;;  %3687 = vmatprep.subr.bf16.mxu1 %v3686_v55  ;;  %v4734_v7 = vpop.permute.xlu1 %2116 }
 0x61d   : > { %3689 = vmatpush1.bf16.msra.mxu1 %v3688_v5  ;;  %v2512_v5 = vrot.slane %v4680_v35, %v4336_v59 }
 0x61e   : > { %v4746_v33 = vpop.permute.xlu0 %2641  ;;  %v4748_v21 = vpop.permute.xlu1 %2339 }
 0x61f   : > { %5104 = vst [vmem:[#allocation24_spill] sm:$0xff] %v4746_v33  ;;  %v2653_v25 = vsel %vm2649_vm1, %v2640_v41, %v4746_v33  ;;  %v2350_v24 = vsel %vm1375_vm6, %v4634_v50, %v4748_v21  ;;  %v4781_v50 = vsub.s32 7, %v4331_v56 }
 0x620   : > { %v2704_v10 = vmul.f32 %v2676_v47, %v2653_v25  ;;  %v4774_v54 = vmul.f32 %v2377_v48, %v2350_v24  ;;  %v2353_v25 = vsel %vm1375_vm6, %v4593_v6, %v4612_v23  ;;  %v2134_v48 = vrot.slane %v4549_v43, %v4336_v59 }
 0x622   : > { %v4766_v13 = vpop.permute.xlu0 %2263  ;;  %2806 = vmatprep.subr.mxu1 %v2704_v10  ;;  %v4768_v41 = vpop.permute.xlu1 %2343  ;;  %5106 = vst [vmem:[#allocation26_spill] sm:$0xff] %v4774_v54  ;;  %v2238_v10 = vrot.slane %v4554_v45, %v4781_v50 }
 0x623   : > { %v2275_v52 = vsel %vm2271_vm14, %v4604_v17, %v4766_v13  ;;  %2807 = vmatpush1.msra.mxu1 %v2703_v15  ;;  %v2365_v17 = vrot.slane %v4606_v18, %v4339_v60  ;;  %v2290_v15 = vrot.slane %v4608_v19, %v4339_v60 }
 0x624   : > { %v4776_v55 = vmul.f32 %v2302_v51, %v2275_v52  ;;  %3204 = vmatmul.mubr.msk.f32.vlgmr.msra.gmra.mrb[12].mxu1 %vm1138_vm2, %v4764_v0  ;;  %v2162_v51 = vrot.slane %v4549_v43, %v4781_v50  ;;  %v2278_v52 = vsel %vm2271_vm14, %v4557_v46, %v4600_v14  ;;  %v2436_v0 = vrot.slane %v4643_v53, %v4336_v59 }
 0x625   : > { %2996 = vmatprep.mubr.f32.mxu1 %v5108_v2  ;;  %v2399_v32 = vmul.f32 %v2365_v17, %v2353_v25  ;;  %v2324_v35 = vmul.f32 %v2290_v15, %v2278_v52  ;;  %v2592_v17 = vrot.slane %v4671_v42, %v4339_v60 }
 0x626   : > { %5107 = vst [vmem:[#allocation27_spill] sm:$0xff] %v4776_v55  ;;  %v4786_v47 = vpop.permute.xlu0 %2267  ;;  %v2194_v1 = vpop.permute.xlu1 %2193  ;;  %v2361_v55 = vrot.slane %v4606_v18, %v4336_v59 }
 0x627   : > { %v2196_v24 = vsel %vm2195_vm13, %v4732_v29, %v2194_v1  ;;  %v2203_v23 = vsel %vm2195_vm13, %v2194_v1, %v4541_v40  ;;  %v2286_v1 = vrot.slane %v4608_v19, %v4336_v59 }
 0x628   : > { %v2247_v34 = vmul.f32 %v2210_v27, %v2203_v23  ;;  %v2254_v2 = vmul.f32 %v2238_v10, %v2196_v24  ;;  %v4838_v27 = vsub.s32 5, %v4331_v56  ;;  %v4841_v10 = vsub.s32 6, %v4331_v56 }
 0x62a   : > { %v2119_v33 = vpop.permute.xlu0 %2118  ;;  %v2346_v54 = vpop.permute.xlu1 %2345  ;;  %v2234_v24 = vrot.slane %v4554_v45, %v4841_v10  ;;  %v2381_v23 = vrot.slane %v4606_v18, %v4838_v27 }
 0x62b   : > { %v2121_v40 = vsel %vm2120_vm12, %v4734_v7, %v2119_v33  ;;  %v2128_v14 = vsel %vm2120_vm12, %v2119_v33, %v4527_v36  ;;  %v2354_v25 = vsel %vm1375_vm6, %v2346_v54, %v4593_v6 }
 0x62c   : > { %v2171_v22 = vmul.f32 %v2134_v48, %v2128_v14  ;;  %v2178_v3 = vmul.f32 %v2162_v51, %v2121_v40  ;;  %v2428_v48 = vsel %vm1397_vm8, %v4602_v16, %v4649_v8  ;;  %v2398_v56 = vmul.f32 %v2361_v55, %v2354_v25 }
 0x62d   : > { %v2503_v8 = vsel %vm2497_vm15, %v4641_v63, %v4610_v20 }
 0x62e   : > { %v3660_v61 = vpack.c.bf16 %v2247_v34, %v2171_v22  ;;  %v2270_v36 = vpop.permute.xlu0 %2269  ;;  %v4835_v33 = vpop.permute.xlu1 %2418  ;;  %v3706_v44 = vpack.c.bf16 %v2254_v2, %v2178_v3  ;;  %v2579_v34 = vsel %vm2573_vm0, %v4651_v9, %v4632_v49  ;;  %v3662_v3 = vpack.c.bf16 %v2399_v32, %v2324_v35 }
 0x62f   : > { %v2279_v6 = vsel %vm2271_vm14, %v2270_v36, %v4557_v46  ;;  %v2588_v22 = vrot.slane %v4671_v42, %v4336_v59  ;;  %v2504_v49 = vsel %vm2497_vm15, %v4533_v37, %v4641_v63  ;;  %v2664_v32 = vrot.slane %v4736_v12, %v4336_v59 }
 0x630   : > { %v2323_v2 = vmul.f32 %v2286_v1, %v2279_v6  ;;  %3661 = vmatpush1.bf16.msra.mxu0 %v3660_v61  ;;  %3707 = vmatprep.subr.bf16.mxu1 %v3706_v44  ;;  %v2668_v46 = vrot.slane %v4736_v12, %v4339_v60  ;;  %v2473_v35 = vmul.f32 %v2436_v0, %v2428_v48 }
 0x631   : > { %3663 = vmatprep.subr.bf16.mxu0 %v3662_v3  ;;  %v2580_v44 = vsel %vm2573_vm0, %v4639_v62, %v4651_v9  ;;  %v2626_v61 = vmul.f32 %v2592_v17, %v2579_v34  ;;  %v2389_v63 = vrot.slane %v4606_v18, %v4781_v50  ;;  %v2314_v59 = vrot.slane %v4608_v19, %v4781_v50 }
 0x632   : > { %v3664_v20 = vpack.c.bf16 %v2398_v56, %v2323_v2  ;;  %v4872_v55 = vpop.permute.xlu0 %2493  ;;  %v4874_v51 = vpop.permute.xlu1 %2569  ;;  %v2154_v60 = vrot.slane %v4549_v43, %v4838_v27  ;;  %v2158_v0 = vrot.slane %v4549_v43, %v4841_v10  ;;  %v2550_v15 = vmul.f32 %v2516_v30, %v2503_v8 }
 0x633   : > { %v2230_v9 = vrot.slane %v4554_v45, %v4838_v27  ;;  %v2549_v52 = vmul.f32 %v2512_v5, %v2504_v49  ;;  %v2625_v40 = vmul.f32 %v2588_v22, %v2580_v44  ;;  %v2272_v14 = vsel %vm2271_vm14, %v4786_v47, %v2270_v36 }
 0x634   : > { %3665 = vmatpush1.bf16.msra.mxu0 %v3664_v20  ;;  %v5109_v43 = vpack.c.bf16 %v4657_v11, %v4405_v31  ;;  %v2385_v30 = vrot.slane %v4606_v18, %v4841_v10  ;;  %v3668_v1 = vpack.c.bf16 %v2473_v35, %v4395_v28  ;;  %v2655_v45 = vsel %vm2649_vm1, %v4667_v26, %v4645_v4 }
 0x635   : > { %v2347_v5 = vsel %vm1375_vm6, %v4768_v41, %v2346_v54  ;;  %v3670_v36 = vpack.c.bf16 %v2626_v61, %v2550_v15  ;;  %v2330_v11 = vmul.f32 %v2314_v59, %v2272_v14  ;;  %v2310_v34 = vrot.slane %v4608_v19, %v4841_v10  ;;  %v5110_v15 = vld [vmem:[#allocation18_spill] sm:$0xff]  ;;  %v5112_v14 = vld [vmem:[#allocation25_spill] sm:$0xff] }
 0x636   : > { %3667 = vmatprep.subr.bf16.mxu0 %v5109_v43  ;;  %v2115_v17 = vpop.permute.xlu0 %2114  ;;  %v2190_v25 = vpop.permute.xlu1 %2189  ;;  %v2702_v6 = vmul.f32 %v2668_v46, %v2655_v45  ;;  %v2405_v3 = vmul.f32 %v2389_v63, %v2347_v5  ;;  %v5114_v45 = vld [vmem:[#allocation22_spill] sm:$0xff]  ;;  %v5115_v5 = vld [vmem:[#allocation23_spill] sm:$0xff] }
 0x637   : > { %v2122_v31 = vsel %vm2120_vm12, %v2115_v17, %v4734_v7  ;;  %v2123_v28 = vsel %vm2120_vm12, %v4715_v38, %v2115_v17  ;;  %v2197_v18 = vsel %vm2195_vm13, %v2190_v25, %v4732_v29  ;;  %v2198_v4 = vsel %vm2195_vm13, %v4713_v58, %v2190_v25 }
 0x638   : > { %v2177_v54 = vmul.f32 %v2158_v0, %v2122_v31  ;;  %v2253_v48 = vmul.f32 %v2234_v24, %v2197_v18  ;;  %3669 = vmatpush1.bf16.msra.mxu0 %v3668_v1  ;;  %v3672_v7 = vpack.c.bf16 %v2625_v40, %v2549_v52  ;;  %v2656_v38 = vsel %vm2649_vm1, %v4539_v39, %v4667_v26 }
 0x639   : > { %3671 = vmatprep.subr.bf16.mxu0 %v3670_v36  ;;  %v2306_v29 = vrot.slane %v4608_v19, %v4838_v27  ;;  %v2176_v58 = vmul.f32 %v2154_v60, %v2123_v28  ;;  %v2252_v22 = vmul.f32 %v2230_v9, %v2198_v4  ;;  %v3710_v61 = vpack.c.bf16 %v2405_v3, %v2330_v11 }
 0x63a   : > { %v3708_v56 = vpack.c.bf16 %v2253_v48, %v2177_v54  ;;  %v2342_v2 = vpop.permute.xlu0 %2341  ;;  %v2266_v8 = vpop.permute.xlu1 %2265  ;;  %v2452_v9 = vrot.slane %v4643_v53, %v5110_v15  ;;  %v2460_v24 = vrot.slane %v4643_v53, %v4841_v10  ;;  %v5116_v17 = vpack.c.bf16 %v5114_v45, %v5115_v5 }
 0x63b   : > { %v2348_v49 = vsel %vm1375_vm6, %v2342_v2, %v4768_v41  ;;  %v2349_v35 = vsel %vm1375_vm6, %v4748_v21, %v2342_v2  ;;  %v2273_v26 = vsel %vm2271_vm14, %v2266_v8, %v4786_v47  ;;  %v2274_v19 = vsel %vm2271_vm14, %v4766_v13, %v2266_v8 }
 0x63c   : > { %v2404_v46 = vmul.f32 %v2385_v30, %v2348_v49  ;;  %v2329_v44 = vmul.f32 %v2310_v34, %v2273_v26  ;;  %3673 = vmatpush1.bf16.msra.mxu0 %v3672_v7  ;;  %v2403_v20 = vmul.f32 %v2381_v23, %v2349_v35  ;;  %v2328_v63 = vmul.f32 %v2306_v29, %v2274_v19  ;;  %v5113_v30 = vld [vmem:[#allocation19_spill] sm:$0xff]  ;;  %v5119_v29 = vld [vmem:[#allocation14_spill] sm:$0xff] }
 0x63d   : > { %2735 = vmatprep.subr.mxu0 %v2702_v6  ;;  %3709 = vmatpush1.bf16.msra.mxu1 %v3708_v56  ;;  %v2456_v41 = vrot.slane %v4643_v53, %v4838_v27  ;;  %v2701_v21 = vmul.f32 %v2664_v32, %v2656_v38  ;;  %v3690_v0 = vpack.c.bf16 %v2252_v22, %v2176_v58  ;;  %v5111_v32 = vld [vmem:[#allocation21_spill] sm:$0xff]  ;;  %v5117_v34 = vmov 0.0   ;;  %v5118_v38 = vld [vmem:[#allocation16_spill] sm:$0xff]  ;;  %v5120_v58 = vld [vmem:[#allocation26_spill] sm:$0xff] }
 0x63e   : > { %v3712_v59 = vpack.c.bf16 %v2404_v46, %v2329_v44  ;;  %3711 = vmatprep.subr.bf16.mxu1 %v3710_v61  ;;  %v2417_v60 = vpop.permute.xlu0 %2416  ;;  %v2492_v47 = vpop.permute.xlu1 %2491  ;;  %v2464_v23 = vrot.slane %v4643_v53, %v4781_v50  ;;  %v3694_v43 = vpack.c.bf16 %v2403_v20, %v2328_v63  ;;  %v2532_v1 = vrot.slane %v5113_v30, %v4838_v27  ;;  %v5121_v22 = vld [vmem:[#allocation27_spill] sm:$0xff]  ;;  %v5124_v46 = vld [vmem:[#allocation17_spill] sm:$0xff]  ;;  %v5125_v63 = vld [vmem:[#allocation20_spill] sm:$0xff] }
 0x63f   : > { %v2423_v13 = vsel %vm1397_vm8, %v2417_v60, %v4835_v33  ;;  %v2424_v52 = vsel %vm1397_vm8, %v5111_v32, %v2417_v60  ;;  %v2604_v28 = vrot.slane %v4671_v42, %v5110_v15  ;;  %v2608_v18 = vrot.slane %v4671_v42, %v4838_v27  ;;  %v5123_v49 = vld [vmem:[#allocation15_spill] sm:$0xff] }
 0x640   : > { %2736 = vmatpush1.msra.mxu0 %v2701_v21  ;;  %v2478_v40 = vmul.f32 %v2456_v41, %v2423_v13  ;;  %v2477_v4 = vmul.f32 %v2452_v9, %v2424_v52  ;;  %v2499_v11 = vsel %vm2497_vm15, %v2492_v47, %v4872_v55  ;;  %v2540_v7 = vrot.slane %v5113_v30, %v4781_v50  ;;  %v5126_v21 = vld [vmem:[#allocation13_spill] sm:$0xff] }
 0x641   : > { %3203 = vmatmul.mubr.msk.f32.vlgmr.msra.gmra.mrb[20].mxu0 %vm1138_vm2, %v5112_v14  ;;  %3691 = vmatprep.subr.bf16.mxu0 %v3690_v0  ;;  %v5122_v56 = vpack.c.bf16 %v5120_v58, %v5121_v22  ;;  %v2612_v26 = vrot.slane %v4671_v42, %v4841_v10  ;;  %v2616_v19 = vrot.slane %v4671_v42, %v4781_v50 }
 0x642   : > { %3713 = vmatpush1.bf16.msra.mxu1 %v3712_v59  ;;  %3693 = vmatpush1.bf16.msra.mxu0 %v5116_v17  ;;  %v2421_v25 = vpop.permute.xlu0 %2420  ;;  %v2496_v53 = vpop.permute.xlu1 %2495  ;;  %v3698_v6 = vpack.c.bf16 %v2478_v40, %v5118_v38  ;;  %v2500_v44 = vsel %vm2497_vm15, %v5124_v46, %v2492_v47  ;;  %v2554_v61 = vmul.f32 %v2532_v1, %v2499_v11 }
 0x643   : > { %v2422_v36 = vsel %vm1397_vm8, %v4835_v33, %v2421_v25  ;;  %v2429_v31 = vsel %vm1397_vm8, %v2421_v25, %v4602_v16  ;;  %3695 = vmatprep.subr.bf16.mxu0 %v3694_v43  ;;  %2925 = vmatprep.mubr.f32.mxu0 %v5117_v34  ;;  %v2528_v33 = vrot.slane %v5113_v30, %v5110_v15 }
 0x644   : > { %v2479_v54 = vmul.f32 %v2460_v24, %v2422_v36  ;;  %v2480_v48 = vmul.f32 %v2464_v23, %v2429_v31  ;;  %v2536_v16 = vrot.slane %v5113_v30, %v4841_v10  ;;  %v3700_v59 = vpack.c.bf16 %v2477_v4, %v5126_v21 }
 0x645   : > { %v2498_v42 = vsel %vm2497_vm15, %v4872_v55, %v2496_v53  ;;  %v2505_v47 = vsel %vm2497_vm15, %v2496_v53, %v4533_v37  ;;  %v2553_v0 = vmul.f32 %v2528_v33, %v2500_v44  ;;  %v2692_v24 = vrot.slane %v4736_v12, %v4781_v50 }
 0x646   : > { %v3716_v3 = vpack.c.bf16 %v2479_v54, %v5119_v29  ;;  %3697 = vmatpush1.bf16.msra.mxu0 %v5122_v56  ;;  %v2568_v2 = vpop.permute.xlu0 %2567  ;;  %v2644_v8 = vpop.permute.xlu1 %2643  ;;  %v3714_v35 = vpack.c.bf16 %v2480_v48, %v5123_v49  ;;  %v2555_v52 = vmul.f32 %v2536_v16, %v2498_v42  ;;  %v2684_v37 = vrot.slane %v4736_v12, %v4838_v27 }
 0x647   : > { %v2575_v20 = vsel %vm2573_vm0, %v2568_v2, %v4874_v51  ;;  %v2576_v41 = vsel %vm2573_vm0, %v5125_v63, %v2568_v2  ;;  %3699 = vmatprep.subr.bf16.mxu0 %v3698_v6  ;;  %v2556_v43 = vmul.f32 %v2540_v7, %v2505_v47  ;;  %v2680_v50 = vrot.slane %v4736_v12, %v5110_v15 }
 0x648   : > { %v2629_v60 = vmul.f32 %v2604_v28, %v2576_v41  ;;  %v2630_v13 = vmul.f32 %v2608_v18, %v2575_v20  ;;  %3715 = vmatprep.subr.bf16.mxu1 %v3714_v35  ;;  %v2688_v53 = vrot.slane %v4736_v12, %v4841_v10 }
 0x649   : > { %3717 = vmatpush1.bf16.msra.mxu1 %v3716_v3 }
 0x64a   : > { %3701 = vmatpush1.bf16.msra.mxu0 %v3700_v59  ;;  %v2572_v9 = vpop.permute.xlu0 %2571  ;;  %v2648_v23 = vpop.permute.xlu1 %2647  ;;  %v3702_v32 = vpack.c.bf16 %v2630_v13, %v2554_v61  ;;  %v3704_v30 = vpack.c.bf16 %v2629_v60, %v2553_v0 }
 0x64b   : > { %v2574_v55 = vsel %vm2573_vm0, %v4874_v51, %v2572_v9  ;;  %v2581_v40 = vsel %vm2573_vm0, %v2572_v9, %v4639_v62  ;;  %v2657_v5 = vsel %vm2649_vm1, %v2648_v23, %v4539_v39  ;;  %v5127_v51 = vld [vmem:[#allocation24_spill] sm:$0xff] }
 0x64c   : > { %v2631_v1 = vmul.f32 %v2612_v26, %v2574_v55  ;;  %v2632_v45 = vmul.f32 %v2616_v19, %v2581_v40  ;;  %3703 = vmatprep.subr.bf16.mxu0 %v3702_v32  ;;  %v2652_v17 = vsel %vm2649_vm1, %v5127_v51, %v2644_v8  ;;  %v2708_v31 = vmul.f32 %v2692_v24, %v2657_v5 }
 0x64d   : > { %v2705_v39 = vmul.f32 %v2680_v50, %v2652_v17 }
 0x64e   : > { %v3720_v62 = vpack.c.bf16 %v2631_v1, %v2555_v52  ;;  %3705 = vmatpush1.bf16.msra.mxu0 %v3704_v30  ;;  %v2646_v25 = vpop.permute.xlu0 %2645  ;;  %v3718_v27 = vpack.c.bf16 %v2632_v45, %v2556_v43 }
 0x64f   : > { %v2651_v36 = vsel %vm2649_vm1, %v2644_v8, %v2646_v25  ;;  %v2650_v15 = vsel %vm2649_vm1, %v2646_v25, %v2648_v23 }
 0x650   : > { %v2706_v28 = vmul.f32 %v2684_v37, %v2651_v36  ;;  %3719 = vmatprep.subr.bf16.mxu1 %v3718_v27  ;;  %v2707_v18 = vmul.f32 %v2688_v53, %v2650_v15 }
 0x651   : > { %3721 = vmatpush1.bf16.msra.mxu1 %v3720_v62 }
 0x652   : > { %2877 = vmatprep.subr.mxu0 %v2706_v28  ;;  %2948 = vmatprep.subr.mxu1 %v2708_v31 }
 0x653   : > { %2878 = vmatpush1.msra.mxu0 %v2705_v39 }
 0x654   : > { %3205 = vmatmul.mubr.msk.f32.vlgmr.msra.gmra.mrb[22].mxu0 %vm1138_vm2, %v5112_v14 }
 0x655   : > { %2949 = vmatpush1.msra.mxu1 %v2707_v18 }
 0x656   : > { %3206 = vmatmul.mubr.msk.f32.vlgmr.msra.gmra.mrb[14].mxu1 %vm1138_vm2, %v5112_v14 }
 0x65f   : > { %v2714_v12 = vpop.permute.xlu0 %2713 }
 0x6f7   : > { %v2856_v10 = vpop.f32.mrb[12].mxu1 }
 0x6f8   : > { %v2857_v57 = vadd.f32 %v2856_v10, %v2714_v12  ;;  %v2858_v4 = vpop.f32.mrb[13].mxu1 }
 0x6f9   : > { %v2859_v11 = vadd.f32 %v2858_v4, %v2714_v12 }
 0x6fa   : > { %v3005_v54 = vsub.f32 0.0, %v2857_v57 }
 0x6fb   : > { %v3006_v48 = vsub.f32 0.0, %v2859_v11 }
 0x6fc   : > { %v3015_v34 = vmul.f32 1.442695, %v3005_v54 }
 0x6fd   : > { %v3017_v33 = vmul.f32 1.442695, %v3006_v48 }
 0x6fe   : > { %3799 = vpow2.f32 %v3015_v34 }
 0x6ff   : > { %3801 = vpow2.f32 %v3017_v33 }
 0x708   : > { %v3800_v16 = vpop.eup %3799 }
 0x709   : > { %v3802_v7 = vpop.eup %3801  ;;  %v3029_v38 = vadd.f32 1.0, %v3800_v16 }
 0x70a   : > { %v3030_v6 = vadd.f32 1.0, %v3802_v7 }
 0x70b   : > { %3803 = vrcp.f32 %v3029_v38 }
 0x70c   : > { %3805 = vrcp.f32 %v3030_v6 }
 0x714   : > { %v2785_v14 = vpop.f32.mrb[20].mxu0 }
 0x715   : > { %v3804_v29 = vpop.eup %3803  ;;  %v2786_v3 = vadd.f32 %v2785_v14, %v2714_v12  ;;  %v2787_v58 = vpop.f32.mrb[21].mxu0 }
 0x716   : > { %v3806_v22 = vpop.eup %3805  ;;  %v2788_v56 = vadd.f32 %v2787_v58, %v2714_v12 }
 0x717   : > { %v3052_v2 = vcombine.low %v3804_v29, %v3806_v22  ;;  %v3003_v8 = vsub.f32 0.0, %v2786_v3 }
 0x718   : > { %v3004_v49 = vsub.f32 0.0, %v2788_v56 }
 0x719   : > { %3060 = vst [vmem:[%s5037_s28 + $0x8] sm:$0x77] %v3052_v2  ;;  %v3011_v35 = vmul.f32 1.442695, %v3003_v8 }
 0x71a   : > { %v3013_v26 = vmul.f32 1.442695, %v3004_v49 }
 0x71b   : > { %3807 = vpow2.f32 %v3011_v35 }
 0x71c   : > { %3809 = vpow2.f32 %v3013_v26 }
 0x725   : > { %v3808_v19 = vpop.eup %3807 }
 0x726   : > { %v3810_v46 = vpop.eup %3809  ;;  %v3027_v44 = vadd.f32 1.0, %v3808_v19 }
 0x727   : > { %v3028_v61 = vadd.f32 1.0, %v3810_v46  ;;  %v2927_v20 = vpop.f32.mrb[22].mxu0 }
 0x728   : > { %3811 = vrcp.f32 %v3027_v44  ;;  %v2928_v63 = vadd.f32 %v2927_v20, %v2714_v12  ;;  %v2929_v41 = vpop.f32.mrb[23].mxu0 }
 0x729   : > { %3813 = vrcp.f32 %v3028_v61  ;;  %v2930_v21 = vadd.f32 %v2929_v41, %v2714_v12  ;;  %v2998_v59 = vpop.f32.mrb[14].mxu1 }
 0x72a   : > { %v3007_v42 = vsub.f32 0.0, %v2928_v63  ;;  %v2999_v60 = vadd.f32 %v2998_v59, %v2714_v12  ;;  %v3000_v13 = vpop.f32.mrb[15].mxu1 }
 0x72b   : > { %v3008_v47 = vsub.f32 0.0, %v2930_v21  ;;  %v3001_v0 = vadd.f32 %v3000_v13, %v2714_v12 }
 0x72c   : > { %v3019_v9 = vmul.f32 1.442695, %v3007_v42  ;;  %v3009_v24 = vsub.f32 0.0, %v2999_v60 }
 0x72d   : > { %v3021_v23 = vmul.f32 1.442695, %v3008_v47  ;;  %v3010_v32 = vsub.f32 0.0, %v3001_v0 }
 0x72e   : > { %3815 = vpow2.f32 %v3019_v9  ;;  %v3023_v52 = vmul.f32 1.442695, %v3009_v24 }
 0x72f   : > { %3817 = vpow2.f32 %v3021_v23  ;;  %v3025_v55 = vmul.f32 1.442695, %v3010_v32 }
 0x730   : > { %3819 = vpow2.f32 %v3023_v52 }
 0x731   : > { %3821 = vpow2.f32 %v3025_v55 }
 0x732   : > { %v3812_v40 = vpop.eup %3811 }
 0x733   : > { %v3814_v37 = vpop.eup %3813 }
 0x734   : > { %v3051_v43 = vcombine.low %v3812_v40, %v3814_v37 }
 0x736   : > { %3059 = vst [vmem:[%s5037_s28] sm:$0x77] %v3051_v43 }
 0x738   : > { %v3816_v30 = vpop.eup %3815 }
 0x739   : > { %v3818_v1 = vpop.eup %3817  ;;  %v3031_v45 = vadd.f32 1.0, %v3816_v30 }
 0x73a   : > { %v3820_v50 = vpop.eup %3819  ;;  %v3032_v5 = vadd.f32 1.0, %v3818_v1 }
 0x73b   : > { %v3822_v51 = vpop.eup %3821  ;;  %3823 = vrcp.f32 %v3031_v45  ;;  %v3033_v17 = vadd.f32 1.0, %v3820_v50 }
 0x73c   : > { %3825 = vrcp.f32 %v3032_v5  ;;  %v3034_v62 = vadd.f32 1.0, %v3822_v51 }
 0x73d   : > { %3827 = vrcp.f32 %v3033_v17 }
 0x73e   : > { %3829 = vrcp.f32 %v3034_v62 }
 0x745   : > { %v3824_v25 = vpop.eup %3823 }
 0x746   : > { %v3826_v27 = vpop.eup %3825 }
 0x747   : > { %v3828_v53 = vpop.eup %3827  ;;  %v3053_v36 = vcombine.low %v3824_v25, %v3826_v27 }
 0x748   : > { %v3830_v31 = vpop.eup %3829 }
 0x749   : > { %3061 = vst [vmem:[%s5037_s28 + $0x10] sm:$0x77] %v3053_v36  ;;  %v3054_v15 = vcombine.low %v3828_v53, %v3830_v31 }
 0x74b   : > { %3062 = vst [vmem:[%s5037_s28 + $0x18] sm:$0x77] %v3054_v15 }
 0x74c PF: > { %s5128_s24 = sld [smem:[#allocation12_spill]] }
 0x752   : > { %s25_s21 = sadd.s32 1, %s5128_s24  }
 0x753   : > { %p22_p1 = scmp.ge.s32.totalorder %s25_s21, 4  }
 0x755   :  { %24 = sbr.rel (!%p22_p1) target bundleno = 3 (0x3), region = 137 }
 0x75c   :  { %3084 = vsyncpa [#allocation3], 1 }
 0x75d   :  { %3086 = vsyncpa [#allocation3 + $0x1], 1 }
 0x75e   :  { %3087 = vsyncpa [#allocation5], 1 }
 0x75f   :  { %3088 = vsyncpa [#allocation8], 1 }

</bundles_post_ra>
